<compile_context>
chip_gen: v7x
topology: tpu7x:2x2x1
jax: 0.10.0
libtpu: 0.0.40
codegen_flags: <defaults>
</compile_context>

<pallas_src>
import jax
import jax.numpy as jnp
import numpy as np
from jax import lax
from jax.experimental import pallas as pl
from jax.experimental.pallas import tpu as pltpu

_LANE = 128


def _round_up(x, m):
    return (x + m - 1) // m * m


def _pick_band(h, target):
    """Largest divisor of h that is <= target (band height)."""
    best = 1
    for d in range(1, h + 1):
        if h % d == 0 and d <= target:
            best = d
    return best


def _vmem_limit_bytes():
    try:
        cap = int(pltpu.get_tpu_info().vmem_capacity_bytes)
    except Exception:
        cap = 128 * 1024 * 1024
    # Leave headroom for compiler-internal scratch and implicit temps:
    # ~38 MiB on v7x (64 MiB physical), capped at 64 MiB on v5e/v6e.
    return min(int(cap * 6 // 10), 64 * 1024 * 1024)


def _make_kernel(Hb, W, C, P, nb):
    """Hb: band rows, W: image width, C: padded in/out channels (4*planes),
    P: padded planes, nb: number of bands per image."""
    bf16 = jnp.bfloat16
    R = Hb + 2                 # band rows + 1-row halo above and below
    HW = Hb * W

    def kernel(xb_ref, xu_ref, xd_ref, w1_ref, w2_ref, w3_ref,
               b1_ref, b2_ref, b3_ref, o_ref):
        b = pl.program_id(1)

        # ---------------- conv1 (1x1, BN1 scale pre-folded) ------------------
        # One matmul over the band plus its two halo rows (2/Hb redundancy).
        x_ext = jnp.concatenate(
            [xu_ref[0].reshape(W, C).astype(bf16),
             xb_ref[0].reshape(HW, C).astype(bf16),
             xd_ref[0].reshape(W, C).astype(bf16)], axis=0)          # (R*W, C)
        h = jnp.dot(x_ext, w1_ref[...], preferred_element_type=jnp.float32)
        h = jnp.maximum(h + b1_ref[...], 0.0)                        # (R*W, P)
        h = h.reshape(R, W, P)

        # Halo rows that fall outside the image are conv2's zero padding.
        r = lax.broadcasted_iota(jnp.int32, (R, 1, 1), 0)
        lo = jnp.where(b > 0, 0, 1)
        hi = jnp.where(b < nb - 1, R, R - 1)
        h_bf = jnp.where((r >= lo) & (r < hi), h, 0.0).astype(bf16)  # bf16 once

        # ------------- conv2 (3x3, stride 1, pad 1) via banded im2col --------
        # Lane-concatenate the three kx-shifted copies (each a multiple of 128
        # lanes) -> (R, W, 3P); each ky LHS is then a leading-axis slice and
        # one K=3P MXU matmul.  The three ky products accumulate in place.
        # TODO(synk): on v5e (128-deep MXU) 9 accumulating K=P matmuls read
        # straight from h_bf would skip the shifted copies; keep K=3P here
        # for the 256-deep v6e/v7x MXUs.
        zcol = jnp.zeros((R, 1, P), bf16)
        left = jnp.concatenate([zcol, h_bf[:, :W - 1, :]], axis=1)   # h[:, c-1]
        right = jnp.concatenate([h_bf[:, 1:, :], zcol], axis=1)      # h[:, c+1]
        cols = jnp.concatenate([left, h_bf, right], axis=-1)         # (R, W, 3P)

        h2 = jnp.dot(cols[0:Hb].reshape(HW, 3 * P), w2_ref[0],
                     preferred_element_type=jnp.float32)
        for ky in (1, 2):
            h2 = h2 + jnp.dot(cols[ky:ky + Hb].reshape(HW, 3 * P),
                              w2_ref[ky], preferred_element_type=jnp.float32)
        h2 = jnp.maximum(h2 + b2_ref[...], 0.0)                      # (HW, P)

        # ------------- conv3 (1x1) + bias + residual + ReLU ------------------
        h3 = jnp.dot(h2.astype(bf16), w3_ref[...],
                     preferred_element_type=jnp.float32)
        # Re-read the resident input band for the residual (short live range).
        out = jnp.maximum(h3 + b3_ref[...] + xb_ref[0].reshape(HW, C), 0.0)
        o_ref[0] = out.reshape(Hb, W, C)

    return kernel


def bottleneck_pallas(x_nhwc, w1, w2, w3, sb1, sb2, sb3, *, band_rows=16):
    """Bottleneck forward (stride=1, downsample=None), eval-mode BatchNorm.

    x_nhwc: (N, H, W, Cin) f32 -- the PyTorch NCHW input transposed to NHWC.
    w1: (Cin, P)      PyTorch conv1 weight (P, Cin, 1, 1) transposed
    w2: (3, 3, P, P)  PyTorch conv2 weight (P, P, 3, 3) in HWIO
    w3: (P, 4P)       PyTorch conv3 weight (4P, P, 1, 1) transposed
    sb*: (2, C) folded eval-mode BatchNorm scale / bias.
    """
    N, H, W, Cin = x_nhwc.shape
    P = w1.shape[1]
    Cout = 4 * P
    assert Cin == Cout, "downsample is None -> inplanes must equal planes*4"

    f32, bf16 = jnp.float32, jnp.bfloat16
    Cp = _round_up(Cin, _LANE)        # lane-dense channels
    Pp = _round_up(P, _LANE)
    Hb = _pick_band(H, band_rows)     # band height (divides H)
    nb = H // Hb
    # TODO(synk): stages with W % 8 != 0 (14x14, 7x7) still pay relayouts on
    # the (rows, W) -> rows*W flattens; pad W spatially (and mask the conv1
    # output columns >= W to zero in-kernel) if those stages matter.

    # Fold the eval-mode BN scales into the conv weights (exact: per-output-
    # channel constants); only the bias-add + ReLU stays in the kernel.
    w1f = w1 * sb1[0][None, :]
    w2f = w2 * sb2[0][None, None, None, :]
    w3f = w3 * sb3[0][None, :]

    # Lane-dense channel padding: padded weight columns and biases are zero,
    # so padded output lanes stay exactly zero through conv3 + residual.
    xp = jnp.pad(x_nhwc, ((0, 0), (0, 0), (0, 0), (0, Cp - Cin)))
    w1p = jnp.pad(w1f, ((0, Cp - Cin), (0, Pp - P))).astype(bf16)
    w2p = jnp.pad(w2f, ((0, 0), (0, 0), (0, Pp - P), (0, Pp - P)))
    w2p = w2p.reshape(3, 3 * Pp, Pp).astype(bf16)   # per-ky rows = (kx, cin)
    w3p = jnp.pad(w3f, ((0, Pp - P), (0, Cp - Cout))).astype(bf16)
    b1p = jnp.pad(sb1[1], (0, Pp - P)).astype(f32).reshape(1, Pp)
    b2p = jnp.pad(sb2[1], (0, Pp - P)).astype(f32).reshape(1, Pp)
    b3p = jnp.pad(sb3[1], (0, Cp - Cout)).astype(f32).reshape(1, Cp)

    kernel = _make_kernel(Hb, W, Cp, Pp, nb)

    def build_grid_spec(single_buffer_weights):
        def wspec(shape, imap):
            if single_buffer_weights:
                # Grid-invariant operands: one VMEM buffer is enough.
                return pl.BlockSpec(shape, imap, pipeline_mode=pl.Buffered(1))
            return pl.BlockSpec(shape, imap)

        in_specs = [
            # x band + the single halo row above / below it (clamped at the
            # image edges; the kernel masks halo rows outside the image).
            pl.BlockSpec((1, Hb, W, Cp), lambda n, b: (n, b, 0, 0)),
            pl.BlockSpec((1, 1, W, Cp),
                         lambda n, b: (n, jnp.maximum(b * Hb - 1, 0), 0, 0)),
            pl.BlockSpec((1, 1, W, Cp),
                         lambda n, b: (n, jnp.minimum((b + 1) * Hb, H - 1), 0, 0)),
            wspec((Cp, Pp), lambda n, b: (0, 0)),                  # w1
            wspec((3, 3 * Pp, Pp), lambda n, b: (0, 0, 0)),        # w2
            wspec((Pp, Cp), lambda n, b: (0, 0)),                  # w3
            wspec((1, Pp), lambda n, b: (0, 0)),                   # bn1 bias
            wspec((1, Pp), lambda n, b: (0, 0)),                   # bn2 bias
            wspec((1, Cp), lambda n, b: (0, 0)),                   # bn3 bias
        ]
        return pltpu.PrefetchScalarGridSpec(
            num_scalar_prefetch=0,
            grid=(N, nb),
            in_specs=in_specs,
            out_specs=pl.BlockSpec((1, Hb, W, Cp), lambda n, b: (n, b, 0, 0)),
        )

    flops = 2 * N * nb * ((Hb + 2) * W * Cp * Pp          # conv1 (incl. halo)
                          + 3 * Hb * W * 3 * Pp * Pp      # conv2 (3 ky, K=3P)
                          + Hb * W * Pp * Cp)             # conv3
    bytes_accessed = (N * nb * (Hb + 2) * W * Cp * 4      # x reads (f32)
                      + N * H * W * Cp * 4                # out writes (f32)
                      + (Cp * Pp + 9 * Pp * Pp + Pp * Cp) * 2   # bf16 weights
                      + (2 * Pp + Cp) * 4)                # biases

    def run(single_buffer_weights):
        return pl.pallas_call(
            kernel,
            out_shape=jax.ShapeDtypeStruct((N, H, W, Cp), jnp.float32),
            grid_spec=build_grid_spec(single_buffer_weights),
            compiler_params=pltpu.CompilerParams(
                # Bands are independent -> both axes parallel (megacore can
                # split over bands even at batch 1 on v7x).
                dimension_semantics=("parallel", "parallel"),
                vmem_limit_bytes=_vmem_limit_bytes()),
            cost_estimate=pl.CostEstimate(flops=flops, transcendentals=0,
                                          bytes_accessed=bytes_accessed),
        )(xp, xp, xp, w1p, w2p, w3p, b1p, b2p, b3p)

    try:
        out = run(True)
    except Exception:
        # Fallback for Pallas versions without pipeline_mode / Buffered(1):
        # identical kernel, default double-buffered weight blocks.
        out = run(False)

    # TODO(synk): bf16 x/out streaming would roughly halve HBM traffic on the
    # HBM-bound stages; kept f32 here to preserve the module's numerics.
    return out[..., :Cout]


# ------------------------------ reference (pure JAX) -------------------------
def bottleneck_ref(x, w1, w2, w3, sb1, sb2, sb3):
    """Mirrors the kernel's numerics: BN scale folded into the weights, bf16
    MXU operands, f32 accumulation, f32 bias / residual / ReLU."""
    bf = jnp.bfloat16
    w1f = (w1 * sb1[0][None, :]).astype(bf)
    w2f = (w2 * sb2[0][None, None, None, :]).astype(bf)
    w3f = (w3 * sb3[0][None, :]).astype(bf)
    h = jnp.einsum('nhwc,cd->nhwd', x.astype(bf), w1f,
                   preferred_element_type=jnp.float32)
    h = jnp.maximum(h + sb1[1], 0.0)
    h = lax.conv_general_dilated(
        h.astype(bf), w2f, window_strides=(1, 1),
        padding=((1, 1), (1, 1)),
        dimension_numbers=('NHWC', 'HWIO', 'NHWC'),
        preferred_element_type=jnp.float32)
    h = jnp.maximum(h + sb2[1], 0.0)
    h = jnp.einsum('nhwc,cd->nhwd', h.astype(bf), w3f,
                   preferred_element_type=jnp.float32)
    h = h + sb3[1]
    return jnp.maximum(h + x, 0.0)


def fold_bn(gamma, beta, mean, var, eps=1e-5):
    scale = gamma / jnp.sqrt(var + eps)
    bias = beta - mean * scale
    return jnp.stack([scale, bias], axis=0)     # (2, C)


if __name__ == "__main__":
    # Small shapes consistent with the module: inplanes=16, planes=4,
    # expansion=4 -> out channels 16 (so the identity residual is valid).
    N, H, W = 2, 16, 16
    Cin, P = 16, 4
    Cout = 4 * P

    key = jax.random.PRNGKey(0)
    ks = jax.random.split(key, 12)

    # Conceptually NCHW (N, Cin, H, W) in PyTorch; kept NHWC here.
    x = jax.random.normal(ks[0], (N, H, W, Cin), jnp.float32)

    # conv weights stored directly in matmul / HWIO layouts:
    #   PyTorch conv1x1 (O, I, 1, 1) <-> (I, O); conv3x3 (O, I, 3, 3) <-> HWIO.
    w1 = jax.random.normal(ks[1], (Cin, P), jnp.float32) * 0.1
    w2 = jax.random.normal(ks[2], (3, 3, P, P), jnp.float32) * 0.1
    w3 = jax.random.normal(ks[3], (P, Cout), jnp.float32) * 0.1

    # Eval-mode BatchNorm params, folded to scale/bias.
    sb1 = fold_bn(1.0 + 0.1 * jax.random.normal(ks[4], (P,)),
                  0.1 * jax.random.normal(ks[5], (P,)),
                  0.1 * jax.random.normal(ks[6], (P,)),
                  jnp.abs(jax.random.normal(ks[7], (P,))) + 0.5)
    sb2 = fold_bn(1.0 + 0.1 * jax.random.normal(ks[8], (P,)),
                  0.1 * jax.random.normal(ks[9], (P,)),
                  0.1 * jax.random.normal(ks[10], (P,)),
                  jnp.abs(jax.random.normal(ks[11], (P,))) + 0.5)
    sb3 = fold_bn(jnp.ones((Cout,)), jnp.zeros((Cout,)),
                  jnp.zeros((Cout,)), jnp.ones((Cout,)))

    # band_rows=8 -> 2 bands per image: exercises the halo masking at both
    # image edges and a real (in-image) halo row on each side.
    out = bottleneck_pallas(x, w1, w2, w3, sb1, sb2, sb3, band_rows=8)
    out = jax.block_until_ready(out)

    ref = bottleneck_ref(x, w1, w2, w3, sb1, sb2, sb3)
    # Tolerance reflects bf16 MXU inputs (f32 accumulation); kernel and
    # reference use identical folded bf16 operands, residual differences come
    # only from accumulation order / bf16 rounding at layer boundaries.
    np.testing.assert_allclose(np.asarray(out), np.asarray(ref),
                               rtol=2e-3, atol=2e-3)
    print("KERNEL_OK")
</pallas_src>

<mosaic_0001>
module attributes {stable_mosaic.version = 11 : i64} {
  func.func @kernel(%arg0: i32, %arg1: i32, %arg2: memref<1x8x16x128xf32, #tpu.memory_space<vmem>>, %arg3: memref<1x1x16x128xf32, #tpu.memory_space<vmem>>, %arg4: memref<1x1x16x128xf32, #tpu.memory_space<vmem>>, %arg5: memref<128x128xbf16, #tpu.memory_space<vmem>>, %arg6: memref<3x384x128xbf16, #tpu.memory_space<vmem>>, %arg7: memref<128x128xbf16, #tpu.memory_space<vmem>>, %arg8: memref<1x128xf32, #tpu.memory_space<vmem>>, %arg9: memref<1x128xf32, #tpu.memory_space<vmem>>, %arg10: memref<1x128xf32, #tpu.memory_space<vmem>>, %arg11: memref<1x8x16x128xf32, #tpu.memory_space<vmem>>) attributes {dimension_semantics = [#tpu.dimension_semantics<parallel>, #tpu.dimension_semantics<parallel>], iteration_bounds = array<i64: 2, 2>, scalar_prefetch = 0 : i64, scratch_operands = 0 : i64, tpu.core_type = #tpu.core_type<tc>, window_params = [{transform_indices = @transform_0, window_bounds = array<i64: 1, 8, 16, 128>}, {transform_indices = @transform_1, window_bounds = array<i64: 1, 1, 16, 128>}, {transform_indices = @transform_2, window_bounds = array<i64: 1, 1, 16, 128>}, {pipeline_mode = #tpu.pipeline_mode<synchronous>, transform_indices = @transform_3, window_bounds = array<i64: 128, 128>}, {pipeline_mode = #tpu.pipeline_mode<synchronous>, transform_indices = @transform_4, window_bounds = array<i64: 3, 384, 128>}, {pipeline_mode = #tpu.pipeline_mode<synchronous>, transform_indices = @transform_5, window_bounds = array<i64: 128, 128>}, {pipeline_mode = #tpu.pipeline_mode<synchronous>, transform_indices = @transform_6, window_bounds = array<i64: 1, 128>}, {pipeline_mode = #tpu.pipeline_mode<synchronous>, transform_indices = @transform_7, window_bounds = array<i64: 1, 128>}, {pipeline_mode = #tpu.pipeline_mode<synchronous>, transform_indices = @transform_8, window_bounds = array<i64: 1, 128>}, {transform_indices = @transform_9, window_bounds = array<i64: 1, 8, 16, 128>}]} {
    %c0 = arith.constant 0 : index
    %c0_0 = arith.constant 0 : index
    %c0_1 = arith.constant 0 : index
    %c0_2 = arith.constant 0 : index
    %0 = vector.load %arg3[%c0, %c0_0, %c0_1, %c0_2] : memref<1x1x16x128xf32, #tpu.memory_space<vmem>>, vector<1x1x16x128xf32>
    %1 = vector.shape_cast %0 : vector<1x1x16x128xf32> to vector<1x16x128xf32>
    %2 = vector.shape_cast %1 : vector<1x16x128xf32> to vector<16x128xf32>
    %3 = arith.truncf %2 : vector<16x128xf32> to vector<16x128xbf16>
    %c0_3 = arith.constant 0 : index
    %c0_4 = arith.constant 0 : index
    %c0_5 = arith.constant 0 : index
    %c0_6 = arith.constant 0 : index
    %4 = vector.load %arg2[%c0_3, %c0_4, %c0_5, %c0_6] : memref<1x8x16x128xf32, #tpu.memory_space<vmem>>, vector<1x8x16x128xf32>
    %5 = vector.shape_cast %4 : vector<1x8x16x128xf32> to vector<8x16x128xf32>
    %6 = vector.shape_cast %5 : vector<8x16x128xf32> to vector<128x128xf32>
    %7 = arith.truncf %6 : vector<128x128xf32> to vector<128x128xbf16>
    %c0_7 = arith.constant 0 : index
    %c0_8 = arith.constant 0 : index
    %c0_9 = arith.constant 0 : index
    %c0_10 = arith.constant 0 : index
    %8 = vector.load %arg4[%c0_7, %c0_8, %c0_9, %c0_10] : memref<1x1x16x128xf32, #tpu.memory_space<vmem>>, vector<1x1x16x128xf32>
    %9 = vector.shape_cast %8 : vector<1x1x16x128xf32> to vector<1x16x128xf32>
    %10 = vector.shape_cast %9 : vector<1x16x128xf32> to vector<16x128xf32>
    %11 = arith.truncf %10 : vector<16x128xf32> to vector<16x128xbf16>
    %12 = tpu.concatenate %3, %7, %11 in 0 : vector<16x128xbf16>, vector<128x128xbf16>, vector<16x128xbf16> -> vector<160x128xbf16>
    %c0_11 = arith.constant 0 : index
    %c0_12 = arith.constant 0 : index
    %13 = vector.load %arg5[%c0_11, %c0_12] : memref<128x128xbf16, #tpu.memory_space<vmem>>, vector<128x128xbf16>
    %cst = arith.constant dense<0.000000e+00> : vector<160x128xf32>
    %14 = tpu.matmul %12, %13, %cst {dimension_numbers = #tpu.dot_dimension_numbers<[1], [0], [0], [1], [0, 0, 1, 1], [], []>} : vector<160x128xbf16>, vector<128x128xbf16>, vector<160x128xf32> -> vector<160x128xf32>
    %c0_13 = arith.constant 0 : index
    %c0_14 = arith.constant 0 : index
    %15 = vector.load %arg8[%c0_13, %c0_14] : memref<1x128xf32, #tpu.memory_space<vmem>>, vector<1x128xf32>
    %16 = vector.broadcast %15 : vector<1x128xf32> to vector<160x128xf32>
    %17 = arith.addf %14, %16 : vector<160x128xf32>
    %cst_15 = arith.constant 0.000000e+00 : f32
    %18 = vector.broadcast %cst_15 : f32 to vector<160x128xf32>
    %19 = arith.maximumf %17, %18 : vector<160x128xf32>
    %20 = vector.shape_cast %19 : vector<160x128xf32> to vector<10x16x128xf32>
    %21 = tpu.iota {dimensions = array<i32: 0>} : vector<10x1x1xi32>
    %c0_i32 = arith.constant 0 : i32
    %22 = arith.cmpi sgt, %arg1, %c0_i32 : i32
    %c0_i32_16 = arith.constant 0 : i32
    %c1_i32 = arith.constant 1 : i32
    %23 = arith.select %22, %c0_i32_16, %c1_i32 : i32
    %c1_i32_17 = arith.constant 1 : i32
    %24 = arith.cmpi slt, %arg1, %c1_i32_17 : i32
    %c10_i32 = arith.constant 10 : i32
    %c9_i32 = arith.constant 9 : i32
    %25 = arith.select %24, %c10_i32, %c9_i32 : i32
    %26 = vector.broadcast %23 : i32 to vector<10x1x1xi32>
    %27 = arith.cmpi sge, %21, %26 : vector<10x1x1xi32>
    %28 = vector.broadcast %25 : i32 to vector<10x1x1xi32>
    %29 = arith.cmpi slt, %21, %28 : vector<10x1x1xi32>
    %30 = arith.andi %27, %29 : vector<10x1x1xi1>
    %cst_18 = arith.constant 0.000000e+00 : f32
    %31 = vector.shape_cast %30 : vector<10x1x1xi1> to vector<10x1x1xi1>
    %32 = vector.broadcast %31 : vector<10x1x1xi1> to vector<10x16x128xi1>
    %33 = vector.broadcast %cst_18 : f32 to vector<10x16x128xf32>
    %34 = arith.select %32, %20, %33 : vector<10x16x128xi1>, vector<10x16x128xf32>
    %35 = arith.truncf %34 : vector<10x16x128xf32> to vector<10x16x128xbf16>
    %cst_19 = arith.constant 0.000000e+00 : bf16
    %36 = vector.broadcast %cst_19 : bf16 to vector<10x1x128xbf16>
    %37 = vector.extract_strided_slice %35 {offsets = [0, 0, 0], sizes = [10, 15, 128], strides = [1, 1, 1]} : vector<10x16x128xbf16> to vector<10x15x128xbf16>
    %38 = tpu.concatenate %36, %37 in 1 : vector<10x1x128xbf16>, vector<10x15x128xbf16> -> vector<10x16x128xbf16>
    %39 = vector.extract_strided_slice %35 {offsets = [0, 1, 0], sizes = [10, 15, 128], strides = [1, 1, 1]} : vector<10x16x128xbf16> to vector<10x15x128xbf16>
    %40 = tpu.concatenate %39, %36 in 1 : vector<10x15x128xbf16>, vector<10x1x128xbf16> -> vector<10x16x128xbf16>
    %41 = tpu.concatenate %38, %35, %40 in 2 : vector<10x16x128xbf16>, vector<10x16x128xbf16>, vector<10x16x128xbf16> -> vector<10x16x384xbf16>
    %42 = vector.extract_strided_slice %41 {offsets = [0, 0, 0], sizes = [8, 16, 384], strides = [1, 1, 1]} : vector<10x16x384xbf16> to vector<8x16x384xbf16>
    %43 = vector.shape_cast %42 : vector<8x16x384xbf16> to vector<128x384xbf16>
    %c0_20 = arith.constant 0 : index
    %c0_21 = arith.constant 0 : index
    %c0_22 = arith.constant 0 : index
    %44 = vector.load %arg6[%c0_20, %c0_21, %c0_22] : memref<3x384x128xbf16, #tpu.memory_space<vmem>>, vector<1x384x128xbf16>
    %45 = vector.shape_cast %44 : vector<1x384x128xbf16> to vector<384x128xbf16>
    %cst_23 = arith.constant dense<0.000000e+00> : vector<128x128xf32>
    %46 = tpu.matmul %43, %45, %cst_23 {dimension_numbers = #tpu.dot_dimension_numbers<[1], [0], [0], [1], [0, 0, 1, 1], [], []>} : vector<128x384xbf16>, vector<384x128xbf16>, vector<128x128xf32> -> vector<128x128xf32>
    %47 = vector.extract_strided_slice %41 {offsets = [1, 0, 0], sizes = [8, 16, 384], strides = [1, 1, 1]} : vector<10x16x384xbf16> to vector<8x16x384xbf16>
    %48 = vector.shape_cast %47 : vector<8x16x384xbf16> to vector<128x384xbf16>
    %c1 = arith.constant 1 : index
    %c0_24 = arith.constant 0 : index
    %c0_25 = arith.constant 0 : index
    %49 = vector.load %arg6[%c1, %c0_24, %c0_25] : memref<3x384x128xbf16, #tpu.memory_space<vmem>>, vector<1x384x128xbf16>
    %50 = vector.shape_cast %49 : vector<1x384x128xbf16> to vector<384x128xbf16>
    %cst_26 = arith.constant dense<0.000000e+00> : vector<128x128xf32>
    %51 = tpu.matmul %48, %50, %cst_26 {dimension_numbers = #tpu.dot_dimension_numbers<[1], [0], [0], [1], [0, 0, 1, 1], [], []>} : vector<128x384xbf16>, vector<384x128xbf16>, vector<128x128xf32> -> vector<128x128xf32>
    %52 = arith.addf %46, %51 : vector<128x128xf32>
    %53 = vector.extract_strided_slice %41 {offsets = [2, 0, 0], sizes = [8, 16, 384], strides = [1, 1, 1]} : vector<10x16x384xbf16> to vector<8x16x384xbf16>
    %54 = vector.shape_cast %53 : vector<8x16x384xbf16> to vector<128x384xbf16>
    %c2 = arith.constant 2 : index
    %c0_27 = arith.constant 0 : index
    %c0_28 = arith.constant 0 : index
    %55 = vector.load %arg6[%c2, %c0_27, %c0_28] : memref<3x384x128xbf16, #tpu.memory_space<vmem>>, vector<1x384x128xbf16>
    %56 = vector.shape_cast %55 : vector<1x384x128xbf16> to vector<384x128xbf16>
    %cst_29 = arith.constant dense<0.000000e+00> : vector<128x128xf32>
    %57 = tpu.matmul %54, %56, %cst_29 {dimension_numbers = #tpu.dot_dimension_numbers<[1], [0], [0], [1], [0, 0, 1, 1], [], []>} : vector<128x384xbf16>, vector<384x128xbf16>, vector<128x128xf32> -> vector<128x128xf32>
    %58 = arith.addf %52, %57 : vector<128x128xf32>
    %c0_30 = arith.constant 0 : index
    %c0_31 = arith.constant 0 : index
    %59 = vector.load %arg9[%c0_30, %c0_31] : memref<1x128xf32, #tpu.memory_space<vmem>>, vector<1x128xf32>
    %60 = vector.broadcast %59 : vector<1x128xf32> to vector<128x128xf32>
    %61 = arith.addf %58, %60 : vector<128x128xf32>
    %cst_32 = arith.constant 0.000000e+00 : f32
    %62 = vector.broadcast %cst_32 : f32 to vector<128x128xf32>
    %63 = arith.maximumf %61, %62 : vector<128x128xf32>
    %64 = arith.truncf %63 : vector<128x128xf32> to vector<128x128xbf16>
    %c0_33 = arith.constant 0 : index
    %c0_34 = arith.constant 0 : index
    %65 = vector.load %arg7[%c0_33, %c0_34] : memref<128x128xbf16, #tpu.memory_space<vmem>>, vector<128x128xbf16>
    %cst_35 = arith.constant dense<0.000000e+00> : vector<128x128xf32>
    %66 = tpu.matmul %64, %65, %cst_35 {dimension_numbers = #tpu.dot_dimension_numbers<[1], [0], [0], [1], [0, 0, 1, 1], [], []>} : vector<128x128xbf16>, vector<128x128xbf16>, vector<128x128xf32> -> vector<128x128xf32>
    %c0_36 = arith.constant 0 : index
    %c0_37 = arith.constant 0 : index
    %67 = vector.load %arg10[%c0_36, %c0_37] : memref<1x128xf32, #tpu.memory_space<vmem>>, vector<1x128xf32>
    %68 = vector.broadcast %67 : vector<1x128xf32> to vector<128x128xf32>
    %69 = arith.addf %66, %68 : vector<128x128xf32>
    %c0_38 = arith.constant 0 : index
    %c0_39 = arith.constant 0 : index
    %c0_40 = arith.constant 0 : index
    %c0_41 = arith.constant 0 : index
    %70 = vector.load %arg2[%c0_38, %c0_39, %c0_40, %c0_41] : memref<1x8x16x128xf32, #tpu.memory_space<vmem>>, vector<1x8x16x128xf32>
    %71 = vector.shape_cast %70 : vector<1x8x16x128xf32> to vector<8x16x128xf32>
    %72 = vector.shape_cast %71 : vector<8x16x128xf32> to vector<128x128xf32>
    %73 = arith.addf %69, %72 : vector<128x128xf32>
    %cst_42 = arith.constant 0.000000e+00 : f32
    %74 = vector.broadcast %cst_42 : f32 to vector<128x128xf32>
    %75 = arith.maximumf %73, %74 : vector<128x128xf32>
    %76 = vector.shape_cast %75 : vector<128x128xf32> to vector<8x16x128xf32>
    %c0_43 = arith.constant 0 : index
    %c0_44 = arith.constant 0 : index
    %c0_45 = arith.constant 0 : index
    %c0_46 = arith.constant 0 : index
    %77 = vector.load %arg11[%c0_43, %c0_44, %c0_45, %c0_46] : memref<1x8x16x128xf32, #tpu.memory_space<vmem>>, vector<1x8x16x128xf32>
    %78 = vector.shape_cast %77 : vector<1x8x16x128xf32> to vector<8x16x128xf32>
    %79 = vector.shape_cast %76 : vector<8x16x128xf32> to vector<1x8x16x128xf32>
    tpu.vector_store %arg11[%c0_43, %c0_44, %c0_45, %c0_46], %79 {strides = array<i32>} : memref<1x8x16x128xf32, #tpu.memory_space<vmem>>, vector<1x8x16x128xf32>,
    return
  }
  func.func @transform_0(%arg0: i32, %arg1: i32) -> (i32, i32, i32, i32) {
    %c0_i32 = arith.constant 0 : i32
    %c0_i32_0 = arith.constant 0 : i32
    %c0_i32_1 = arith.constant 0 : i32
    return %arg0, %arg1, %c0_i32, %c0_i32_0 : i32, i32, i32, i32
  }
  func.func @transform_1(%arg0: i32, %arg1: i32) -> (i32, i32, i32, i32) {
    %c8_i32 = arith.constant 8 : i32
    %0 = arith.muli %arg1, %c8_i32 : i32
    %c1_i32 = arith.constant 1 : i32
    %1 = arith.subi %0, %c1_i32 : i32
    %c0_i32 = arith.constant 0 : i32
    %2 = arith.maxsi %1, %c0_i32 : i32
    %c0_i32_0 = arith.constant 0 : i32
    %c0_i32_1 = arith.constant 0 : i32
    %c0_i32_2 = arith.constant 0 : i32
    return %arg0, %2, %c0_i32_0, %c0_i32_1 : i32, i32, i32, i32
  }
  func.func @transform_2(%arg0: i32, %arg1: i32) -> (i32, i32, i32, i32) {
    %c1_i32 = arith.constant 1 : i32
    %0 = arith.addi %arg1, %c1_i32 : i32
    %c8_i32 = arith.constant 8 : i32
    %1 = arith.muli %0, %c8_i32 : i32
    %c15_i32 = arith.constant 15 : i32
    %2 = arith.minsi %1, %c15_i32 : i32
    %c0_i32 = arith.constant 0 : i32
    %c0_i32_0 = arith.constant 0 : i32
    %c0_i32_1 = arith.constant 0 : i32
    return %arg0, %2, %c0_i32, %c0_i32_0 : i32, i32, i32, i32
  }
  func.func @transform_3(%arg0: i32, %arg1: i32) -> (i32, i32) {
    %c0_i32 = arith.constant 0 : i32
    %c0_i32_0 = arith.constant 0 : i32
    %c0_i32_1 = arith.constant 0 : i32
    return %c0_i32, %c0_i32_0 : i32, i32
  }
  func.func @transform_4(%arg0: i32, %arg1: i32) -> (i32, i32, i32) {
    %c0_i32 = arith.constant 0 : i32
    %c0_i32_0 = arith.constant 0 : i32
    %c0_i32_1 = arith.constant 0 : i32
    %c0_i32_2 = arith.constant 0 : i32
    return %c0_i32, %c0_i32_0, %c0_i32_1 : i32, i32, i32
  }
  func.func @transform_5(%arg0: i32, %arg1: i32) -> (i32, i32) {
    %c0_i32 = arith.constant 0 : i32
    %c0_i32_0 = arith.constant 0 : i32
    %c0_i32_1 = arith.constant 0 : i32
    return %c0_i32, %c0_i32_0 : i32, i32
  }
  func.func @transform_6(%arg0: i32, %arg1: i32) -> (i32, i32) {
    %c0_i32 = arith.constant 0 : i32
    %c0_i32_0 = arith.constant 0 : i32
    %c0_i32_1 = arith.constant 0 : i32
    return %c0_i32, %c0_i32_0 : i32, i32
  }
  func.func @transform_7(%arg0: i32, %arg1: i32) -> (i32, i32) {
    %c0_i32 = arith.constant 0 : i32
    %c0_i32_0 = arith.constant 0 : i32
    %c0_i32_1 = arith.constant 0 : i32
    return %c0_i32, %c0_i32_0 : i32, i32
  }
  func.func @transform_8(%arg0: i32, %arg1: i32) -> (i32, i32) {
    %c0_i32 = arith.constant 0 : i32
    %c0_i32_0 = arith.constant 0 : i32
    %c0_i32_1 = arith.constant 0 : i32
    return %c0_i32, %c0_i32_0 : i32, i32
  }
  func.func @transform_9(%arg0: i32, %arg1: i32) -> (i32, i32, i32, i32) {
    %c0_i32 = arith.constant 0 : i32
    %c0_i32_0 = arith.constant 0 : i32
    %c0_i32_1 = arith.constant 0 : i32
    return %arg0, %arg1, %c0_i32, %c0_i32_0 : i32, i32, i32, i32
  }
}

module attributes {stable_mosaic.version = 11 : i64} {
  func.func @kernel(%arg0: i32, %arg1: i32, %arg2: memref<1x8x16x128xf32, #tpu.memory_space<vmem>>, %arg3: memref<1x1x16x128xf32, #tpu.memory_space<vmem>>, %arg4: memref<1x1x16x128xf32, #tpu.memory_space<vmem>>, %arg5: memref<128x128xbf16, #tpu.memory_space<vmem>>, %arg6: memref<3x384x128xbf16, #tpu.memory_space<vmem>>, %arg7: memref<128x128xbf16, #tpu.memory_space<vmem>>, %arg8: memref<1x128xf32, #tpu.memory_space<vmem>>, %arg9: memref<1x128xf32, #tpu.memory_space<vmem>>, %arg10: memref<1x128xf32, #tpu.memory_space<vmem>>, %arg11: memref<1x8x16x128xf32, #tpu.memory_space<vmem>>) attributes {dimension_semantics = [#tpu.dimension_semantics<parallel>, #tpu.dimension_semantics<parallel>], iteration_bounds = array<i64: 2, 2>, scalar_prefetch = 0 : i64, scratch_operands = 0 : i64, tpu.core_type = #tpu.core_type<tc>, window_params = [{transform_indices = @transform_0, window_bounds = array<i64: 1, 8, 16, 128>}, {transform_indices = @transform_1, window_bounds = array<i64: 1, 1, 16, 128>}, {transform_indices = @transform_2, window_bounds = array<i64: 1, 1, 16, 128>}, {pipeline_mode = #tpu.pipeline_mode<synchronous>, transform_indices = @transform_3, window_bounds = array<i64: 128, 128>}, {pipeline_mode = #tpu.pipeline_mode<synchronous>, transform_indices = @transform_4, window_bounds = array<i64: 3, 384, 128>}, {pipeline_mode = #tpu.pipeline_mode<synchronous>, transform_indices = @transform_5, window_bounds = array<i64: 128, 128>}, {pipeline_mode = #tpu.pipeline_mode<synchronous>, transform_indices = @transform_6, window_bounds = array<i64: 1, 128>}, {pipeline_mode = #tpu.pipeline_mode<synchronous>, transform_indices = @transform_7, window_bounds = array<i64: 1, 128>}, {pipeline_mode = #tpu.pipeline_mode<synchronous>, transform_indices = @transform_8, window_bounds = array<i64: 1, 128>}, {transform_indices = @transform_9, window_bounds = array<i64: 1, 8, 16, 128>}]} {
    %c0 = arith.constant 0 : index
    %c0_0 = arith.constant 0 : index
    %c0_1 = arith.constant 0 : index
    %c0_2 = arith.constant 0 : index
    %0 = vector.load %arg3[%c0, %c0_0, %c0_1, %c0_2] : memref<1x1x16x128xf32, #tpu.memory_space<vmem>>, vector<1x1x16x128xf32>
    %1 = vector.shape_cast %0 : vector<1x1x16x128xf32> to vector<1x16x128xf32>
    %2 = vector.shape_cast %1 : vector<1x16x128xf32> to vector<16x128xf32>
    %3 = arith.truncf %2 : vector<16x128xf32> to vector<16x128xbf16>
    %c0_3 = arith.constant 0 : index
    %c0_4 = arith.constant 0 : index
    %c0_5 = arith.constant 0 : index
    %c0_6 = arith.constant 0 : index
    %4 = vector.load %arg2[%c0_3, %c0_4, %c0_5, %c0_6] : memref<1x8x16x128xf32, #tpu.memory_space<vmem>>, vector<1x8x16x128xf32>
    %5 = vector.shape_cast %4 : vector<1x8x16x128xf32> to vector<8x16x128xf32>
    %6 = vector.shape_cast %5 : vector<8x16x128xf32> to vector<128x128xf32>
    %7 = arith.truncf %6 : vector<128x128xf32> to vector<128x128xbf16>
    %c0_7 = arith.constant 0 : index
    %c0_8 = arith.constant 0 : index
    %c0_9 = arith.constant 0 : index
    %c0_10 = arith.constant 0 : index
    %8 = vector.load %arg4[%c0_7, %c0_8, %c0_9, %c0_10] : memref<1x1x16x128xf32, #tpu.memory_space<vmem>>, vector<1x1x16x128xf32>
    %9 = vector.shape_cast %8 : vector<1x1x16x128xf32> to vector<1x16x128xf32>
    %10 = vector.shape_cast %9 : vector<1x16x128xf32> to vector<16x128xf32>
    %11 = arith.truncf %10 : vector<16x128xf32> to vector<16x128xbf16>
    %12 = tpu.concatenate %3, %7, %11 in 0 : vector<16x128xbf16>, vector<128x128xbf16>, vector<16x128xbf16> -> vector<160x128xbf16>
    %c0_11 = arith.constant 0 : index
    %c0_12 = arith.constant 0 : index
    %13 = vector.load %arg5[%c0_11, %c0_12] : memref<128x128xbf16, #tpu.memory_space<vmem>>, vector<128x128xbf16>
    %cst = arith.constant dense<0.000000e+00> : vector<160x128xf32>
    %14 = tpu.matmul %12, %13, %cst {dimension_numbers = #tpu.dot_dimension_numbers<[1], [0], [0], [1], [0, 0, 1, 1], [], []>} : vector<160x128xbf16>, vector<128x128xbf16>, vector<160x128xf32> -> vector<160x128xf32>
    %c0_13 = arith.constant 0 : index
    %c0_14 = arith.constant 0 : index
    %15 = vector.load %arg8[%c0_13, %c0_14] : memref<1x128xf32, #tpu.memory_space<vmem>>, vector<1x128xf32>
    %16 = vector.broadcast %15 : vector<1x128xf32> to vector<160x128xf32>
    %17 = arith.addf %14, %16 : vector<160x128xf32>
    %cst_15 = arith.constant 0.000000e+00 : f32
    %18 = vector.broadcast %cst_15 : f32 to vector<160x128xf32>
    %19 = arith.maximumf %17, %18 : vector<160x128xf32>
    %20 = vector.shape_cast %19 : vector<160x128xf32> to vector<10x16x128xf32>
    %21 = tpu.iota {dimensions = array<i32: 0>} : vector<10x1x1xi32>
    %c0_i32 = arith.constant 0 : i32
    %22 = arith.cmpi sgt, %arg1, %c0_i32 : i32
    %c0_i32_16 = arith.constant 0 : i32
    %c1_i32 = arith.constant 1 : i32
    %23 = arith.select %22, %c0_i32_16, %c1_i32 : i32
    %c1_i32_17 = arith.constant 1 : i32
    %24 = arith.cmpi slt, %arg1, %c1_i32_17 : i32
    %c10_i32 = arith.constant 10 : i32
    %c9_i32 = arith.constant 9 : i32
    %25 = arith.select %24, %c10_i32, %c9_i32 : i32
    %26 = vector.broadcast %23 : i32 to vector<10x1x1xi32>
    %27 = arith.cmpi sge, %21, %26 : vector<10x1x1xi32>
    %28 = vector.broadcast %25 : i32 to vector<10x1x1xi32>
    %29 = arith.cmpi slt, %21, %28 : vector<10x1x1xi32>
    %30 = arith.andi %27, %29 : vector<10x1x1xi1>
    %cst_18 = arith.constant 0.000000e+00 : f32
    %31 = vector.shape_cast %30 : vector<10x1x1xi1> to vector<10x1x1xi1>
    %32 = vector.broadcast %31 : vector<10x1x1xi1> to vector<10x16x128xi1>
    %33 = vector.broadcast %cst_18 : f32 to vector<10x16x128xf32>
    %34 = arith.select %32, %20, %33 : vector<10x16x128xi1>, vector<10x16x128xf32>
    %35 = arith.truncf %34 : vector<10x16x128xf32> to vector<10x16x128xbf16>
    %cst_19 = arith.constant 0.000000e+00 : bf16
    %36 = vector.broadcast %cst_19 : bf16 to vector<10x1x128xbf16>
    %37 = vector.extract_strided_slice %35 {offsets = [0, 0, 0], sizes = [10, 15, 128], strides = [1, 1, 1]} : vector<10x16x128xbf16> to vector<10x15x128xbf16>
    %38 = tpu.concatenate %36, %37 in 1 : vector<10x1x128xbf16>, vector<10x15x128xbf16> -> vector<10x16x128xbf16>
    %39 = vector.extract_strided_slice %35 {offsets = [0, 1, 0], sizes = [10, 15, 128], strides = [1, 1, 1]} : vector<10x16x128xbf16> to vector<10x15x128xbf16>
    %40 = tpu.concatenate %39, %36 in 1 : vector<10x15x128xbf16>, vector<10x1x128xbf16> -> vector<10x16x128xbf16>
    %41 = tpu.concatenate %38, %35, %40 in 2 : vector<10x16x128xbf16>, vector<10x16x128xbf16>, vector<10x16x128xbf16> -> vector<10x16x384xbf16>
    %42 = vector.extract_strided_slice %41 {offsets = [0, 0, 0], sizes = [8, 16, 384], strides = [1, 1, 1]} : vector<10x16x384xbf16> to vector<8x16x384xbf16>
    %43 = vector.shape_cast %42 : vector<8x16x384xbf16> to vector<128x384xbf16>
    %c0_20 = arith.constant 0 : index
    %c0_21 = arith.constant 0 : index
    %c0_22 = arith.constant 0 : index
    %44 = vector.load %arg6[%c0_20, %c0_21, %c0_22] : memref<3x384x128xbf16, #tpu.memory_space<vmem>>, vector<1x384x128xbf16>
    %45 = vector.shape_cast %44 : vector<1x384x128xbf16> to vector<384x128xbf16>
    %cst_23 = arith.constant dense<0.000000e+00> : vector<128x128xf32>
    %46 = tpu.matmul %43, %45, %cst_23 {dimension_numbers = #tpu.dot_dimension_numbers<[1], [0], [0], [1], [0, 0, 1, 1], [], []>} : vector<128x384xbf16>, vector<384x128xbf16>, vector<128x128xf32> -> vector<128x128xf32>
    %47 = vector.extract_strided_slice %41 {offsets = [1, 0, 0], sizes = [8, 16, 384], strides = [1, 1, 1]} : vector<10x16x384xbf16> to vector<8x16x384xbf16>
    %48 = vector.shape_cast %47 : vector<8x16x384xbf16> to vector<128x384xbf16>
    %c1 = arith.constant 1 : index
    %c0_24 = arith.constant 0 : index
    %c0_25 = arith.constant 0 : index
    %49 = vector.load %arg6[%c1, %c0_24, %c0_25] : memref<3x384x128xbf16, #tpu.memory_space<vmem>>, vector<1x384x128xbf16>
    %50 = vector.shape_cast %49 : vector<1x384x128xbf16> to vector<384x128xbf16>
    %cst_26 = arith.constant dense<0.000000e+00> : vector<128x128xf32>
    %51 = tpu.matmul %48, %50, %cst_26 {dimension_numbers = #tpu.dot_dimension_numbers<[1], [0], [0], [1], [0, 0, 1, 1], [], []>} : vector<128x384xbf16>, vector<384x128xbf16>, vector<128x128xf32> -> vector<128x128xf32>
    %52 = arith.addf %46, %51 : vector<128x128xf32>
    %53 = vector.extract_strided_slice %41 {offsets = [2, 0, 0], sizes = [8, 16, 384], strides = [1, 1, 1]} : vector<10x16x384xbf16> to vector<8x16x384xbf16>
    %54 = vector.shape_cast %53 : vector<8x16x384xbf16> to vector<128x384xbf16>
    %c2 = arith.constant 2 : index
    %c0_27 = arith.constant 0 : index
    %c0_28 = arith.constant 0 : index
    %55 = vector.load %arg6[%c2, %c0_27, %c0_28] : memref<3x384x128xbf16, #tpu.memory_space<vmem>>, vector<1x384x128xbf16>
    %56 = vector.shape_cast %55 : vector<1x384x128xbf16> to vector<384x128xbf16>
    %cst_29 = arith.constant dense<0.000000e+00> : vector<128x128xf32>
    %57 = tpu.matmul %54, %56, %cst_29 {dimension_numbers = #tpu.dot_dimension_numbers<[1], [0], [0], [1], [0, 0, 1, 1], [], []>} : vector<128x384xbf16>, vector<384x128xbf16>, vector<128x128xf32> -> vector<128x128xf32>
    %58 = arith.addf %52, %57 : vector<128x128xf32>
    %c0_30 = arith.constant 0 : index
    %c0_31 = arith.constant 0 : index
    %59 = vector.load %arg9[%c0_30, %c0_31] : memref<1x128xf32, #tpu.memory_space<vmem>>, vector<1x128xf32>
    %60 = vector.broadcast %59 : vector<1x128xf32> to vector<128x128xf32>
    %61 = arith.addf %58, %60 : vector<128x128xf32>
    %cst_32 = arith.constant 0.000000e+00 : f32
    %62 = vector.broadcast %cst_32 : f32 to vector<128x128xf32>
    %63 = arith.maximumf %61, %62 : vector<128x128xf32>
    %64 = arith.truncf %63 : vector<128x128xf32> to vector<128x128xbf16>
    %c0_33 = arith.constant 0 : index
    %c0_34 = arith.constant 0 : index
    %65 = vector.load %arg7[%c0_33, %c0_34] : memref<128x128xbf16, #tpu.memory_space<vmem>>, vector<128x128xbf16>
    %cst_35 = arith.constant dense<0.000000e+00> : vector<128x128xf32>
    %66 = tpu.matmul %64, %65, %cst_35 {dimension_numbers = #tpu.dot_dimension_numbers<[1], [0], [0], [1], [0, 0, 1, 1], [], []>} : vector<128x128xbf16>, vector<128x128xbf16>, vector<128x128xf32> -> vector<128x128xf32>
    %c0_36 = arith.constant 0 : index
    %c0_37 = arith.constant 0 : index
    %67 = vector.load %arg10[%c0_36, %c0_37] : memref<1x128xf32, #tpu.memory_space<vmem>>, vector<1x128xf32>
    %68 = vector.broadcast %67 : vector<1x128xf32> to vector<128x128xf32>
    %69 = arith.addf %66, %68 : vector<128x128xf32>
    %c0_38 = arith.constant 0 : index
    %c0_39 = arith.constant 0 : index
    %c0_40 = arith.constant 0 : index
    %c0_41 = arith.constant 0 : index
    %70 = vector.load %arg2[%c0_38, %c0_39, %c0_40, %c0_41] : memref<1x8x16x128xf32, #tpu.memory_space<vmem>>, vector<1x8x16x128xf32>
    %71 = vector.shape_cast %70 : vector<1x8x16x128xf32> to vector<8x16x128xf32>
    %72 = vector.shape_cast %71 : vector<8x16x128xf32> to vector<128x128xf32>
    %73 = arith.addf %69, %72 : vector<128x128xf32>
    %cst_42 = arith.constant 0.000000e+00 : f32
    %74 = vector.broadcast %cst_42 : f32 to vector<128x128xf32>
    %75 = arith.maximumf %73, %74 : vector<128x128xf32>
    %76 = vector.shape_cast %75 : vector<128x128xf32> to vector<8x16x128xf32>
    %c0_43 = arith.constant 0 : index
    %c0_44 = arith.constant 0 : index
    %c0_45 = arith.constant 0 : index
    %c0_46 = arith.constant 0 : index
    %77 = vector.load %arg11[%c0_43, %c0_44, %c0_45, %c0_46] : memref<1x8x16x128xf32, #tpu.memory_space<vmem>>, vector<1x8x16x128xf32>
    %78 = vector.shape_cast %77 : vector<1x8x16x128xf32> to vector<8x16x128xf32>
    %79 = vector.shape_cast %76 : vector<8x16x128xf32> to vector<1x8x16x128xf32>
    tpu.vector_store %arg11[%c0_43, %c0_44, %c0_45, %c0_46], %79 {strides = array<i32>} : memref<1x8x16x128xf32, #tpu.memory_space<vmem>>, vector<1x8x16x128xf32>,
    return
  }
  func.func @transform_0(%arg0: i32, %arg1: i32) -> (i32, i32, i32, i32) {
    %c0_i32 = arith.constant 0 : i32
    %c0_i32_0 = arith.constant 0 : i32
    %c0_i32_1 = arith.constant 0 : i32
    return %arg0, %arg1, %c0_i32, %c0_i32_0 : i32, i32, i32, i32
  }
  func.func @transform_1(%arg0: i32, %arg1: i32) -> (i32, i32, i32, i32) {
    %c8_i32 = arith.constant 8 : i32
    %0 = arith.muli %arg1, %c8_i32 : i32
    %c1_i32 = arith.constant 1 : i32
    %1 = arith.subi %0, %c1_i32 : i32
    %c0_i32 = arith.constant 0 : i32
    %2 = arith.maxsi %1, %c0_i32 : i32
    %c0_i32_0 = arith.constant 0 : i32
    %c0_i32_1 = arith.constant 0 : i32
    %c0_i32_2 = arith.constant 0 : i32
    return %arg0, %2, %c0_i32_0, %c0_i32_1 : i32, i32, i32, i32
  }
  func.func @transform_2(%arg0: i32, %arg1: i32) -> (i32, i32, i32, i32) {
    %c1_i32 = arith.constant 1 : i32
    %0 = arith.addi %arg1, %c1_i32 : i32
    %c8_i32 = arith.constant 8 : i32
    %1 = arith.muli %0, %c8_i32 : i32
    %c15_i32 = arith.constant 15 : i32
    %2 = arith.minsi %1, %c15_i32 : i32
    %c0_i32 = arith.constant 0 : i32
    %c0_i32_0 = arith.constant 0 : i32
    %c0_i32_1 = arith.constant 0 : i32
    return %arg0, %2, %c0_i32, %c0_i32_0 : i32, i32, i32, i32
  }
  func.func @transform_3(%arg0: i32, %arg1: i32) -> (i32, i32) {
    %c0_i32 = arith.constant 0 : i32
    %c0_i32_0 = arith.constant 0 : i32
    %c0_i32_1 = arith.constant 0 : i32
    return %c0_i32, %c0_i32_0 : i32, i32
  }
  func.func @transform_4(%arg0: i32, %arg1: i32) -> (i32, i32, i32) {
    %c0_i32 = arith.constant 0 : i32
    %c0_i32_0 = arith.constant 0 : i32
    %c0_i32_1 = arith.constant 0 : i32
    %c0_i32_2 = arith.constant 0 : i32
    return %c0_i32, %c0_i32_0, %c0_i32_1 : i32, i32, i32
  }
  func.func @transform_5(%arg0: i32, %arg1: i32) -> (i32, i32) {
    %c0_i32 = arith.constant 0 : i32
    %c0_i32_0 = arith.constant 0 : i32
    %c0_i32_1 = arith.constant 0 : i32
    return %c0_i32, %c0_i32_0 : i32, i32
  }
  func.func @transform_6(%arg0: i32, %arg1: i32) -> (i32, i32) {
    %c0_i32 = arith.constant 0 : i32
    %c0_i32_0 = arith.constant 0 : i32
    %c0_i32_1 = arith.constant 0 : i32
    return %c0_i32, %c0_i32_0 : i32, i32
  }
  func.func @transform_7(%arg0: i32, %arg1: i32) -> (i32, i32) {
    %c0_i32 = arith.constant 0 : i32
    %c0_i32_0 = arith.constant 0 : i32
    %c0_i32_1 = arith.constant 0 : i32
    return %c0_i32, %c0_i32_0 : i32, i32
  }
  func.func @transform_8(%arg0: i32, %arg1: i32) -> (i32, i32) {
    %c0_i32 = arith.constant 0 : i32
    %c0_i32_0 = arith.constant 0 : i32
    %c0_i32_1 = arith.constant 0 : i32
    return %c0_i32, %c0_i32_0 : i32, i32
  }
  func.func @transform_9(%arg0: i32, %arg1: i32) -> (i32, i32, i32, i32) {
    %c0_i32 = arith.constant 0 : i32
    %c0_i32_0 = arith.constant 0 : i32
    %c0_i32_1 = arith.constant 0 : i32
    return %arg0, %arg1, %c0_i32, %c0_i32_0 : i32, i32, i32, i32
  }
}

</mosaic_0001>

<bundles_post_ra>
// kernel: tpu_custom_call.1
= control target key start
LH: loop header
LB: loop body
LE: loop exit
PB: predicated region body
PF: predicated region fallthrough
CT: control target
= control target key end

     0   :  { %s5548_s0 = inlined_call_operand.hbm [shape: f32[2,16,16,128], index: 0, kind: input, shape index: {}]   ;;  %s5549_s1 = inlined_call_operand.hbm [shape: f32[2,16,16,128], index: 1, kind: input, shape index: {}]   ;;  %s5550_s2 = inlined_call_operand.hbm [shape: f32[2,16,16,128], index: 2, kind: input, shape index: {}]   ;;  %s5551_s3 = inlined_call_operand.hbm [shape: bf16[128,128], index: 3, kind: input, shape index: {}]   ;;  %s5552_s4 = inlined_call_operand.hbm [shape: bf16[3,384,128], index: 4, kind: input, shape index: {}]   ;;  %s5553_s5 = inlined_call_operand.hbm [shape: bf16[128,128], index: 5, kind: input, shape index: {}]   ;;  %s5554_s6 = inlined_call_operand.hbm [shape: f32[1,128], index: 6, kind: input, shape index: {}]   ;;  %s5555_s7 = inlined_call_operand.hbm [shape: f32[1,128], index: 7, kind: input, shape index: {}]   ;;  %s5556_s8 = inlined_call_operand.hbm [shape: f32[1,128], index: 8, kind: input, shape index: {}]   ;;  %s5557_s9 = inlined_call_operand.hbm [shape: f32[2,16,16,128], index: 9, kind: output, shape index: {}]  }
   0x1   :  { %5588 = sst [smem:[#allocation38_spill]] %s5548_s0 }
   0x2   :  { %5589 = sst [smem:[#allocation39_spill]] %s5549_s1 }
   0x3   :  { %5590 = sst [smem:[#allocation40_spill]] %s5550_s2 }
   0x4   :  { %5591 = sst [smem:[#allocation41_spill]] %s5551_s3 }
   0x5   :  { %5592 = sst [smem:[#allocation42_spill]] %s5552_s4 }
   0x6   :  { %5593 = sst [smem:[#allocation43_spill]] %s5553_s5 }
   0x7   :  { %5594 = sst [smem:[#allocation44_spill]] %s5554_s6 }
   0x8   :  { %5595 = sst [smem:[#allocation45_spill]] %s5555_s7 }
   0x9   :  { %5596 = sst [smem:[#allocation46_spill]] %s5556_s8 }
   0xa   :  { %5597 = sst [smem:[#allocation47_spill]] %s5557_s9 }
   0xb   :  { %14 = vsyncpa [#allocation3], 0 }
   0xc   :  { %16 = vsyncpa [#allocation3 + $0x1], 0 }
   0xd   :  { %17 = vsyncpa [#allocation6], 0 }
   0xe   :  { %19 = vsyncpa [#allocation6 + $0x1], 0 }
   0xf   :  { %20 = vsyncpa [#allocation9], 0 }
  0x10   :  { %21 = vsyncpa [#allocation12], 0 }
  0x11   :  { %22 = vsyncpa [#allocation15], 0 }
  0x12   :  { %23 = vsyncpa [#allocation4], 0 }
  0x13   :  { %25 = vsyncpa [#allocation4 + $0x1], 0  ;;  %s4233_s30 = smov 0   ;;  %s4235_s10 = smov 0  }
  0x14   :  { %s4237_s11 = smov 0   ;;  %s4239_s12 = smov 0  }
  0x15   :  { %s4241_s13 = smov 0   ;;  %s4243_s14 = smov 0  }
  0x16   :  { %s4245_s15 = smov 0   ;;  %s4247_s16 = smov 0  }
  0x17   :  { %s4249_s17 = smov 0   ;;  %s4251_s18 = smov 0  }
  0x18   :  { %s4253_s19 = smov 0   ;;  %s4255_s20 = smov 0  }
  0x19   :  { %s4257_s21 = smov 0   ;;  %s4259_s22 = smov 0  }
  0x1a LB: > { %5598 = sst [smem:[#allocation25_spill]] %s4113_s30  ;;  %s4304_s23 = sadd.s32 4294967295, %s4165_s22   ;;  %s4165_s22 = sphi %s4259_s22, %s31_s22   ;;  %s4161_s21 = sphi %s4257_s21, %s5728_s21   ;;  %s4157_s20 = sphi %s4255_s20, %s5727_s20   ;;  %s4153_s19 = sphi %s4253_s19, %s5726_s19   ;;  %s4149_s18 = sphi %s4251_s18, %s5725_s18   ;;  %s4145_s17 = sphi %s4249_s17, %s5724_s17   ;;  %s4141_s16 = sphi %s4247_s16, %s5723_s16   ;;  %s4137_s15 = sphi %s4245_s15, %s5716_s15   ;;  %s4133_s14 = sphi %s4243_s14, %s5722_s14   ;;  %s4129_s13 = sphi %s4241_s13, %s5721_s13   ;;  %s4125_s12 = sphi %s4239_s12, %s5715_s12   ;;  %s4121_s11 = sphi %s4237_s11, %s5720_s11   ;;  %s4117_s10 = sphi %s4235_s10, %s5714_s10   ;;  %s4113_s30 = sphi %s4233_s30, %s5713_s30  }
  0x1b   : > { %5599 = sst [smem:[#allocation26_spill]] %s4117_s10  ;;  %p2687_p0 = scmp.ge.s32.totalorder %s4165_s22, 1 }
  0x1c   : > { %5600 = sst [smem:[#allocation27_spill]] %s4121_s11  ;;  %p5566_p1 = scmp.eq.s32.totalorder %s4304_s23, 0 }
  0x1d   : > { %5601 = sst [smem:[#allocation28_spill]] %s4129_s13  ;;  %p302_p2 = scmp.lt.s32.totalorder %s4165_s22, 5 }
  0x1e   : > { %5602 = sst [smem:[#allocation29_spill]] %s4137_s15  ;;  %s4167_s25 = smov [#allocation8]  }
  0x1f   : > { %5603 = sst [smem:[#allocation30_spill]] %s4141_s16  ;;  %p4309_p3 = pnand %p2687_p0, %p302_p2 }
  0x20   : > { %5604 = sst [smem:[#allocation31_spill]] %s4149_s18  ;;  %s314_s26 = sshll.u32 %s4167_s25, 4  ;;  %s4313_s26 = int_to_ptr.vmem [resolvable:$true] %s314_s26 }
  0x21   : > { %5605 = sst [smem:[#allocation32_spill]] %s4153_s19  ;;  %p3466_p4 = pneg %p4309_p3 }
  0x22   : > { %s5606_s24 = scalar_select %p4309_p3, 1, 0 }
  0x23   : > { %p4319_p5 = pnand %p3466_p4, %p5566_p1  ;;  %s4168_s28 = smov [#allocation11]  }
  0x24   : > { %5607 = sst [smem:[#allocation33_spill]] %s5606_s24  ;;  %s340_s29 = sshll.u32 %s4168_s28, 4  ;;  %s4323_s29 = int_to_ptr.vmem [resolvable:$true] %s340_s29 }
  0x25   : > { %s5608_s27 = scalar_select %p4319_p5, 1, 0 }
  0x26   : > { %s4169_s9 = smov [#allocation14]   ;;  %s5609_s3 = sld [smem:[#allocation41_spill]] }
  0x27   : > { %s4325_s19 = sshll.u32 %s4169_s9, 4  ;;  %p4335_p7 = pneg %p4319_p5  ;;  %s366_s19 = int_to_ptr.vmem [resolvable:$true] %s4325_s19 }
  0x2c   : > { %s3741_s25 = scalar_lea.hbm %s5609_s3, 1024 }
  0x2d   : > { %p3742_p6 = scmp.ne.s32.totalorder %s5609_s3, %s3741_s25  ;;  %p3748_p10 = scmp.lt.u32.totalorder %s3741_s25, %s5609_s3 }
  0x2f   : > { %p3744_p8 = pnand %p4335_p7, %p3742_p6 }
  0x31   : > { %p3745_p9 = pneg %p3744_p8 }
  0x33   : > { %p3750_p11 = pnand %p3748_p10, %p3745_p9 }
  0x35   : > { %3753 = shalt.err (!%p3750_p11)
}
  0x36   : > { %s3754_s2 = scalar_lea.vmem %s4313_s26, 1024  ;;  %p3762_p2 = scmp.lt.s32.totalorder %s4313_s26, %s4313_s26 }
  0x37   : > { %p3755_p12 = scmp.ne.s32.totalorder %s4313_s26, %s3754_s2  ;;  %p3763_p4 = scmp.lt.s32.totalorder %s3754_s2, %s3754_s2 }
  0x39   : > { %p3757_p13 = pnand %p3755_p12, %p4335_p7  ;;  %p3764_p6 = por %p3763_p4, %p3762_p2 }
  0x3b   : > { %p3758_p0 = pneg %p3757_p13 }
  0x3d   : > { %p3765_p8 = pnand %p3764_p6, %p3758_p0 }
  0x3f   : > { %3768 = shalt.err (!%p3765_p8)
}
  0x40   : > { %s5568_s30 = smov 64   ;;  %s5569_s18 = smov 4  }
  0x41   : > { %3469 = dma.hbm_to_vmem [thread:$0]  (!%p4319_p5), %s5609_s3, 1024, %s4313_s26, [#allocation9], %s5568_s30, %s5568_s30, %s5569_s18  }
  0x42   : > { %s5611_s5 = sld [smem:[#allocation43_spill]] }
  0x48   : > { %s3769_s2 = scalar_lea.hbm %s5611_s5, 1024 }
  0x49   : > { %p3770_p9 = scmp.ne.s32.totalorder %s5611_s5, %s3769_s2  ;;  %p3776_p12 = scmp.lt.u32.totalorder %s3769_s2, %s5611_s5 }
  0x4b   : > { %p3772_p10 = pnand %p3770_p9, %p4335_p7 }
  0x4d   : > { %p3773_p11 = pneg %p3772_p10 }
  0x4f   : > { %p3778_p13 = pnand %p3776_p12, %p3773_p11 }
  0x51   : > { %3781 = shalt.err (!%p3778_p13)
}
  0x52   : > { %s3782_s26 = scalar_lea.vmem %s4323_s29, 1024  ;;  %p3790_p6 = scmp.lt.s32.totalorder %s4323_s29, %s4323_s29 }
  0x53   : > { %p3783_p0 = scmp.ne.s32.totalorder %s4323_s29, %s3782_s26  ;;  %p3791_p8 = scmp.lt.s32.totalorder %s3782_s26, %s3782_s26 }
  0x55   : > { %p3785_p2 = pnand %p3783_p0, %p4335_p7  ;;  %p3792_p9 = por %p3791_p8, %p3790_p6 }
  0x57   : > { %p3786_p4 = pneg %p3785_p2 }
  0x59   : > { %p3793_p10 = pnand %p3792_p9, %p3786_p4 }
  0x5b   : > { %3796 = shalt.err (!%p3793_p10)
}
  0x5c   : > { %3475 = dma.hbm_to_vmem [thread:$0]  (!%p4319_p5), %s5611_s5, 1024, %s4323_s29, [#allocation12], %s5568_s30, %s5568_s30, %s5569_s18  }
  0x5d   : > { %s5612_s7 = sld [smem:[#allocation45_spill]] }
  0x63   : > { %s3797_s24 = scalar_lea.hbm %s5612_s7, 16 }
  0x64   : > { %p3798_p11 = scmp.ne.s32.totalorder %s5612_s7, %s3797_s24  ;;  %p3804_p0 = scmp.lt.u32.totalorder %s3797_s24, %s5612_s7 }
  0x66   : > { %p3800_p12 = pnand %p3798_p11, %p4335_p7 }
  0x68   : > { %p3801_p13 = pneg %p3800_p12 }
  0x6a   : > { %p3806_p2 = pnand %p3804_p0, %p3801_p13 }
  0x6c   : > { %3809 = shalt.err (!%p3806_p2)
}
  0x6d   : > { %s3810_s26 = scalar_lea.vmem %s366_s19, 16  ;;  %s3817_s29 = scalar_lea.vmem %s366_s19, 32 }
  0x6e   : > { %p3811_p4 = scmp.ne.s32.totalorder %s366_s19, %s3810_s26  ;;  %p3818_p9 = scmp.lt.s32.totalorder %s366_s19, %s366_s19 }
  0x6f   : > { %p3819_p10 = scmp.lt.s32.totalorder %s3817_s29, %s3810_s26 }
  0x70   : > { %p3813_p6 = pnand %p3811_p4, %p4335_p7 }
  0x71   : > { %p3820_p1 = por %p3819_p10, %p3818_p9 }
  0x72   : > { %p3814_p8 = pneg %p3813_p6 }
  0x74   : > { %p3821_p3 = pnand %p3820_p1, %p3814_p8 }
  0x76   : > { %3824 = shalt.err (!%p3821_p3)
}
  0x77   : > { %3481 = dma.hbm_to_vmem [thread:$0]  (!%p4319_p5), %s5612_s7, 16, %s366_s19, [#allocation15]  }
  0x78   : > { %s40_s15 = sadd.s32 1, %s4157_s20  ;;  %s43_s16 = sadd.s32 1, %s4161_s21 }
  0x79   : > { %p41_p11 = scmp.ge.s32.totalorder %s40_s15, 2  ;;  %p5577_p12 = scmp.eq.s32.totalorder %s4165_s22, 0 }
  0x7a   : > { %s2681_s24 = sshll.u32 %s4157_s20, 3  ;;  %s88_s9 = sadd.s32 1, %s4133_s14 }
  0x7b   : > { %s5730_s15 = smov (%p41_p11, %s40_s15), 0  ;;  %s5732_s16 = smov (!%p41_p11, %s43_s16), %s4161_s21 }
  0x7c   : > { %5613 = sst [smem:[#allocation34_spill]] %s5730_s15  ;;  %s48_s25 = ssub.s32 %s4157_s20, %s5730_s15 }
  0x7d   : > { %s2682_s28 = sadd.s32 4294967295, %s2681_s24  ;;  %p45_p1 = scmp.ge.s32.totalorder %s5732_s16, 2 }
  0x7e   : > { %p77_p3 = scmp.gt.s32.totalorder %s2682_s28, 0  ;;  %s2683_s19 = sshll.u32 %s5730_s15, 3 }
  0x7f   : > { %s5734_s16 = smov (%p45_p1, %s5732_s16), 0  ;;  %s2684_s26 = sadd.s32 4294967295, %s2683_s19 }
  0x80   : > { %5614 = sst [smem:[#allocation35_spill]] %s5734_s16  ;;  %s5736_s28 = smov (!%p77_p3, %s2682_s28), 0 }
  0x81   : > { %s4419_s2 = ssub.s32 %s4161_s21, %s5734_s16  ;;  %p81_p13 = scmp.gt.s32.totalorder %s2684_s26, 0 }
  0x82   : > { %5615 = sst [smem:[#allocation36_spill]] %s4419_s2  ;;  %s4422_s29 = sor.u32 %s48_s25, %s4419_s2 }
  0x83   : > { %p95_p2 = scmp.ne.s32.totalorder %s4133_s14, %s4129_s13  ;;  %s5738_s26 = smov (!%p81_p13, %s2684_s26), 0 }
  0x84   : > { %p101_p6 = scmp.ne.s32.totalorder %s4129_s13, %s4125_s12  ;;  %s84_s11 = ssub.s32 %s5736_s28, %s5738_s26 }
  0x85   : > { %p4429_p4 = por %p95_p2, %p5577_p12  ;;  %s4435_s30 = sadd.s32 8, %s2681_s24 }
  0x86   : > { %s85_s25 = sor.u32 %s84_s11, %s4419_s2  ;;  %p5617_p8 = scmp.eq.s32.totalorder %s4304_s23, 0 }
  0x87   : > { %p86_p10 = scmp.eq.s32.totalorder %s85_s25, 0  ;;  %s4445_s3 = sadd.s32 8, %s2683_s19 }
  0x88   : > { %p4440_p9 = por %p101_p6, %p5617_p8  ;;  %p5576_p1 = scmp.lt.s32.totalorder %s4165_s22, 4 }
  0x89   : > { %s4449_s5 = scalar_select %p86_p10, %s4133_s14, %s88_s9  }
  0x8a   : > { %s5618_s18 = scalar_select %p4440_p9, 1, 0 }
  0x8b   : > { %s4453_s12 = sshll.u32 %s4161_s21, 5  ;;  %s411_s24 = sand.u32 1, %s4165_s22  }
  0x8c   : > { %5619 = sst [smem:[#allocation37_spill]] %s5618_s18  ;;  %s413_s26 = sand.u32 1, %s4133_s14  }
  0x8d   : > { %s2700_s11 = sshll.u32 %s413_s26, 4  ;;  %s2703_s7 = sshll.u32 %s5736_s28, 1 }
  0x8e   : > { %s425_s16 = sadd.s32 %s2703_s7, %s4453_s12  ;;  %s415_s15 = scalar_lea.vmem [#allocation5], %s2700_s11 }
  0x8f   : > { %s428_s25 = sshll.u32 %s415_s15, 4  ;;  %s2705_s18 = sshll.u32 %s425_s16, 7  ;;  %s4458_s25 = int_to_ptr.vmem [resolvable:$true] %s428_s25 }
  0x90   : > { %s5620_s1 = sld [smem:[#allocation39_spill]]  ;;  %p4469_p13 = pnand %p5576_p1, %p4429_p4 }
  0x91   : > { %s4172_s7 = smov [#allocation10]   ;;  %s4475_s16 = scalar_lea.sflag [#allocation6], %s411_s24 }
  0x92   : > { %s4473_s15 = sshll.u32 %s4172_s7, 4  ;;  %p3827_p6 = pneg %p4469_p13  ;;  %s328_s15 = int_to_ptr.vmem [resolvable:$true] %s4473_s15 }
  0x96   : > { %s4463_s2 = scalar_lea.hbm %s5620_s1, %s2705_s18  ;;  %s3830_s0 = scalar_lea.hbm %s5620_s1, 8192 }
  0x97   : > { %s3825_s13 = scalar_lea.hbm %s4463_s2, 256  ;;  %p3831_p4 = scmp.lt.u32.totalorder %s4463_s2, %s5620_s1 }
  0x98   : > { %p3826_p2 = scmp.ne.s32.totalorder %s4463_s2, %s3825_s13  ;;  %p3832_p3 = scmp.lt.u32.totalorder %s3830_s0, %s3825_s13 }
  0x99   : > { %p3834_p1 = scmp.lt.u32.totalorder %s3825_s13, %s4463_s2 }
  0x9a   : > { %p3828_p8 = pnand %p3827_p6, %p3826_p2  ;;  %p3833_p11 = por %p3832_p3, %p3831_p4 }
  0x9c   : > { %p3829_p10 = pneg %p3828_p8  ;;  %p3835_p12 = por %p3834_p1, %p3833_p11 }
  0x9e   : > { %p3836_p0 = pnand %p3835_p12, %p3829_p10 }
  0xa0   : > { %3839 = shalt.err (!%p3836_p0)
}
  0xa1   : > { %s3840_s24 = scalar_lea.vmem %s4458_s25, 256  ;;  %s4173_s19 = smov [#allocation5]  }
  0xa2   : > { %p3841_p2 = scmp.ne.s32.totalorder %s4458_s25, %s3840_s24  ;;  %s3845_s7 = sshll.u32 %s4173_s19, 4  ;;  %s3846_s7 = int_to_ptr.vmem [resolvable:$false] %s3845_s7 }
  0xa3   : > { %s3847_s18 = scalar_lea.vmem %s3846_s7, 512  ;;  %p3848_p5 = scmp.lt.s32.totalorder %s4458_s25, %s3846_s7 }
  0xa4   : > { %p3843_p8 = pnand %p3841_p2, %p3827_p6  ;;  %p3849_p3 = scmp.lt.s32.totalorder %s3847_s18, %s3840_s24 }
  0xa6   : > { %p3844_p9 = pneg %p3843_p8  ;;  %p3850_p4 = por %p3849_p3, %p3848_p5 }
  0xa8   : > { %p3851_p11 = pnand %p3850_p4, %p3844_p9 }
  0xaa   : > { %3854 = shalt.err (!%p3851_p11)
}
  0xab   : > { %s5581_s13 = smov 128   ;;  %s5583_s28 = smov 8  }
  0xac   : > { %3491 = dma.hbm_to_vmem [thread:$0]  (!%p4469_p13), %s4463_s2, 256, %s4458_s25, %s4475_s16, %s5581_s13, %s5581_s13, %s5583_s28  }
  0xad   : > { %s4176_s0 = smov [#allocation13]   ;;  %s5622_s4 = sld [smem:[#allocation42_spill]] }
  0xae   : > { %s354_s26 = sshll.u32 %s4176_s0, 4  ;;  %s355_s26 = int_to_ptr.vmem [resolvable:$true] %s354_s26 }
  0xb3   : > { %s3855_s19 = scalar_lea.hbm %s5622_s4, 9216 }
  0xb4   : > { %p3856_p5 = scmp.ne.s32.totalorder %s5622_s4, %s3855_s19  ;;  %p3862_p9 = scmp.lt.u32.totalorder %s3855_s19, %s5622_s4 }
  0xb6   : > { %p3858_p12 = pnand %p3856_p5, %p4335_p7 }
  0xb8   : > { %p3859_p0 = pneg %p3858_p12 }
  0xba   : > { %p3864_p1 = pnand %p3862_p9, %p3859_p0 }
  0xbc   : > { %3867 = shalt.err (!%p3864_p1)
}
  0xbd   : > { %s3868_s2 = scalar_lea.vmem %s328_s15, 9216  ;;  %p3876_p2 = scmp.lt.s32.totalorder %s328_s15, %s328_s15 }
  0xbe   : > { %p3869_p13 = scmp.ne.s32.totalorder %s328_s15, %s3868_s2  ;;  %p3877_p8 = scmp.lt.s32.totalorder %s3868_s2, %s3868_s2 }
  0xc0   : > { %p3871_p6 = pnand %p3869_p13, %p4335_p7  ;;  %p3878_p3 = por %p3877_p8, %p3876_p2 }
  0xc2   : > { %p3872_p10 = pneg %p3871_p6 }
  0xc4   : > { %p3879_p4 = pnand %p3878_p3, %p3872_p10 }
  0xc6   : > { %3882 = shalt.err (!%p3879_p4)
}
  0xc7   : > { %p5623_p11 = scmp.ne.s32.totalorder %s5608_s27, 0  ;;  %s5624_s25 = smov 4  }
  0xc8   : > { %s5625_s0 = smov 64   ;;  %s5626_s6 = sld [smem:[#allocation44_spill]] }
  0xc9   : > { %3472 = dma.hbm_to_vmem [thread:$0]  (!%p5623_p11), %s5622_s4, 9216, %s328_s15, [#allocation9], %s5625_s0, %s5625_s0, %s5624_s25  }
  0xce   : > { %s3883_s7 = scalar_lea.hbm %s5626_s6, 16 }
  0xcf   : > { %p3884_p5 = scmp.ne.s32.totalorder %s5626_s6, %s3883_s7  ;;  %p3890_p9 = scmp.lt.u32.totalorder %s3883_s7, %s5626_s6 }
  0xd1   : > { %p3886_p12 = pnand %p3884_p5, %p4335_p7 }
  0xd3   : > { %p3887_p0 = pneg %p3886_p12 }
  0xd5   : > { %p3892_p1 = pnand %p3890_p9, %p3887_p0 }
  0xd7   : > { %3895 = shalt.err (!%p3892_p1)
}
  0xd8   : > { %s3896_s1 = scalar_lea.vmem %s355_s26, 16  ;;  %s3903_s15 = scalar_lea.vmem %s355_s26, 32 }
  0xd9   : > { %p3897_p13 = scmp.ne.s32.totalorder %s355_s26, %s3896_s1  ;;  %p3904_p2 = scmp.lt.s32.totalorder %s355_s26, %s355_s26 }
  0xda   : > { %p3905_p8 = scmp.lt.s32.totalorder %s3903_s15, %s3896_s1 }
  0xdb   : > { %p3899_p6 = pnand %p3897_p13, %p4335_p7 }
  0xdc   : > { %p3906_p3 = por %p3905_p8, %p3904_p2 }
  0xdd   : > { %p3900_p10 = pneg %p3899_p6 }
  0xdf   : > { %p3907_p4 = pnand %p3906_p3, %p3900_p10 }
  0xe1   : > { %3910 = shalt.err (!%p3907_p4)
}
  0xe2   : > { %3478 = dma.hbm_to_vmem [thread:$0]  (!%p5623_p11), %s5626_s6, 16, %s355_s26, [#allocation12]  }
  0xe3   : > { %s4177_s13 = smov [#allocation16]   ;;  %s5627_s8 = sld [smem:[#allocation46_spill]] }
  0xe4   : > { %s376_s11 = sshll.u32 %s4177_s13, 4  ;;  %s377_s11 = int_to_ptr.vmem [resolvable:$true] %s376_s11 }
  0xe9   : > { %s3911_s7 = scalar_lea.hbm %s5627_s8, 16 }
  0xea   : > { %p3912_p5 = scmp.ne.s32.totalorder %s5627_s8, %s3911_s7  ;;  %p3918_p9 = scmp.lt.u32.totalorder %s3911_s7, %s5627_s8 }
  0xec   : > { %p3914_p12 = pnand %p3912_p5, %p4335_p7 }
  0xee   : > { %p3915_p0 = pneg %p3914_p12 }
  0xf0   : > { %p3920_p1 = pnand %p3918_p9, %p3915_p0 }
  0xf2   : > { %3923 = shalt.err (!%p3920_p1)
}
  0xf3   : > { %s3924_s26 = scalar_lea.vmem %s377_s11, 16  ;;  %s3931_s15 = scalar_lea.vmem %s377_s11, 32 }
  0xf4   : > { %p3925_p13 = scmp.ne.s32.totalorder %s377_s11, %s3924_s26  ;;  %p3932_p2 = scmp.lt.s32.totalorder %s377_s11, %s377_s11 }
  0xf5   : > { %p3933_p8 = scmp.lt.s32.totalorder %s3931_s15, %s3924_s26 }
  0xf6   : > { %p3927_p6 = pnand %p3925_p13, %p4335_p7 }
  0xf7   : > { %p3934_p3 = por %p3933_p8, %p3932_p2 }
  0xf8   : > { %p3928_p10 = pneg %p3927_p6 }
  0xfa   : > { %p3935_p4 = pnand %p3934_p3, %p3928_p10 }
  0xfc   : > { %3938 = shalt.err (!%p3935_p4)
}
  0xfd   : > { %s5628_s13 = sld [smem:[#allocation30_spill]]  ;;  %s5629_s10 = sld [smem:[#allocation29_spill]] }
  0xfe   : > { %3484 = dma.hbm_to_vmem [thread:$0]  (!%p5623_p11), %s5627_s8, 16, %s377_s11, [#allocation15]  }
  0xff   : > { %s2680_s24 = sadd.s32 4294967294, %s4165_s22   ;;  %s52_s27 = sadd.s32 1, %s4145_s17 }
 0x100   : > { %p5630_p7 = scmp.eq.s32.totalorder %s4422_s29, 0  ;;  %p289_p0 = scmp.eq.s32.totalorder %s4304_s23, 3 }
 0x101   : > { %p295_p9 = scmp.eq.s32.totalorder %s2680_s24, 3  ;;  %p5631_p1 = scmp.eq.s32.totalorder %s4165_s22, 0 }
 0x102   : > { %s4569_s19 = scalar_select %p5630_p7, %s4145_s17, %s52_s27  }
 0x103   : > { %p59_p5 = scmp.ne.s32.totalorder %s4145_s17, %s5628_s13  ;;  %p65_p12 = scmp.ne.s32.totalorder %s5628_s13, %s5629_s10 }
 0x104   : > { %p5633_p6 = scmp.eq.s32.totalorder %s4304_s23, 0  ;;  %s387_s9 = sand.u32 1, %s4145_s17  }
 0x105   : > { %p4578_p13 = por %p5631_p1, %p59_p5  ;;  %p4588_p11 = por %p289_p0, %p59_p5 }
 0x106   : > { %p4584_p10 = por %p5633_p6, %p65_p12  ;;  %p4592_p2 = por %p295_p9, %p65_p12 }
 0x107   : > { %s5635_s29 = scalar_select %p4588_p11, 1, 0 }
 0x108   : > { %s5636_s11 = scalar_select %p4592_p2, 1, 0 }
 0x109   : > { %s2896_s2 = sshll.u32 %s4157_s20, 4  ;;  %s2695_s1 = sshll.u32 %s387_s9, 7 }
 0x10a   : > { %s398_s26 = sadd.s32 %s2896_s2, %s4453_s12  ;;  %s391_s25 = scalar_lea.vmem [#allocation2], %s2695_s1 }
 0x10b   : > { %s2699_s15 = sshll.u32 %s398_s26, 7  ;;  %s401_s0 = sshll.u32 %s391_s25, 4  ;;  %s4604_s0 = int_to_ptr.vmem [resolvable:$true] %s401_s0 }
 0x10c   : > { %s5637_s24 = sld [smem:[#allocation38_spill]]  ;;  %p5638_p8 = scmp.lt.s32.totalorder %s4165_s22, 4 }
 0x10d   : > { %s4614_s2 = scalar_lea.sflag [#allocation3], %s387_s9 }
 0x10e   : > { %p4610_p3 = pnand %p5638_p8, %p4578_p13 }
 0x110   : > { %p3941_p7 = pneg %p4610_p3 }
 0x112   : > { %s4602_s27 = scalar_lea.hbm %s5637_s24, %s2699_s15  ;;  %s3944_s7 = scalar_lea.hbm %s5637_s24, 8192 }
 0x113   : > { %s3939_s1 = scalar_lea.hbm %s4602_s27, 2048  ;;  %p3945_p0 = scmp.lt.u32.totalorder %s4602_s27, %s5637_s24 }
 0x114   : > { %p3940_p4 = scmp.ne.s32.totalorder %s4602_s27, %s3939_s1  ;;  %p3946_p9 = scmp.lt.u32.totalorder %s3944_s7, %s3939_s1 }
 0x115   : > { %p3948_p13 = scmp.lt.u32.totalorder %s3939_s1, %s4602_s27 }
 0x116   : > { %p3942_p5 = pnand %p3941_p7, %p3940_p4  ;;  %p3947_p1 = por %p3946_p9, %p3945_p0 }
 0x118   : > { %p3943_p12 = pneg %p3942_p5  ;;  %p3949_p6 = por %p3948_p13, %p3947_p1 }
 0x11a   : > { %p3950_p8 = pnand %p3949_p6, %p3943_p12 }
 0x11c   : > { %3953 = shalt.err (!%p3950_p8)
}
 0x11d   : > { %s3954_s9 = scalar_lea.vmem %s4604_s0, 2048  ;;  %s4178_s10 = smov [#allocation2]  }
 0x11e   : > { %p3955_p4 = scmp.ne.s32.totalorder %s4604_s0, %s3954_s9  ;;  %s3959_s26 = sshll.u32 %s4178_s10, 4  ;;  %s3960_s26 = int_to_ptr.vmem [resolvable:$false] %s3959_s26 }
 0x11f   : > { %s3961_s15 = scalar_lea.vmem %s3960_s26, 4096  ;;  %p3962_p11 = scmp.lt.s32.totalorder %s4604_s0, %s3960_s26 }
 0x120   : > { %p3957_p5 = pnand %p3955_p4, %p3941_p7  ;;  %p3963_p0 = scmp.lt.s32.totalorder %s3961_s15, %s3954_s9 }
 0x122   : > { %p3958_p2 = pneg %p3957_p5  ;;  %p3964_p9 = por %p3963_p0, %p3962_p11 }
 0x124   : > { %p3965_p1 = pnand %p3964_p9, %p3958_p2 }
 0x126   : > { %3968 = shalt.err (!%p3965_p1)
}
 0x127   : > { %s5640_s1 = smov 8   ;;  %s5641_s7 = smov 128  }
 0x128   : > { %s5642_s25 = sld [smem:[#allocation27_spill]]  ;;  %s5643_s13 = sld [smem:[#allocation26_spill]] }
 0x129   : > { %s5644_s10 = sld [smem:[#allocation25_spill]]  ;;  %s5645_s9 = sld [smem:[#allocation36_spill]] }
 0x12a   : > { %3488 = dma.hbm_to_vmem [thread:$0]  (!%p4610_p3), %s4602_s27, 2048, %s4604_s0, %s4614_s2, %s5641_s7, %s5641_s7, %s5640_s1  }
 0x12b   : > { %p5646_p11 = scmp.lt.s32.totalorder %s4435_s30, 15  ;;  %p5647_p2 = scmp.lt.s32.totalorder %s4445_s3, 15 }
 0x12c   : > { %p5648_p13 = scmp.eq.s32.totalorder %s4165_s22, 0  ;;  %p5650_p4 = scmp.eq.s32.totalorder %s4304_s23, 0 }
 0x12d   : > { %s5740_s30 = smov (!%p5646_p11, %s4435_s30), 15  ;;  %s5742_s3 = smov (!%p5647_p2, %s4445_s3), 15 }
 0x12e   : > { %s124_s28 = sadd.s32 1, %s5642_s25  ;;  %p131_p7 = scmp.ne.s32.totalorder %s5642_s25, %s5643_s13 }
 0x12f   : > { %s120_s26 = ssub.s32 %s5740_s30, %s5742_s3  ;;  %p137_p12 = scmp.ne.s32.totalorder %s5643_s13, %s5644_s10 }
 0x130   : > { %s121_s15 = sor.u32 %s120_s26, %s5645_s9  ;;  %p4659_p6 = por %p131_p7, %p5648_p13 }
 0x131   : > { %p122_p8 = scmp.eq.s32.totalorder %s121_s15, 0  ;;  %p4665_p5 = por %p137_p12, %p5650_p4 }
 0x132   : > { %s440_s27 = sand.u32 1, %s5642_s25   ;;  %s2708_s2 = sshll.u32 %s5740_s30, 1 }
 0x133   : > { %s5651_s0 = scalar_select %p4665_p5, 1, 0 }
 0x134   : > { %s5744_s25 = smov (!%p122_p8, %s5642_s25), %s124_s28  ;;  %s2706_s3 = sshll.u32 %s440_s27, 4 }
 0x135   : > { %s452_s6 = sadd.s32 %s2708_s2, %s4453_s12  ;;  %s5652_s26 = sld [smem:[#allocation40_spill]] }
 0x136   : > { %s2710_s13 = sshll.u32 %s452_s6, 7  ;;  %s442_s15 = scalar_lea.vmem [#allocation7], %s2706_s3 }
 0x137   : > { %s455_s24 = sshll.u32 %s442_s15, 4  ;;  %p5653_p3 = scmp.lt.s32.totalorder %s4165_s22, 4  ;;  %s4679_s24 = int_to_ptr.vmem [resolvable:$true] %s455_s24 }
 0x139   : > { %p4685_p0 = pnand %p5653_p3, %p4659_p6 }
 0x13b   : > { %s4677_s8 = scalar_lea.hbm %s5652_s26, %s2710_s13  ;;  %p3971_p1 = pneg %p4685_p0 }
 0x13c   : > { %s3969_s6 = scalar_lea.hbm %s4677_s8, 256  ;;  %s3974_s27 = scalar_lea.hbm %s5652_s26, 8192 }
 0x13d   : > { %p3970_p9 = scmp.ne.s32.totalorder %s4677_s8, %s3969_s6  ;;  %p3975_p7 = scmp.lt.u32.totalorder %s4677_s8, %s5652_s26 }
 0x13e   : > { %p3976_p12 = scmp.lt.u32.totalorder %s3974_s27, %s3969_s6  ;;  %p3978_p6 = scmp.lt.u32.totalorder %s3969_s6, %s4677_s8 }
 0x13f   : > { %p3972_p11 = pnand %p3971_p1, %p3970_p9 }
 0x140   : > { %p3977_p13 = por %p3976_p12, %p3975_p7 }
 0x141   : > { %p3973_p2 = pneg %p3972_p11 }
 0x142   : > { %p3979_p8 = por %p3978_p6, %p3977_p13 }
 0x144   : > { %p3980_p4 = pnand %p3979_p8, %p3973_p2 }
 0x146   : > { %3983 = shalt.err (!%p3980_p4)
}
 0x147   : > { %s3984_s3 = scalar_lea.vmem %s4679_s24, 256  ;;  %s4179_s13 = smov [#allocation7]  }
 0x148   : > { %p3985_p3 = scmp.ne.s32.totalorder %s4679_s24, %s3984_s3  ;;  %s3989_s10 = sshll.u32 %s4179_s13, 4  ;;  %s3990_s10 = int_to_ptr.vmem [resolvable:$false] %s3989_s10 }
 0x149   : > { %s3991_s9 = scalar_lea.vmem %s3990_s10, 512  ;;  %p3992_p5 = scmp.lt.s32.totalorder %s4679_s24, %s3990_s10 }
 0x14a   : > { %p3987_p9 = pnand %p3985_p3, %p3971_p1  ;;  %p3993_p7 = scmp.lt.s32.totalorder %s3991_s9, %s3984_s3 }
 0x14c   : > { %p3988_p11 = pneg %p3987_p9  ;;  %p3994_p12 = por %p3993_p7, %p3992_p5 }
 0x14e   : > { %p3995_p13 = pnand %p3994_p12, %p3988_p11 }
 0x150   : > { %3998 = shalt.err (!%p3995_p13)
}
 0x151   : > { %3494 = dma.hbm_to_vmem [thread:$0]  (!%p4685_p0), %s4677_s8, 256, %s4679_s24, %s4475_s16, %s5641_s7, %s5641_s7, %s5640_s1  }
 0x152   : > { %s5655_s15 = sld [smem:[#allocation33_spill]] }
 0x158   : > { %p5656_p1 = scmp.ne.s32.totalorder %s5655_s15, 0 }
 0x159   : > { %s5657_s6 = sld [smem:[#allocation30_spill]] (!%p5656_p1) }
 0x15a   : > { %467 = sbr.rel (%p5656_p1) target bundleno = 1266 (0x4f2), region = 56 }
 0x15f   : > { %s4721_s12 = sand.u32 (!%p5656_p1), 1, %s5657_s6  }
 0x160   : > { %s2712_s28 = sshll.u32 (!%p5656_p1), %s4721_s12, 7  ;;  %s470_s27 = scalar_lea.sflag (!%p5656_p1), [#allocation3], %s4721_s12 }
 0x161   : > { %s4727_s30 = scalar_lea.vmem [#allocation2], %s2712_s28 }
 0x162   : > { %4084 = dma.done.wait (%p4584_p10), %s470_s27, 2048  }
 0x163   : > { %4086 = vsyncadd (%p4584_p10), %s470_s27, 4294965248  ;;  %s5658_s8 = sld [smem:[#allocation28_spill]]  ;;  %s5659_s16 = sld [smem:[#allocation37_spill]] }
 0x164   : > { %s478_s24 = sand.u32 1, %s4304_s23  }
 0x165   : > { %s479_s4 = scalar_lea.sflag [#allocation6], %s478_s24 }
 0x169   : > { %s480_s1 = sand.u32 1, %s5658_s8   ;;  %p5660_p5 = scmp.ne.s32.totalorder %s5659_s16, 0 }
 0x16a   : > { %s4735_s7 = sshll.u32 %s480_s1, 4 }
 0x16b   : > { %s482_s2 = scalar_lea.vmem [#allocation5], %s4735_s7 }
 0x16c   : > { %4088 = dma.done.wait (%p5660_p5), %s479_s4, 256  }
 0x16d   : > { %4090 = vsyncadd (%p5660_p5), %s479_s4, 4294967040  ;;  %s5661_s3 = sld [smem:[#allocation26_spill]]  ;;  %p5662_p10 = scmp.ne.s32.totalorder %s5651_s0, 0 }
 0x173   : > { %s489_s13 = sand.u32 1, %s5661_s3  }
 0x174   : > { %s4743_s18 = sshll.u32 %s489_s13, 4 }
 0x175   : > { %s491_s10 = scalar_lea.vmem [#allocation7], %s4743_s18 }
 0x176   : > { %4092 = dma.done.wait (%p5662_p10), %s479_s4, 256  }
 0x177   : > { %4094 = vsyncadd (%p5662_p10), %s479_s4, 4294967040  ;;  %p5663_p0 = scmp.eq.s32.totalorder %s4304_s23, 0 }
 0x179   : > { %4096 = dma.done.wait (%p5663_p0), [#allocation9], 10240   ;;  %p5664_p2 = pmov %p5663_p0 }
 0x17a   : > { %p5665_p6 = pmov %p5663_p0 }
 0x17b   : > { %4098 = vsyncadd (%p5664_p2), [#allocation9], 4294957056 }
 0x17c   : > { %4100 = dma.done.wait (%p5665_p6), [#allocation12], 1040   ;;  %p5666_p8 = pmov %p5663_p0 }
 0x17d   : > { %p5667_p4 = pmov %p5663_p0 }
 0x17e   : > { %4102 = vsyncadd (%p5666_p8), [#allocation12], 4294966256 }
 0x17f   : > { %4104 = dma.done.wait (%p5667_p4), [#allocation15], 32   ;;  %p5668_p3 = pmov %p5663_p0 }
 0x180   : > { %v3637_v0 = vld [vmem:[#allocation8] sm:$0xff]   ;;  %v3638_v1 = vld [vmem:[#allocation8 + $0x8] sm:$0xff]   ;;  %v3639_v2 = vld [vmem:[#allocation8 + $0x10] sm:$0xff]   ;;  %s5669_s23 = sld [smem:[#allocation31_spill]]  ;;  %vm971_vm14 = vcmask 1040384   ;;  %s5420_s15 = scalar_lea.vmem [#allocation17], %s2712_s28 }
 0x181   : > { %4106 = vsyncadd (%p5668_p3), [#allocation15], 4294967264  ;;  %3174 = vmatprep.subr.bf16.mxu0 %v3637_v0  ;;  %3338 = vmatprep.subr.bf16.mxu1 %v3637_v0  ;;  %v3640_v3 = vld [vmem:[#allocation8 + $0x18] sm:$0xff]   ;;  %v571_v4 = vld [vmem:[%s482_s2] sm:$0xff]  ;;  %s5707_s6 = sld [smem:[#allocation32_spill]]  ;;  %s2483_s16 = sshll.u32 %s5420_s15, 4  ;;  %s5462_s16 = int_to_ptr.vmem [resolvable:$true] %s2483_s16 }
 0x182   : > { %3175 = vmatpush3.bf16.msra.mxu0 %v3637_v0  ;;  %3346 = vmatpush3.bf16.msra.mxu1 %v3637_v0  ;;  %v572_v5 = vld [vmem:[%s482_s2 + $0x8] sm:$0xff]  ;;  %v3641_v7 = vld [vmem:[#allocation8 + $0x20] sm:$0xff]   ;;  %v588_v8 = vld [vmem:[%s4727_s30 + $0x70] sm:$0xff]  ;;  %s5708_s4 = sld [smem:[#allocation47_spill]]  ;;  %s2467_s3 = scalar_lea.sflag [#allocation4], %s4721_s12 }
 0x183   : > { %3176 = vmatprep.subr.bf16.mxu0 %v3638_v1  ;;  %3339 = vmatprep.subr.bf16.mxu1 %v3638_v1  ;;  %v573_v6 = vpack.c.bf16 %v572_v5, %v571_v4  ;;  %v589_v9 = vld [vmem:[%s4727_s30 + $0x78] sm:$0xff]  ;;  %v3642_v11 = vld [vmem:[#allocation8 + $0x28] sm:$0xff]   ;;  %v3643_v12 = vld [vmem:[#allocation8 + $0x30] sm:$0xff]   ;;  %s3999_s13 = scalar_lea.vmem %s5462_s16, 2048  ;;  %p5709_p12 = scmp.ne.s32.totalorder %s5635_s29, 0 }
 0x184   : > { %v597_v10 = vpack.c.bf16 %v589_v9, %v588_v8  ;;  %v3644_v13 = vld [vmem:[#allocation8 + $0x38] sm:$0xff]   ;;  %v574_v14 = vld [vmem:[%s4727_s30] sm:$0xff]  ;;  %v575_v15 = vld [vmem:[%s4727_s30 + $0x8] sm:$0xff]  ;;  %p4000_p7 = scmp.ne.s32.totalorder %s5462_s16, %s3999_s13 }
 0x185   : > { %3190 = vmatprep.mubr.bf16.mxu0 %v573_v6  ;;  %v576_v16 = vld [vmem:[%s4727_s30 + $0x10] sm:$0xff]  ;;  %v577_v17 = vld [vmem:[%s4727_s30 + $0x18] sm:$0xff]  ;;  %v3650_v20 = vld [vmem:[#allocation10 + $0x140] sm:$0xff]   ;;  %v590_v22 = vpack.c.bf16 %v575_v15, %v574_v14 }
 0x186   : > { %3177 = vmatpush3.bf16.msra.mxu0 %v3638_v1  ;;  %3347 = vmatpush3.bf16.msra.mxu1 %v3638_v1  ;;  %v598_v18 = vld [vmem:[%s491_s10] sm:$0xff]  ;;  %v599_v19 = vld [vmem:[%s491_s10 + $0x8] sm:$0xff]  ;;  %v591_v24 = vpack.c.bf16 %v577_v17, %v576_v16  ;;  %p805_p9 = scmp.le.s32.totalorder %s5669_s23, 0  ;;  %p807_p11 = scmp.lt.s32.totalorder %s5669_s23, 1 }
 0x187   : > { %3178 = vmatprep.subr.bf16.mxu0 %v3639_v2  ;;  %3340 = vmatprep.subr.bf16.mxu1 %v3639_v2  ;;  %v3645_v21 = vld [vmem:[#allocation10 + $0x100] sm:$0xff]   ;;  %v600_v25 = vpack.c.bf16 %v599_v19, %v598_v18  ;;  %v3647_v26 = vld [vmem:[#allocation10 + $0x108] sm:$0xff]   ;;  %v580_v30 = vld [vmem:[%s4727_s30 + $0x30] sm:$0xff]  ;;  %s2899_s28 = sshll.u32 %s5669_s23, 4  ;;  %s2888_s27 = sshll.u32 %s5707_s6, 5 }
 0x188   : > { %3206 = vmatprep.mubr.bf16.mxu1 %v597_v10  ;;  %v3646_v23 = vld [vmem:[#allocation10 + $0xc0] sm:$0xff]   ;;  %v3653_v27 = vld [vmem:[#allocation10 + $0x148] sm:$0xff]   ;;  %v581_v31 = vld [vmem:[%s4727_s30 + $0x38] sm:$0xff]  ;;  %s806_s0 = scalar_select %p805_p9, 1, 0 }
 0x189   : > { %v578_v28 = vld [vmem:[%s4727_s30 + $0x20] sm:$0xff]  ;;  %v579_v29 = vld [vmem:[%s4727_s30 + $0x28] sm:$0xff]  ;;  %v3649_v33 = vld [vmem:[#allocation10 + $0x110] sm:$0xff]   ;;  %v593_v36 = vpack.c.bf16 %v581_v31, %v580_v30  ;;  %s808_s9 = scalar_select %p807_p11, 10, 9 }
 0x18a   : > { %3179 = vmatpush3.bf16.msra.mxu0 %v3639_v2  ;;  %3348 = vmatpush3.bf16.msra.mxu1 %v3639_v2  ;;  %v3648_v32 = vld [vmem:[#allocation10 + $0xc8] sm:$0xff]   ;;  %v592_v34 = vpack.c.bf16 %v579_v29, %v578_v28  ;;  %v3651_v35 = vld [vmem:[#allocation10 + $0xd0] sm:$0xff]   ;;  %v3652_v37 = vld [vmem:[#allocation10 + $0x118] sm:$0xff]   ;;  %v4787_v63 = vstv %s806_s0  ;;  %s2480_s8 = sadd.s32 %s2899_s28, %s2888_s27  ;;  %p4001_p13 = pnand %p4000_p7, %p5709_p12 }
 0x18b   : > { %3180 = vmatprep.subr.bf16.mxu0 %v3640_v3  ;;  %3341 = vmatprep.subr.bf16.mxu1 %v3640_v3  ;;  %v582_v38 = vld [vmem:[%s4727_s30 + $0x40] sm:$0xff]  ;;  %v583_v39 = vld [vmem:[%s4727_s30 + $0x48] sm:$0xff]  ;;  %v584_v40 = vld [vmem:[%s4727_s30 + $0x50] sm:$0xff]  ;;  %v4789_v0 = vstv %s808_s9  ;;  %vm819_vm0 = vcmp.le.s32.totalorder %v4787_v63, 9  ;;  %vm811_vm3 = vcmp.le.s32.totalorder %v4787_v63, 1  ;;  %vm810_vm5 = vcmp.le.s32.totalorder %v4787_v63, 0 }
 0x18c   : > { %v585_v41 = vld [vmem:[%s4727_s30 + $0x58] sm:$0xff]  ;;  %v594_v43 = vpack.c.bf16 %v583_v39, %v582_v38  ;;  %v586_v45 = vld [vmem:[%s4727_s30 + $0x60] sm:$0xff]  ;;  %v587_v46 = vld [vmem:[%s4727_s30 + $0x68] sm:$0xff]  ;;  %vm830_vm1 = vcmp.gt.s32.totalorder %v4789_v0, 9  ;;  %vm822_vm4 = vcmp.gt.s32.totalorder %v4789_v0, 1  ;;  %vm821_vm6 = vcmp.gt.s32.totalorder %v4789_v0, 0  ;;  %p4002_p1 = pneg %p4001_p13 }
 0x18d   : > { %v3654_v42 = vld [vmem:[#allocation10 + $0xd8] sm:$0xff]   ;;  %v595_v44 = vpack.c.bf16 %v585_v41, %v584_v40  ;;  %v596_v47 = vpack.c.bf16 %v587_v46, %v586_v45  ;;  %v3655_v48 = vld [vmem:[#allocation10 + $0x120] sm:$0xff]   ;;  %v3656_v49 = vld [vmem:[#allocation10 + $0x150] sm:$0xff]   ;;  %vm813_vm7 = vcmp.le.s32.totalorder %v4787_v63, 3  ;;  %vm824_vm8 = vcmp.gt.s32.totalorder %v4789_v0, 3  ;;  %s2889_s24 = sshll.u32 %s2480_s8, 7 }
 0x18e   : > { %3181 = vmatpush3.bf16.msra.mxu0 %v3640_v3  ;;  %3349 = vmatpush3.bf16.msra.mxu1 %v3640_v3  ;;  %v3657_v50 = vld [vmem:[#allocation10 + $0xe0] sm:$0xff]   ;;  %v3658_v51 = vld [vmem:[#allocation10 + $0x128] sm:$0xff]   ;;  %v3659_v52 = vld [vmem:[#allocation10 + $0x158] sm:$0xff]   ;;  %vm812_vm9 = vcmp.le.s32.totalorder %v4787_v63, 2  ;;  %vm818_vm10 = vcmp.le.s32.totalorder %v4787_v63, 8  ;;  %vm829_vm11 = vcmp.gt.s32.totalorder %v4789_v0, 8  ;;  %s5468_s2 = scalar_lea.hbm %s5708_s4, %s2889_s24 }
 0x18f   : > { %3182 = vmatprep.subr.bf16.mxu0 %v3641_v7  ;;  %3342 = vmatprep.subr.bf16.mxu1 %v3641_v7  ;;  %v3660_v53 = vld [vmem:[#allocation10 + $0xe8] sm:$0xff]   ;;  %v3661_v54 = vld [vmem:[#allocation10 + $0x130] sm:$0xff]   ;;  %v3662_v55 = vld [vmem:[#allocation10 + $0x160] sm:$0xff]   ;;  %vm823_vm13 = vcmp.gt.s32.totalorder %v4789_v0, 2 }
 0x190   : > { %v3663_v56 = vld [vmem:[#allocation10 + $0xf0] sm:$0xff]   ;;  %v3664_v57 = vld [vmem:[#allocation10 + $0x138] sm:$0xff]   ;;  %v3665_v58 = vld [vmem:[#allocation10 + $0x168] sm:$0xff]  }
 0x191   : > { %v3666_v59 = vld [vmem:[#allocation10 + $0xf8] sm:$0xff]   ;;  %v3667_v60 = vld [vmem:[#allocation10 + $0x170] sm:$0xff]   ;;  %v4784_v62 = vld [vmem:[#allocation10 + $0x80] sm:$0xff]  }
 0x192   : > { %3183 = vmatpush3.bf16.msra.mxu0 %v3641_v7  ;;  %3350 = vmatpush3.bf16.msra.mxu1 %v3641_v7  ;;  %v3668_v61 = vld [vmem:[#allocation10 + $0x178] sm:$0xff]   ;;  %vm4793_vm2 = vmand %vm819_vm0, %vm830_vm1  ;;  %v3676_v2 = vld [vmem:[#allocation10 + $0x40] sm:$0xff]   ;;  %vm972_vm0 = vsmask.f32 256 }
 0x193   : > { %3184 = vmatprep.subr.bf16.mxu0 %v3642_v11  ;;  %3343 = vmatprep.subr.bf16.mxu1 %v3642_v11  ;;  %v4797_v3 = vld [vmem:[#allocation13] ss:$0 sm:$0xff]  ;;  %vm4809_vm12 = vmand %vm811_vm3, %vm822_vm4  ;;  %v3706_v14 = vld [vmem:[#allocation10 + $0x1b0] sm:$0xff]  }
 0x194   : > { %vm4820_vm15 = vmand %vm810_vm5, %vm821_vm6  ;;  %vm1014_vm5 = vcmask 1047552   ;;  %vm1015_vm6 = vsmask.f32 7424  ;;  %v3711_v8 = vld [vmem:[#allocation10 + $0x210] sm:$0xff]   ;;  %v3717_v1 = vld [vmem:[#allocation11] sm:$0xff]  }
 0x195   : > { %vm4831_vm1 = vmand %vm818_vm10, %vm829_vm11 }
 0x196   : > { %3185 = vmatpush3.bf16.msra.mxu0 %v3642_v11  ;;  %3351 = vmatpush3.bf16.msra.mxu1 %v3642_v11  ;;  %vm2755_vm3 = vmpackc.low %vm4809_vm12, %vm4809_vm12 }
 0x197   : > { %3186 = vmatprep.subr.bf16.mxu0 %v3643_v12  ;;  %3344 = vmatprep.subr.bf16.mxu1 %v3643_v12  ;;  %vm4878_vm4 = vmand %vm813_vm7, %vm824_vm8  ;;  %vm815_vm7 = vcmp.le.s32.totalorder %v4787_v63, 5 }
 0x198   : > { %vm4887_vm10 = vmand %vm812_vm9, %vm823_vm13  ;;  %vm826_vm9 = vcmp.gt.s32.totalorder %v4789_v0, 5 }
 0x199   : > { %vm4895_vm8 = vmand %vm971_vm14, %vm972_vm0  ;;  %vm814_vm14 = vcmp.le.s32.totalorder %v4787_v63, 4  ;;  %vm825_vm0 = vcmp.gt.s32.totalorder %v4789_v0, 4 }
 0x19a   : > { %3187 = vmatpush3.bf16.msra.mxu0 %v3643_v12  ;;  %3352 = vmatpush3.bf16.msra.mxu1 %v3643_v12  ;;  %vm4906_vm11 = vmand %vm1014_vm5, %vm1015_vm6  ;;  %vm817_vm6 = vcmp.le.s32.totalorder %v4787_v63, 7 }
 0x19b   : > { %3188 = vmatprep.subr.bf16.mxu0 %v3644_v13  ;;  %3345 = vmatprep.subr.bf16.mxu1 %v3644_v13  ;;  %vm4921_vm13 = vmpackc.low %vm4887_vm10, %vm4887_vm10 }
 0x19c   : > { %vm4954_vm5 = vmand %vm815_vm7, %vm826_vm9  ;;  %vm828_vm7 = vcmp.gt.s32.totalorder %v4789_v0, 7 }
 0x19d   : > { %vm4989_vm9 = vmpackc.low %vm4878_vm4, %vm4878_vm4 }
 0x19e   : > { %3189 = vmatpush3.bf16.msra.mxu0 %v3644_v13  ;;  %3353 = vmatpush3.bf16.msra.mxu1 %v3644_v13 }
 0x19f   : > { %3210 = vmatprep.subr.bf16.mxu0 %v3650_v20  ;;  %2918 = vmatprep.subr.bf16.mxu1 %v3645_v21 }
 0x1a1   : > { %3191 = vmatmul.mubr.bf16.vlgmr.msra.gmra.mrb[0].mxu0 %v590_v22  ;;  %3207 = vmatmul.mubr.bf16.vlgmr.msra.gmra.mrb[0].mxu1 %v600_v25  ;;  %v3718_v22 = vld [vmem:[#allocation11 + $0x8] sm:$0xff]  }
 0x1a2   : > { %3194 = vmatprep.mubr.bf16.mxu0 %v591_v24  ;;  %2919 = vmatpush3.bf16.msra.mxu1 %v3646_v23 }
 0x1a3   : > { %3211 = vmatpush3.bf16.msra.mxu0 %v3650_v20  ;;  %2920 = vmatprep.subr.bf16.mxu1 %v3647_v26 }
 0x1a4   : > { %3212 = vmatprep.subr.bf16.mxu0 %v3653_v27 }
 0x1a6   : > { %2921 = vmatpush3.bf16.msra.mxu1 %v3648_v32 }
 0x1a7   : > { %3213 = vmatpush3.bf16.msra.mxu0 %v3653_v27  ;;  %2922 = vmatprep.subr.bf16.mxu1 %v3649_v33 }
 0x1a8   : > { %3214 = vmatprep.subr.bf16.mxu0 %v3656_v49 }
 0x1a9   : > { %3195 = vmatmul.mubr.bf16.gmra.mrb[4].mxu0 %v592_v34 }
 0x1aa   : > { %3198 = vmatprep.mubr.bf16.mxu0 %v593_v36  ;;  %2923 = vmatpush3.bf16.msra.mxu1 %v3651_v35 }
 0x1ab   : > { %2924 = vmatprep.subr.bf16.mxu1 %v3652_v37  ;;  %3215 = vmatpush3.bf16.msra.mxu0 %v3656_v49 }
 0x1ac   : > { %3216 = vmatprep.subr.bf16.mxu0 %v3659_v52 }
 0x1ae   : > { %2925 = vmatpush3.bf16.msra.mxu1 %v3654_v42 }
 0x1af   : > { %2926 = vmatprep.subr.bf16.mxu1 %v3655_v48  ;;  %3217 = vmatpush3.bf16.msra.mxu0 %v3659_v52 }
 0x1b0   : > { %3218 = vmatprep.subr.bf16.mxu0 %v3662_v55 }
 0x1b1   : > { %3199 = vmatmul.mubr.bf16.gmra.mrb[8].mxu0 %v594_v43 }
 0x1b2   : > { %3202 = vmatprep.mubr.bf16.mxu0 %v595_v44  ;;  %2927 = vmatpush3.bf16.msra.mxu1 %v3657_v50 }
 0x1b3   : > { %2928 = vmatprep.subr.bf16.mxu1 %v3658_v51  ;;  %3219 = vmatpush3.bf16.msra.mxu0 %v3662_v55 }
 0x1b4   : > { %3220 = vmatprep.subr.bf16.mxu0 %v3665_v58 }
 0x1b6   : > { %2929 = vmatpush3.bf16.msra.mxu1 %v3660_v53  ;;  %v3684_v53 = vld [vmem:[#allocation10 + $0x10] sm:$0xff]  }
 0x1b7   : > { %2930 = vmatprep.subr.bf16.mxu1 %v3661_v54  ;;  %3221 = vmatpush3.bf16.msra.mxu0 %v3665_v58 }
 0x1b8   : > { %3222 = vmatprep.subr.bf16.mxu0 %v3667_v60 }
 0x1b9   : > { %3203 = vmatmul.mubr.bf16.gmra.mrb[12].mxu0 %v596_v47 }
 0x1ba   : > { %2931 = vmatpush3.bf16.msra.mxu1 %v3663_v56 }
 0x1bb   : > { %2932 = vmatprep.subr.bf16.mxu1 %v3664_v57  ;;  %3223 = vmatpush3.bf16.msra.mxu0 %v3667_v60 }
 0x1bc   : > { %3224 = vmatprep.subr.bf16.mxu0 %v3668_v61 }
 0x1be   : > { %2933 = vmatpush3.bf16.msra.mxu1 %v3666_v59 }
 0x1bf   : > { %3225 = vmatpush3.bf16.msra.mxu0 %v3668_v61  ;;  %2998 = vmatprep.subr.bf16.mxu1 %v3676_v2  ;;  %v3720_v2 = vld [vmem:[#allocation11 + $0x18] sm:$0xff]  }
 0x1c0   : > { %3242 = vmatprep.subr.bf16.mxu0 %v4784_v62 }
 0x274   : > { %v3192_v4 = vpop.f32.mrb[0].mxu0  ;;  %v3208_v7 = vpop.f32.mrb[0].mxu1 }
 0x275   : > { %v715_v5 = vadd.f32 %v3192_v4, %v4797_v3  ;;  %v706_v6 = vpop.f32.mrb[1].mxu0  ;;  %v779_v11 = vadd.f32 %v3208_v7, %v4797_v3  ;;  %v770_v12 = vpop.f32.mrb[1].mxu1 }
 0x276   : > { %v707_v9 = vadd.f32 %v4797_v3, %v706_v6  ;;  %v3193_v10 = vpop.f32.mrb[2].mxu0  ;;  %v771_v17 = vadd.f32 %v4797_v3, %v770_v12  ;;  %v3209_v18 = vpop.f32.mrb[2].mxu1 }
 0x277   : > { %v787_v13 = vmax.f32 %v715_v5, 0.0  ;;  %v718_v15 = vadd.f32 %v3193_v10, %v4797_v3  ;;  %v709_v16 = vpop.f32.mrb[3].mxu0  ;;  %v803_v21 = vmax.f32 %v779_v11, 0.0  ;;  %v782_v23 = vadd.f32 %v3209_v18, %v4797_v3  ;;  %v773_v24 = vpop.f32.mrb[3].mxu1 }
 0x278   : > { %v785_v19 = vmax.f32 %v707_v9, 0.0  ;;  %v710_v20 = vadd.f32 %v4797_v3, %v709_v16  ;;  %v801_v27 = vmax.f32 %v771_v17, 0.0  ;;  %v774_v28 = vadd.f32 %v4797_v3, %v773_v24  ;;  %v3677_v17 = vld [vmem:[#allocation10] sm:$0xff]   ;;  %v3679_v24 = vld [vmem:[#allocation10 + $0x48] sm:$0xff]  }
 0x279   : > { %v863_v25 = vsel %vm4809_vm12, %v787_v13, 0.0  ;;  %v788_v26 = vmax.f32 %v718_v15, 0.0  ;;  %v879_v31 = vsel %vm4793_vm2, %v803_v21, 0.0  ;;  %v804_v32 = vmax.f32 %v782_v23, 0.0  ;;  %v3713_v16 = vld [vmem:[#allocation10 + $0x220] sm:$0xff]  }
 0x27a   : > { %v861_v29 = vsel %vm4820_vm15, %v785_v19, 0.0  ;;  %v786_v30 = vmax.f32 %v710_v20, 0.0  ;;  %v877_v35 = vsel %vm4831_vm1, %v801_v27, 0.0  ;;  %v802_v36 = vmax.f32 %v774_v28, 0.0 }
 0x27b   : > { %v864_v33 = vsel %vm4809_vm12, %v788_v26, 0.0  ;;  %v4848_v34 = vpack.c.bf16 %v788_v26, %v787_v13  ;;  %v880_v41 = vsel %vm4793_vm2, %v804_v32, 0.0  ;;  %v4869_v46 = vpack.c.bf16 %v804_v32, %v803_v21  ;;  %vm2872_vm12 = vmpackc.low %vm4793_vm2, %vm4793_vm2 }
 0x27c   : > { %v882_v37 = vpack.c.bf16 %v864_v33, %v863_v25  ;;  %v862_v38 = vsel %vm4820_vm15, %v786_v30, 0.0  ;;  %v4854_v39 = vpack.c.bf16 %v786_v30, %v785_v19  ;;  %v3196_v40 = vpop.f32.mrb[4].mxu0  ;;  %v4867_v45 = vpack.c.bf16 %v880_v41, %v879_v31  ;;  %v3680_v41 = vld [vmem:[#allocation10 + $0x8] sm:$0xff]  }
 0x27d   : > { %v4858_v42 = vpack.c.bf16 %v862_v38, %v861_v29  ;;  %v731_v43 = vadd.f32 %v3196_v40, %v4797_v3  ;;  %v722_v44 = vpop.f32.mrb[5].mxu0  ;;  %2757 = vmatprep.mubr.msk.bf16.mxu1 %vm2755_vm3, %v4848_v34  ;;  %v878_v51 = vsel %vm4831_vm1, %v802_v36, 0.0  ;;  %v4901_v5 = vpack.c.bf16 %v802_v36, %v801_v27 }
 0x27e   : > { %v899_v47 = vshrl.u32 %v882_v37, 16  ;;  %v902_v48 = vshll.u32 %v882_v37, 16  ;;  %v723_v49 = vadd.f32 %v4797_v3, %v722_v44  ;;  %v3197_v50 = vpop.f32.mrb[6].mxu0  ;;  %v4899_v4 = vpack.c.bf16 %v878_v51, %v877_v35 }
 0x27f   : > { %v791_v52 = vmax.f32 %v731_v43, 0.0  ;;  %v734_v54 = vadd.f32 %v3197_v50, %v4797_v3  ;;  %v725_v55 = vpop.f32.mrb[7].mxu0 }
 0x280   : > { %v789_v56 = vmax.f32 %v723_v49, 0.0  ;;  %v726_v58 = vadd.f32 %v4797_v3, %v725_v55  ;;  %v901_v59 = vrot.slane %v899_v47, 7  ;;  %v986_v60 = vrot.slane %v902_v48, 1 }
 0x281   : > { %v792_v61 = vmax.f32 %v734_v54, 0.0  ;;  %v867_v11 = vsel %vm4878_vm4, %v791_v52, 0.0  ;;  %v895_v49 = vshll.u32 %v4858_v42, 16 }
 0x282   : > { %v790_v6 = vmax.f32 %v726_v58, 0.0  ;;  %v904_v7 = vor.u32 %v902_v48, %v901_v59  ;;  %v987_v9 = vor.u32 %v986_v60, %v899_v47  ;;  %v865_v12 = vsel %vm4887_vm10, %v789_v56, 0.0  ;;  %v3682_v48 = vld [vmem:[#allocation10 + $0x50] sm:$0xff]  }
 0x283   : > { %v868_v13 = vsel %vm4878_vm4, %v792_v61, 0.0  ;;  %v4916_v15 = vpack.c.bf16 %v792_v61, %v791_v52  ;;  %vm816_vm4 = vcmp.le.s32.totalorder %v4787_v63, 6 }
 0x284   : > { %v4925_v18 = vpack.c.bf16 %v868_v13, %v867_v11  ;;  %v866_v19 = vsel %vm4887_vm10, %v790_v6, 0.0  ;;  %v4929_v20 = vpack.c.bf16 %v790_v6, %v789_v56  ;;  %v3200_v21 = vpop.f32.mrb[8].mxu0  ;;  %v4933_v23 = vsel %vm4895_vm8, 0, %v904_v7  ;;  %vm4967_vm10 = vmand %vm814_vm14, %vm825_vm0 }
 0x285   : > { %v883_v25 = vpack.c.bf16 %v866_v19, %v865_v12  ;;  %v747_v26 = vadd.f32 %v3200_v21, %v4797_v3  ;;  %v738_v27 = vpop.f32.mrb[9].mxu0  ;;  %1301 = vmatmul.mubr.bf16.vlgmr.msra.gmra.mrb[4].mxu1 %v4933_v23  ;;  %v4940_v28 = vsel %vm4906_vm11, %v987_v9, 0  ;;  %vm827_vm14 = vcmp.gt.s32.totalorder %v4789_v0, 6  ;;  %vm5015_vm0 = vmand %vm817_vm6, %vm828_vm7 }
 0x286   : > { %v916_v29 = vshll.u32 %v4925_v18, 16  ;;  %v739_v30 = vadd.f32 %v4797_v3, %v738_v27  ;;  %3226 = vmatprep.mubr.bf16.mxu0 %v4940_v28  ;;  %v3201_v31 = vpop.f32.mrb[10].mxu0  ;;  %2760 = vmatprep.mubr.msk.bf16.mxu1 %vm4921_vm13, %v4929_v20  ;;  %v913_v32 = vshrl.u32 %v4925_v18, 16  ;;  %vm5038_vm6 = vmand %vm816_vm4, %vm827_vm14  ;;  %v3688_v18 = vld [vmem:[#allocation10 + $0x18] sm:$0xff]   ;;  %v892_v0 = vshrl.u32 %v4858_v42, 16 }
 0x287   : > { %v906_v33 = vshrl.u32 %v883_v25, 16  ;;  %v795_v35 = vmax.f32 %v747_v26, 0.0  ;;  %v750_v37 = vadd.f32 %v3201_v31, %v4797_v3  ;;  %v741_v38 = vpop.f32.mrb[11].mxu0  ;;  %v909_v40 = vshll.u32 %v883_v25, 16  ;;  %2999 = vmatpush3.bf16.msra.mxu1 %v3677_v17  ;;  %v3670_v17 = vld [vmem:[#allocation10 + $0x88] sm:$0xff]   ;;  %vm5062_vm7 = vmpackc.low %vm4967_vm10, %vm4967_vm10  ;;  %v3702_v42 = vld [vmem:[#allocation10 + $0x78] sm:$0xff]  }
 0x288   : > { %v793_v43 = vmax.f32 %v739_v30, 0.0  ;;  %v742_v44 = vadd.f32 %v4797_v3, %v741_v38  ;;  %v990_v47 = vrot.slane %v916_v29, 1  ;;  %3000 = vmatprep.subr.bf16.mxu1 %v3679_v24  ;;  %v915_v57 = vrot.slane %v913_v32, 7  ;;  %vm5176_vm4 = vmpackc.low %vm5015_vm0, %vm5015_vm0 }
 0x289   : > { %v796_v50 = vmax.f32 %v750_v37, 0.0  ;;  %v908_v51 = vrot.slane %v906_v33, 7  ;;  %v988_v52 = vrot.slane %v909_v40, 1  ;;  %v871_v54 = vsel %vm4954_vm5, %v795_v35, 0.0  ;;  %v3687_v37 = vld [vmem:[#allocation10 + $0x188] sm:$0xff]   ;;  %vm2776_vm14 = vmpackc.low %vm4831_vm1, %vm4831_vm1 }
 0x28a   : > { %v794_v55 = vmax.f32 %v742_v44, 0.0  ;;  %v991_v56 = vor.u32 %v990_v47, %v913_v32  ;;  %v869_v6 = vsel %vm4967_vm10, %v793_v43, 0.0  ;;  %v3686_v32 = vld [vmem:[#allocation10 + $0x58] sm:$0xff]   ;;  %v3671_v47 = vld [vmem:[#allocation10 + $0x90] sm:$0xff]  }
 0x28b   : > { %v872_v58 = vsel %vm4954_vm5, %v796_v50, 0.0  ;;  %v4976_v59 = vpack.c.bf16 %v796_v50, %v795_v35  ;;  %v911_v60 = vor.u32 %v909_v40, %v908_v51  ;;  %v989_v61 = vor.u32 %v988_v52, %v906_v33  ;;  %3001 = vmatpush3.bf16.msra.mxu1 %v3680_v41  ;;  %v3704_v50 = vld [vmem:[#allocation10 + $0x38] sm:$0xff]  }
 0x28c   : > { %v4980_v7 = vpack.c.bf16 %v872_v58, %v871_v54  ;;  %v870_v9 = vsel %vm4967_vm10, %v794_v55, 0.0  ;;  %v4984_v11 = vpack.c.bf16 %v794_v55, %v793_v43  ;;  %v3204_v12 = vpop.f32.mrb[12].mxu0  ;;  %3002 = vmatprep.subr.bf16.mxu1 %v3682_v48  ;;  %v5026_v41 = vsel %vm4906_vm11, %v991_v56, 0  ;;  %vm5109_vm10 = vmpackc.low %vm4954_vm5, %vm4954_vm5 }
 0x28d   : > { %v4993_v19 = vpack.c.bf16 %v870_v9, %v869_v6  ;;  %v763_v21 = vadd.f32 %v3204_v12, %v4797_v3  ;;  %v754_v24 = vpop.f32.mrb[13].mxu0  ;;  %v4998_v25 = vsel %vm4895_vm8, 0, %v911_v60  ;;  %v5002_v26 = vsel %vm4906_vm11, %v989_v61, 0  ;;  %vm5152_vm5 = vmpackc.low %vm5038_vm6, %vm5038_vm6 }
 0x28e   : > { %v930_v27 = vshll.u32 %v4980_v7, 16  ;;  %v755_v30 = vadd.f32 %v4797_v3, %v754_v24  ;;  %v3205_v31 = vpop.f32.mrb[14].mxu0  ;;  %1309 = vmatmul.mubr.bf16.gmra.mrb[8].mxu1 %v4998_v25  ;;  %3227 = vmatmul.mubr.bf16.vlgmr.msra.gmra.mrb[16].mxu0 %v5002_v26  ;;  %v918_v48 = vor.u32 %v916_v29, %v915_v57  ;;  %v927_v54 = vshrl.u32 %v4980_v7, 16  ;;  %v3678_v7 = vld [vmem:[#allocation10 + $0xb8] sm:$0xff]  }
 0x28f   : > { %v923_v33 = vshll.u32 %v4993_v19, 16  ;;  %v799_v35 = vmax.f32 %v763_v21, 0.0  ;;  %v766_v38 = vadd.f32 %v3205_v31, %v4797_v3  ;;  %3243 = vmatpush3.bf16.msra.mxu0 %v4784_v62  ;;  %v757_v40 = vpop.f32.mrb[15].mxu0  ;;  %2763 = vmatprep.mubr.msk.bf16.mxu1 %vm4989_vm9, %v4916_v15 }
 0x290   : > { %v797_v43 = vmax.f32 %v755_v30, 0.0  ;;  %v758_v44 = vadd.f32 %v4797_v3, %v757_v40  ;;  %3230 = vmatprep.mubr.bf16.mxu0 %v5026_v41  ;;  %3244 = vmatprep.subr.bf16.mxu0 %v3670_v17  ;;  %v994_v62 = vrot.slane %v930_v27, 1  ;;  %v920_v3 = vshrl.u32 %v4993_v19, 16  ;;  %v3690_v30 = vld [vmem:[#allocation10 + $0x60] sm:$0xff]  }
 0x291   : > { %v800_v51 = vmax.f32 %v766_v38, 0.0  ;;  %v992_v52 = vrot.slane %v923_v33, 1  ;;  %3003 = vmatpush3.bf16.msra.mxu1 %v3684_v53  ;;  %v875_v29 = vsel %vm5015_vm0, %v799_v35, 0.0  ;;  %v5070_v21 = vsel %vm4895_vm8, 0, %v918_v48  ;;  %v3692_v38 = vld [vmem:[#allocation10 + $0x20] sm:$0xff]  }
 0x292   : > { %v798_v55 = vmax.f32 %v758_v44, 0.0  ;;  %3004 = vmatprep.subr.bf16.mxu1 %v3686_v32  ;;  %v995_v58 = vor.u32 %v994_v62, %v927_v54  ;;  %v873_v60 = vsel %vm5038_vm6, %v797_v43, 0.0  ;;  %v922_v53 = vrot.slane %v920_v3, 7  ;;  %v3694_v44 = vld [vmem:[#allocation10 + $0x68] sm:$0xff]   ;;  %v3673_v62 = vld [vmem:[#allocation10 + $0xa0] sm:$0xff]  }
 0x293   : > { %v876_v63 = vsel %vm5015_vm0, %v800_v51, 0.0  ;;  %v5049_v56 = vpack.c.bf16 %v800_v51, %v799_v35  ;;  %3245 = vmatpush3.bf16.msra.mxu0 %v3670_v17  ;;  %v993_v57 = vor.u32 %v992_v52, %v920_v3  ;;  %v3672_v17 = vld [vmem:[#allocation10 + $0x98] sm:$0xff]   ;;  %v955_v32 = vshrl.u32 %v4867_v45, 16  ;;  %vm2803_vm0 = vmpackc.low %vm4820_vm15, %vm4820_vm15 }
 0x294   : > { %v5053_v61 = vpack.c.bf16 %v876_v63, %v875_v29  ;;  %v874_v6 = vsel %vm5038_vm6, %v798_v55, 0.0  ;;  %v5057_v9 = vpack.c.bf16 %v798_v55, %v797_v43  ;;  %3246 = vmatprep.subr.bf16.mxu0 %v3671_v47  ;;  %v894_v35 = vrot.slane %v892_v0, 7 }
 0x295   : > { %v5066_v19 = vpack.c.bf16 %v874_v6, %v873_v60  ;;  %v5074_v24 = vsel %vm4906_vm11, %v993_v57, 0  ;;  %3005 = vmatpush3.bf16.msra.mxu1 %v3688_v18  ;;  %v5089_v43 = vsel %vm4906_vm11, %v995_v58, 0  ;;  %v951_v48 = vshll.u32 %v4899_v4, 16  ;;  %v3674_v60 = vld [vmem:[#allocation10 + $0xa8] sm:$0xff]  }
 0x296   : > { %v944_v31 = vshll.u32 %v5053_v61, 16  ;;  %1317 = vmatmul.mubr.bf16.gmra.mrb[12].mxu1 %v5070_v21  ;;  %3231 = vmatmul.mubr.bf16.gmra.mrb[20].mxu0 %v5074_v24  ;;  %v5095_v3 = vor.u32 %v895_v49, %v894_v35  ;;  %v941_v29 = vshrl.u32 %v5053_v61, 16  ;;  %v957_v63 = vrot.slane %v955_v32, 7  ;;  %v3696_v35 = vld [vmem:[#allocation10 + $0x28] sm:$0xff]   ;;  %v3695_v61 = vld [vmem:[#allocation10 + $0x198] sm:$0xff]  }
 0x297   : > { %v937_v40 = vshll.u32 %v5066_v19, 16  ;;  %3247 = vmatpush3.bf16.msra.mxu0 %v3671_v47  ;;  %2766 = vmatprep.mubr.msk.bf16.mxu1 %vm5062_vm7, %v4984_v11  ;;  %v925_v47 = vor.u32 %v923_v33, %v922_v53  ;;  %v934_v52 = vshrl.u32 %v5066_v19, 16  ;;  %v958_v6 = vshll.u32 %v4867_v45, 16 }
 0x298   : > { %3234 = vmatprep.mubr.bf16.mxu0 %v5089_v43  ;;  %3248 = vmatprep.subr.bf16.mxu0 %v3672_v17  ;;  %v998_v51 = vrot.slane %v944_v31, 1  ;;  %v1000_v36 = vrot.slane %v951_v48, 1  ;;  %v943_v19 = vrot.slane %v941_v29, 7 }
 0x299   : > { %v996_v18 = vrot.slane %v937_v40, 1  ;;  %3006 = vmatprep.subr.bf16.mxu1 %v3690_v30  ;;  %v5116_v53 = vsel %vm4895_vm8, 0, %v925_v47  ;;  %v929_v30 = vrot.slane %v927_v54, 7  ;;  %v1002_v45 = vrot.slane %v958_v6, 1 }
 0x29a   : > { %3007 = vmatpush3.bf16.msra.mxu1 %v3692_v38  ;;  %v999_v58 = vor.u32 %v998_v51, %v941_v29  ;;  %v3698_v38 = vld [vmem:[#allocation10 + $0x70] sm:$0xff]   ;;  %v948_v51 = vshrl.u32 %v4899_v4, 16  ;;  %v984_v47 = vrot.slane %v895_v49, 1  ;;  %v3703_v4 = vld [vmem:[#allocation10 + $0x1a8] sm:$0xff]  }
 0x29b   : > { %3249 = vmatpush3.bf16.msra.mxu0 %v3672_v17  ;;  %v997_v57 = vor.u32 %v996_v18, %v934_v52  ;;  %3008 = vmatprep.subr.bf16.mxu1 %v3694_v44  ;;  %v5126_v44 = vor.u32 %v958_v6, %v957_v63  ;;  %v3675_v18 = vld [vmem:[#allocation10 + $0xb0] sm:$0xff]  }
 0x29c   : > { %3250 = vmatprep.subr.bf16.mxu0 %v3673_v62  ;;  %v5133_v54 = vsel %vm4906_vm11, %v999_v58, 0  ;;  %v1001_v6 = vor.u32 %v1000_v36, %v948_v51  ;;  %v3700_v58 = vld [vmem:[#allocation10 + $0x30] sm:$0xff]   ;;  %v985_v55 = vor.u32 %v984_v47, %v892_v0  ;;  %v3681_v36 = vld [vmem:[#allocation10 + $0x1c0] sm:$0xff]   ;;  %v946_v47 = vor.u32 %v944_v31, %v943_v19 }
 0x29d   : > { %v5120_v17 = vsel %vm4906_vm11, %v997_v57, 0  ;;  %v983_v63 = vsel %vm4895_vm8, 0, %v5126_v44  ;;  %v932_v57 = vor.u32 %v930_v27, %v929_v30  ;;  %v3697_v31 = vld [vmem:[#allocation10 + $0x1e0] sm:$0xff]   ;;  %v3724_v44 = vld [vmem:[#allocation11 + $0x38] sm:$0xff]  }
 0x29e   : > { %1325 = vmatmul.mubr.bf16.gmra.mrb[16].mxu1 %v5116_v53  ;;  %3235 = vmatmul.mubr.bf16.gmra.mrb[24].mxu0 %v5120_v17  ;;  %v5162_v30 = vsel %vm4906_vm11, %v1001_v6, 0  ;;  %v1017_v0 = vsel %vm4906_vm11, %v985_v55, 0  ;;  %v5199_v29 = vsel %vm4895_vm8, 0, %v946_v47  ;;  %v3699_v6 = vld [vmem:[#allocation10 + $0x1a0] sm:$0xff]  }
 0x29f   : > { %3251 = vmatpush3.bf16.msra.mxu0 %v3673_v62  ;;  %2769 = vmatprep.mubr.msk.bf16.mxu1 %vm5109_vm10, %v4976_v59  ;;  %v5140_v62 = vor.u32 %v1002_v45, %v955_v32  ;;  %v5158_v27 = vsel %vm4895_vm8, 0, %v932_v57  ;;  %v3685_v45 = vld [vmem:[#allocation10 + $0x1c8] sm:$0xff]   ;;  %v950_v57 = vrot.slane %v948_v51, 7 }
 0x2a0   : > { %3238 = vmatprep.mubr.bf16.mxu0 %v5133_v54  ;;  %3252 = vmatprep.subr.bf16.mxu0 %v3674_v60 }
 0x2a1   : > { %3009 = vmatpush3.bf16.msra.mxu1 %v3696_v35  ;;  %v1026_v49 = vsel %vm4906_vm11, %v5140_v62, 0  ;;  %v3683_v35 = vld [vmem:[#allocation10 + $0x180] sm:$0xff]   ;;  %v953_v51 = vor.u32 %v951_v48, %v950_v57  ;;  %v3705_v48 = vld [vmem:[#allocation10 + $0x1f0] sm:$0xff]  }
 0x2a2   : > { %3010 = vmatprep.subr.bf16.mxu1 %v3698_v38 }
 0x2a3   : > { %3253 = vmatpush3.bf16.msra.mxu0 %v3674_v60  ;;  %v936_v60 = vrot.slane %v934_v52, 7 }
 0x2a4   : > { %3254 = vmatprep.subr.bf16.mxu0 %v3675_v18 }
 0x2a5   : > { %3011 = vmatpush3.bf16.msra.mxu1 %v3700_v58  ;;  %v939_v52 = vor.u32 %v937_v40, %v936_v60  ;;  %v3689_v40 = vld [vmem:[#allocation10 + $0x1d0] sm:$0xff]   ;;  %v3701_v58 = vld [vmem:[#allocation10 + $0x1e8] sm:$0xff]   ;;  %v3707_v60 = vld [vmem:[#allocation10 + $0x1f8] sm:$0xff]  }
 0x2a6   : > { %1333 = vmatmul.mubr.bf16.gmra.mrb[20].mxu1 %v5158_v27  ;;  %3239 = vmatmul.mubr.bf16.gmra.mrb[28].mxu0 %v5162_v30 }
 0x2a7   : > { %3255 = vmatpush3.bf16.msra.mxu0 %v3675_v18  ;;  %2772 = vmatprep.mubr.msk.bf16.mxu1 %vm5152_vm5, %v5057_v9  ;;  %v5182_v55 = vsel %vm4895_vm8, 0, %v939_v52  ;;  %v3691_v18 = vld [vmem:[#allocation10 + $0x190] sm:$0xff]  }
 0x2a8   : > { %3258 = vmatprep.mubr.bf16.mxu0 %v1017_v0  ;;  %3256 = vmatprep.subr.bf16.mxu0 %v3678_v7 }
 0x2a9   : > { %3012 = vmatprep.subr.bf16.mxu1 %v3702_v42  ;;  %v5706_v42 = vsel %vm4895_vm8, 0, %v5095_v3  ;;  %v3710_v3 = vld [vmem:[#allocation10 + $0x208] sm:$0xff]  }
 0x2aa   : > { %3013 = vmatpush3.bf16.msra.mxu1 %v3704_v50  ;;  %v3709_v50 = vld [vmem:[#allocation10 + $0x200] sm:$0xff]  }
 0x2ab   : > { %3257 = vmatpush3.bf16.msra.mxu0 %v3678_v7  ;;  %v5217_v7 = vsel %vm4895_vm8, 0, %v953_v51  ;;  %3306 = vmatprep.subr.bf16.mxu1 %v3717_v1 }
 0x2ac   : > { %3078 = vmatprep.subr.bf16.mxu0 %v3681_v36 }
 0x2ae   : > { %1341 = vmatmul.mubr.bf16.gmra.mrb[24].mxu1 %v5182_v55  ;;  %3259 = vmatmul.mubr.bf16.vlgmr.msra.gmra.mrb[16].mxu0 %v4940_v28  ;;  %v3693_v28 = vld [vmem:[#allocation10 + $0x1d8] sm:$0xff]  }
 0x2af   : > { %3079 = vmatpush3.bf16.msra.mxu0 %v3683_v35  ;;  %2775 = vmatprep.mubr.msk.bf16.mxu1 %vm5176_vm4, %v5049_v56 }
 0x2b0   : > { %3262 = vmatprep.mubr.bf16.mxu0 %v5002_v26  ;;  %3080 = vmatprep.subr.bf16.mxu0 %v3685_v45 }
 0x2b3   : > { %3081 = vmatpush3.bf16.msra.mxu0 %v3687_v37 }
 0x2b4   : > { %3082 = vmatprep.subr.bf16.mxu0 %v3689_v40 }
 0x2b6   : > { %1349 = vmatmul.mubr.bf16.gmra.mrb[28].mxu1 %v5199_v29  ;;  %3263 = vmatmul.mubr.bf16.gmra.mrb[20].mxu0 %v5026_v41 }
 0x2b7   : > { %3083 = vmatpush3.bf16.msra.mxu0 %v3691_v18  ;;  %2778 = vmatprep.mubr.msk.bf16.mxu1 %vm2776_vm14, %v4901_v5 }
 0x2b8   : > { %3266 = vmatprep.mubr.bf16.mxu0 %v5074_v24  ;;  %3084 = vmatprep.subr.bf16.mxu0 %v3693_v28 }
 0x2bb   : > { %3085 = vmatpush3.bf16.msra.mxu0 %v3695_v61 }
 0x2bc   : > { %3086 = vmatprep.subr.bf16.mxu0 %v3697_v31 }
 0x2be   : > { %1357 = vmatmul.mubr.bf16.gmra.mrb[32].mxu1 %v5217_v7  ;;  %3267 = vmatmul.mubr.bf16.gmra.mrb[24].mxu0 %v5089_v43 }
 0x2bf   : > { %3087 = vmatpush3.bf16.msra.mxu0 %v3699_v6  ;;  %2805 = vmatprep.mubr.msk.bf16.mxu1 %vm2803_vm0, %v4854_v39  ;;  %v3708_v39 = vld [vmem:[#allocation10 + $0x1b8] sm:$0xff]  }
 0x2c0   : > { %3270 = vmatprep.mubr.bf16.mxu0 %v5120_v17  ;;  %3088 = vmatprep.subr.bf16.mxu0 %v3701_v58 }
 0x2c3   : > { %3089 = vmatpush3.bf16.msra.mxu0 %v3703_v4 }
 0x2c4   : > { %3090 = vmatprep.subr.bf16.mxu0 %v3705_v48 }
 0x2c6   : > { %1639 = vmatmul.mubr.bf16.vlgmr.msra.gmra.mrb[36].mxu1 %v5706_v42  ;;  %3271 = vmatmul.mubr.bf16.gmra.mrb[28].mxu0 %v5133_v54 }
 0x2c7   : > { %3091 = vmatpush3.bf16.msra.mxu0 %v3706_v14  ;;  %2808 = vmatprep.mubr.msk.bf16.mxu1 %vm2755_vm3, %v4848_v34  ;;  %v3712_v34 = vld [vmem:[#allocation10 + $0x218] sm:$0xff]  }
 0x2c8   : > { %2853 = vmatprep.mubr.msk.bf16.mxu0 %vm4921_vm13, %v4929_v20  ;;  %3092 = vmatprep.subr.bf16.mxu0 %v3707_v60 }
 0x2c9   : > { %3307 = vmatpush3.bf16.msra.mxu1 %v3717_v1 }
 0x2ca   : > { %3308 = vmatprep.subr.bf16.mxu1 %v3718_v22 }
 0x2cb   : > { %3093 = vmatpush3.bf16.msra.mxu0 %v3708_v39 }
 0x2cc   : > { %3274 = vmatprep.subr.bf16.mxu0 %v3709_v50 }
 0x2cd   : > { %3309 = vmatpush3.bf16.msra.mxu1 %v3718_v22 }
 0x2ce   : > { %1647 = vmatmul.mubr.bf16.gmra.mrb[40].mxu1 %v4933_v23  ;;  %2026 = vmatmul.mubr.bf16.vlgmr.msra.gmra.mrb[32].mxu0 %v4998_v25  ;;  %v3716_v23 = vld [vmem:[#allocation10 + $0x238] sm:$0xff]  }
 0x2cf   : > { %3275 = vmatpush3.bf16.msra.mxu0 %v3709_v50  ;;  %2811 = vmatprep.mubr.msk.bf16.mxu1 %vm4921_vm13, %v4929_v20  ;;  %v3714_v20 = vld [vmem:[#allocation10 + $0x228] sm:$0xff]  }
 0x2d0   : > { %2856 = vmatprep.mubr.msk.bf16.mxu0 %vm4989_vm9, %v4916_v15  ;;  %3276 = vmatprep.subr.bf16.mxu0 %v3710_v3 }
 0x2d3   : > { %3277 = vmatpush3.bf16.msra.mxu0 %v3710_v3 }
 0x2d4   : > { %3278 = vmatprep.subr.bf16.mxu0 %v3711_v8 }
 0x2d6   : > { %1655 = vmatmul.mubr.bf16.gmra.mrb[44].mxu1 %v4998_v25  ;;  %2034 = vmatmul.mubr.bf16.gmra.mrb[36].mxu0 %v5070_v21 }
 0x2d7   : > { %2814 = vmatprep.mubr.msk.bf16.mxu1 %vm4989_vm9, %v4916_v15  ;;  %2859 = vmatprep.mubr.msk.bf16.mxu0 %vm5062_vm7, %v4984_v11  ;;  %v3715_v15 = vld [vmem:[#allocation10 + $0x230] sm:$0xff]  }
 0x2d8   : > { %3279 = vmatpush3.bf16.msra.mxu0 %v3711_v8 }
 0x2d9   : > { %3280 = vmatprep.subr.bf16.mxu0 %v3712_v34 }
 0x2dc   : > { %3281 = vmatpush3.bf16.msra.mxu0 %v3712_v34 }
 0x2dd   : > { %3282 = vmatprep.subr.bf16.mxu0 %v3713_v16 }
 0x2de   : > { %1663 = vmatmul.mubr.bf16.gmra.mrb[48].mxu1 %v5070_v21  ;;  %2042 = vmatmul.mubr.bf16.gmra.mrb[40].mxu0 %v5116_v53 }
 0x2df   : > { %2817 = vmatprep.mubr.msk.bf16.mxu1 %vm5062_vm7, %v4984_v11  ;;  %2862 = vmatprep.mubr.msk.bf16.mxu0 %vm5109_vm10, %v4976_v59 }
 0x2e0   : > { %3283 = vmatpush3.bf16.msra.mxu0 %v3713_v16 }
 0x2e1   : > { %3284 = vmatprep.subr.bf16.mxu0 %v3714_v20 }
 0x2e4   : > { %3285 = vmatpush3.bf16.msra.mxu0 %v3714_v20 }
 0x2e5   : > { %3286 = vmatprep.subr.bf16.mxu0 %v3715_v15 }
 0x2e6   : > { %1671 = vmatmul.mubr.bf16.gmra.mrb[52].mxu1 %v5116_v53  ;;  %2050 = vmatmul.mubr.bf16.gmra.mrb[44].mxu0 %v5158_v27 }
 0x2e7   : > { %2820 = vmatprep.mubr.msk.bf16.mxu1 %vm5109_vm10, %v4976_v59  ;;  %2865 = vmatprep.mubr.msk.bf16.mxu0 %vm5152_vm5, %v5057_v9  ;;  %v3722_v59 = vld [vmem:[#allocation11 + $0x28] sm:$0xff]  }
 0x2e8   : > { %3287 = vmatpush3.bf16.msra.mxu0 %v3715_v15 }
 0x2e9   : > { %3288 = vmatprep.subr.bf16.mxu0 %v3716_v23 }
 0x2ec   : > { %3289 = vmatpush3.bf16.msra.mxu0 %v3716_v23 }
 0x2ee   : > { %1679 = vmatmul.mubr.bf16.gmra.mrb[56].mxu1 %v5158_v27  ;;  %2058 = vmatmul.mubr.bf16.gmra.mrb[48].mxu0 %v5182_v55 }
 0x2ef   : > { %2823 = vmatprep.mubr.msk.bf16.mxu1 %vm5152_vm5, %v5057_v9  ;;  %2868 = vmatprep.mubr.msk.bf16.mxu0 %vm5176_vm4, %v5049_v56 }
 0x2f6   : > { %1687 = vmatmul.mubr.bf16.gmra.mrb[60].mxu1 %v5182_v55  ;;  %2066 = vmatmul.mubr.bf16.gmra.mrb[52].mxu0 %v5199_v29 }
 0x2f7   : > { %2826 = vmatprep.mubr.msk.bf16.mxu1 %vm5176_vm4, %v5049_v56  ;;  %2871 = vmatprep.mubr.msk.bf16.mxu0 %vm2776_vm14, %v4901_v5  ;;  %v3721_v5 = vld [vmem:[#allocation11 + $0x20] sm:$0xff]   ;;  %v3723_v56 = vld [vmem:[#allocation11 + $0x30] sm:$0xff]  }
 0x2fe   : > { %1695 = vmatmul.mubr.bf16.gmra.mrb[64].mxu1 %v5199_v29  ;;  %2074 = vmatmul.mubr.bf16.gmra.mrb[56].mxu0 %v5217_v7 }
 0x2ff   : > { %2874 = vmatprep.mubr.msk.bf16.mxu0 %vm2872_vm12, %v4869_v46  ;;  %v3719_v46 = vld [vmem:[#allocation11 + $0x10] sm:$0xff]  }
 0x300   : > { %3310 = vmatprep.subr.bf16.mxu1 %v3719_v46 }
 0x301   : > { %3311 = vmatpush3.bf16.msra.mxu1 %v3719_v46 }
 0x302   : > { %3312 = vmatprep.subr.bf16.mxu1 %v3720_v2 }
 0x305   : > { %3313 = vmatpush3.bf16.msra.mxu1 %v3720_v2 }
 0x306   : > { %2082 = vmatmul.mubr.bf16.gmra.mrb[60].mxu0 %v983_v63  ;;  %3314 = vmatprep.subr.bf16.mxu1 %v3721_v5 }
 0x307   : > { %3290 = vmatprep.mubr.bf16.mxu0 %v5002_v26 }
 0x309   : > { %3315 = vmatpush3.bf16.msra.mxu1 %v3721_v5 }
 0x30a   : > { %3316 = vmatprep.subr.bf16.mxu1 %v3722_v59 }
 0x30d   : > { %3317 = vmatpush3.bf16.msra.mxu1 %v3722_v59 }
 0x30e   : > { %3291 = vmatmul.mubr.bf16.vlgmr.msra.gmra.mrb[16].mxu0 %v5026_v41  ;;  %3318 = vmatprep.subr.bf16.mxu1 %v3723_v56 }
 0x30f   : > { %3294 = vmatprep.mubr.bf16.mxu0 %v5074_v24 }
 0x311   : > { %3319 = vmatpush3.bf16.msra.mxu1 %v3723_v56 }
 0x312   : > { %3320 = vmatprep.subr.bf16.mxu1 %v3724_v44 }
 0x315   : > { %3321 = vmatpush3.bf16.msra.mxu1 %v3724_v44 }
 0x316   : > { %3295 = vmatmul.mubr.bf16.gmra.mrb[20].mxu0 %v5089_v43 }
 0x317   : > { %3298 = vmatprep.mubr.bf16.mxu0 %v5120_v17 }
 0x31e   : > { %3299 = vmatmul.mubr.bf16.gmra.mrb[24].mxu0 %v5133_v54 }
 0x31f   : > { %3302 = vmatprep.mubr.bf16.mxu0 %v5162_v30 }
 0x326   : > { %3303 = vmatmul.mubr.bf16.gmra.mrb[28].mxu0 %v1026_v49 }
 0x358   : > { %v2934_v10 = vpop.f32.mrb[4].mxu1 }
 0x359   : > { %v2935_v11 = vpop.f32.mrb[5].mxu1 }
 0x35a   : > { %v2936_v13 = vadd.f32 %v2935_v11, %v2934_v10  ;;  %v2937_v25 = vpop.f32.mrb[6].mxu1 }
 0x35b   : > { %v2938_v26 = vpop.f32.mrb[7].mxu1 }
 0x35c   : > { %v2939_v41 = vadd.f32 %v2938_v26, %v2937_v25 }
 0x361   : > { %v2940_v9 = vpop.f32.mrb[8].mxu1 }
 0x362   : > { %v2941_v12 = vpop.f32.mrb[9].mxu1 }
 0x363   : > { %v2942_v21 = vadd.f32 %v2941_v12, %v2940_v9  ;;  %v2943_v24 = vpop.f32.mrb[10].mxu1 }
 0x364   : > { %v2944_v43 = vpop.f32.mrb[11].mxu1 }
 0x365   : > { %v2945_v33 = vadd.f32 %v2944_v43, %v2943_v24 }
 0x369   : > { %v2946_v53 = vpop.f32.mrb[12].mxu1 }
 0x36a   : > { %v2947_v17 = vpop.f32.mrb[13].mxu1 }
 0x36b   : > { %v5309_v54 = vadd.f32 %v2947_v17, %v2946_v53  ;;  %v2949_v63 = vpop.f32.mrb[14].mxu1 }
 0x36c   : > { %v2950_v62 = vpop.f32.mrb[15].mxu1 }
 0x36d   : > { %v5311_v49 = vadd.f32 %v2950_v62, %v2949_v63 }
 0x371   : > { %v2952_v32 = vpop.f32.mrb[16].mxu1 }
 0x372   : > { %v2953_v27 = vpop.f32.mrb[17].mxu1 }
 0x373   : > { %v5313_v30 = vadd.f32 %v2953_v27, %v2952_v32  ;;  %v2955_v0 = vpop.f32.mrb[18].mxu1 }
 0x374   : > { %v2956_v36 = vpop.f32.mrb[19].mxu1 }
 0x375   : > { %v5315_v52 = vadd.f32 %v2956_v36, %v2955_v0 }
 0x379   : > { %v2958_v35 = vpop.f32.mrb[20].mxu1 }
 0x37a   : > { %v2959_v38 = vpop.f32.mrb[21].mxu1 }
 0x37b   : > { %v5317_v45 = vadd.f32 %v2959_v38, %v2958_v35  ;;  %v2961_v55 = vpop.f32.mrb[22].mxu1 }
 0x37c   : > { %v2962_v19 = vpop.f32.mrb[23].mxu1 }
 0x37d   : > { %v5319_v37 = vadd.f32 %v2962_v19, %v2961_v55 }
 0x381   : > { %v2964_v40 = vpop.f32.mrb[24].mxu1 }
 0x382   : > { %v2965_v47 = vpop.f32.mrb[25].mxu1 }
 0x383   : > { %v5321_v18 = vadd.f32 %v2965_v47, %v2964_v40  ;;  %v2967_v28 = vpop.f32.mrb[26].mxu1 }
 0x384   : > { %v2968_v29 = vpop.f32.mrb[27].mxu1 }
 0x385   : > { %v5323_v57 = vadd.f32 %v2968_v29, %v2967_v28 }
 0x389   : > { %v2970_v61 = vpop.f32.mrb[28].mxu1 }
 0x38a   : > { %v2971_v31 = vpop.f32.mrb[29].mxu1 }
 0x38b   : > { %v5325_v51 = vadd.f32 %v2971_v31, %v2970_v61  ;;  %v2973_v6 = vpop.f32.mrb[30].mxu1 }
 0x38c   : > { %v2974_v58 = vpop.f32.mrb[31].mxu1 }
 0x38d   : > { %v5327_v7 = vadd.f32 %v2974_v58, %v2973_v6 }
 0x391   : > { %v2976_v4 = vpop.f32.mrb[32].mxu1 }
 0x392   : > { %v2977_v48 = vpop.f32.mrb[33].mxu1 }
 0x393   : > { %v5329_v14 = vadd.f32 %v2977_v48, %v2976_v4  ;;  %v2979_v60 = vpop.f32.mrb[34].mxu1 }
 0x394   : > { %v2980_v42 = vpop.f32.mrb[35].mxu1 }
 0x395   : > { %v5331_v39 = vadd.f32 %v2980_v42, %v2979_v60 }
 0x399   : > { %v3014_v50 = vpop.f32.mrb[36].mxu1 }
 0x39a   : > { %v3015_v3 = vpop.f32.mrb[37].mxu1 }
 0x39b   : > { %v3016_v8 = vadd.f32 %v3015_v3, %v3014_v50  ;;  %v3017_v34 = vpop.f32.mrb[38].mxu1 }
 0x39c   : > { %v3018_v16 = vpop.f32.mrb[39].mxu1 }
 0x39d   : > { %v3357_v20 = vadd.f32 %v3016_v8, %v2936_v13  ;;  %v3019_v15 = vadd.f32 %v3018_v16, %v3017_v34 }
 0x39f   : > { %v3363_v23 = vadd.f32 %v3019_v15, %v2939_v41 }
 0x3a1   : > { %v3020_v1 = vpop.f32.mrb[40].mxu1  ;;  %v3094_v22 = vpop.f32.mrb[32].mxu0 }
 0x3a2   : > { %v3021_v46 = vpop.f32.mrb[41].mxu1  ;;  %v3095_v2 = vpop.f32.mrb[33].mxu0 }
 0x3a3   : > { %v3022_v5 = vadd.f32 %v3021_v46, %v3020_v1  ;;  %v3096_v59 = vadd.f32 %v3095_v2, %v3094_v22  ;;  %v3023_v10 = vpop.f32.mrb[42].mxu1  ;;  %v3097_v11 = vpop.f32.mrb[34].mxu0 }
 0x3a4   : > { %v3024_v25 = vpop.f32.mrb[43].mxu1  ;;  %v3098_v26 = vpop.f32.mrb[35].mxu0 }
 0x3a5   : > { %v3354_v56 = vadd.f32 %v3022_v5, %v2942_v21  ;;  %v3025_v9 = vadd.f32 %v3024_v25, %v3023_v10  ;;  %v3099_v12 = vadd.f32 %v3098_v26, %v3097_v11  ;;  %v5333_v24 = vadd.f32 %v3357_v20, %v3096_v59 }
 0x3a7   : > { %v3360_v43 = vadd.f32 %v3025_v9, %v2945_v33  ;;  %v5335_v53 = vadd.f32 %v3363_v23, %v3099_v12 }
 0x3a9   : > { %v3026_v13 = vpop.f32.mrb[44].mxu1  ;;  %v3100_v41 = vpop.f32.mrb[36].mxu0 }
 0x3aa   : > { %v3027_v17 = vpop.f32.mrb[45].mxu1  ;;  %v3101_v44 = vpop.f32.mrb[37].mxu0 }
 0x3ab   : > { %v3028_v63 = vadd.f32 %v3027_v17, %v3026_v13  ;;  %v3102_v62 = vadd.f32 %v3101_v44, %v3100_v41  ;;  %v3029_v32 = vpop.f32.mrb[46].mxu1  ;;  %v3103_v27 = vpop.f32.mrb[38].mxu0 }
 0x3ac   : > { %v3030_v0 = vpop.f32.mrb[47].mxu1  ;;  %v3104_v36 = vpop.f32.mrb[39].mxu0 }
 0x3ad   : > { %v3369_v35 = vadd.f32 %v3028_v63, %v5309_v54  ;;  %v3031_v21 = vadd.f32 %v3030_v0, %v3029_v32  ;;  %v3105_v38 = vadd.f32 %v3104_v36, %v3103_v27  ;;  %v5338_v55 = vadd.f32 %v3354_v56, %v3102_v62 }
 0x3af   : > { %v3375_v33 = vadd.f32 %v3031_v21, %v5311_v49  ;;  %v5341_v19 = vadd.f32 %v3360_v43, %v3105_v38 }
 0x3b1   : > { %v3032_v40 = vpop.f32.mrb[48].mxu1  ;;  %v3106_v47 = vpop.f32.mrb[40].mxu0 }
 0x3b2   : > { %v3033_v28 = vpop.f32.mrb[49].mxu1  ;;  %v3107_v29 = vpop.f32.mrb[41].mxu0 }
 0x3b3   : > { %v3034_v61 = vadd.f32 %v3033_v28, %v3032_v40  ;;  %v3108_v31 = vadd.f32 %v3107_v29, %v3106_v47  ;;  %v3035_v6 = vpop.f32.mrb[50].mxu1  ;;  %v3109_v58 = vpop.f32.mrb[42].mxu0 }
 0x3b4   : > { %v3036_v4 = vpop.f32.mrb[51].mxu1  ;;  %v3110_v48 = vpop.f32.mrb[43].mxu0 }
 0x3b5   : > { %v3366_v54 = vadd.f32 %v3034_v61, %v5313_v30  ;;  %v3037_v60 = vadd.f32 %v3036_v4, %v3035_v6  ;;  %v3111_v42 = vadd.f32 %v3110_v48, %v3109_v58  ;;  %v5344_v50 = vadd.f32 %v3369_v35, %v3108_v31 }
 0x3b7   : > { %v3372_v49 = vadd.f32 %v3037_v60, %v5315_v52  ;;  %v5347_v3 = vadd.f32 %v3375_v33, %v3111_v42 }
 0x3b9   : > { %v3038_v8 = vpop.f32.mrb[52].mxu1  ;;  %v3112_v34 = vpop.f32.mrb[44].mxu0 }
 0x3ba   : > { %v3039_v16 = vpop.f32.mrb[53].mxu1  ;;  %v3113_v20 = vpop.f32.mrb[45].mxu0 }
 0x3bb   : > { %v3040_v15 = vadd.f32 %v3039_v16, %v3038_v8  ;;  %v3114_v23 = vadd.f32 %v3113_v20, %v3112_v34  ;;  %v3041_v1 = vpop.f32.mrb[54].mxu1  ;;  %v3115_v22 = vpop.f32.mrb[46].mxu0 }
 0x3bc   : > { %v3042_v46 = vpop.f32.mrb[55].mxu1  ;;  %v3116_v2 = vpop.f32.mrb[47].mxu0 }
 0x3bd   : > { %v3381_v30 = vadd.f32 %v3040_v15, %v5317_v45  ;;  %v3043_v5 = vadd.f32 %v3042_v46, %v3041_v1  ;;  %v3117_v59 = vadd.f32 %v3116_v2, %v3115_v22  ;;  %v5350_v10 = vadd.f32 %v3366_v54, %v3114_v23 }
 0x3bf   : > { %v3387_v52 = vadd.f32 %v3043_v5, %v5319_v37  ;;  %v5353_v11 = vadd.f32 %v3372_v49, %v3117_v59 }
 0x3c1   : > { %v3044_v25 = vpop.f32.mrb[56].mxu1  ;;  %v3118_v26 = vpop.f32.mrb[48].mxu0 }
 0x3c2   : > { %v3045_v56 = vpop.f32.mrb[57].mxu1  ;;  %v3119_v9 = vpop.f32.mrb[49].mxu0 }
 0x3c3   : > { %v3046_v12 = vadd.f32 %v3045_v56, %v3044_v25  ;;  %v3120_v43 = vadd.f32 %v3119_v9, %v3118_v26  ;;  %v3047_v13 = vpop.f32.mrb[58].mxu1  ;;  %v3121_v41 = vpop.f32.mrb[50].mxu0  ;;  %v5375_v9 = vld [vmem:[#allocation14] ss:$0 sm:$0xff] }
 0x3c4   : > { %v3048_v17 = vpop.f32.mrb[59].mxu1  ;;  %v3122_v44 = vpop.f32.mrb[51].mxu0 }
 0x3c5   : > { %v3378_v45 = vadd.f32 %v3046_v12, %v5321_v18  ;;  %v3049_v63 = vadd.f32 %v3048_v17, %v3047_v13  ;;  %v3123_v62 = vadd.f32 %v3122_v44, %v3121_v41  ;;  %v5356_v32 = vadd.f32 %v3381_v30, %v3120_v43 }
 0x3c7   : > { %v3384_v37 = vadd.f32 %v3049_v63, %v5323_v57  ;;  %v5359_v27 = vadd.f32 %v3387_v52, %v3123_v62 }
 0x3c9   : > { %v3050_v0 = vpop.f32.mrb[60].mxu1  ;;  %v3124_v36 = vpop.f32.mrb[52].mxu0 }
 0x3ca   : > { %v3051_v35 = vpop.f32.mrb[61].mxu1  ;;  %v3125_v21 = vpop.f32.mrb[53].mxu0 }
 0x3cb   : > { %v3052_v38 = vadd.f32 %v3051_v35, %v3050_v0  ;;  %v3126_v33 = vadd.f32 %v3125_v21, %v3124_v36  ;;  %v3053_v40 = vpop.f32.mrb[62].mxu1  ;;  %v3127_v47 = vpop.f32.mrb[54].mxu0 }
 0x3cc   : > { %v3054_v28 = vpop.f32.mrb[63].mxu1  ;;  %v3128_v29 = vpop.f32.mrb[55].mxu0 }
 0x3cd   : > { %v3393_v18 = vadd.f32 %v3052_v38, %v5325_v51  ;;  %v3055_v61 = vadd.f32 %v3054_v28, %v3053_v40  ;;  %v3129_v31 = vadd.f32 %v3128_v29, %v3127_v47  ;;  %v5362_v6 = vadd.f32 %v3378_v45, %v3126_v33 }
 0x3cf   : > { %v3399_v57 = vadd.f32 %v3055_v61, %v5327_v7  ;;  %v5365_v58 = vadd.f32 %v3384_v37, %v3129_v31 }
 0x3d1   : > { %v3056_v4 = vpop.f32.mrb[64].mxu1  ;;  %v3130_v48 = vpop.f32.mrb[56].mxu0 }
 0x3d2   : > { %v3057_v54 = vpop.f32.mrb[65].mxu1  ;;  %v3131_v60 = vpop.f32.mrb[57].mxu0 }
 0x3d3   : > { %v3058_v42 = vadd.f32 %v3057_v54, %v3056_v4  ;;  %v3132_v49 = vadd.f32 %v3131_v60, %v3130_v48  ;;  %v3059_v8 = vpop.f32.mrb[66].mxu1  ;;  %v3133_v34 = vpop.f32.mrb[58].mxu0 }
 0x3d4   : > { %v3060_v16 = vpop.f32.mrb[67].mxu1  ;;  %v3134_v20 = vpop.f32.mrb[59].mxu0 }
 0x3d5   : > { %v3390_v51 = vadd.f32 %v3058_v42, %v5329_v14  ;;  %v3061_v15 = vadd.f32 %v3060_v16, %v3059_v8  ;;  %v3135_v23 = vadd.f32 %v3134_v20, %v3133_v34  ;;  %v5368_v1 = vadd.f32 %v3393_v18, %v3132_v49 }
 0x3d7   : > { %v3396_v7 = vadd.f32 %v3061_v15, %v5331_v39  ;;  %v5371_v22 = vadd.f32 %v3399_v57, %v3135_v23 }
 0x3d9   : > { %v3136_v46 = vpop.f32.mrb[60].mxu0 }
 0x3da   : > { %v3137_v2 = vpop.f32.mrb[61].mxu0 }
 0x3db   : > { %v3138_v30 = vadd.f32 %v3137_v2, %v3136_v46  ;;  %v3139_v5 = vpop.f32.mrb[62].mxu0 }
 0x3dc   : > { %v3140_v59 = vpop.f32.mrb[63].mxu0 }
 0x3dd   : > { %v3141_v52 = vadd.f32 %v3140_v59, %v3139_v5  ;;  %v3391_v25 = vadd.f32 %v3390_v51, %v3138_v30 }
 0x3df   : > { %v5373_v26 = vadd.f32 %v3396_v7, %v3141_v52 }
 0x3e1   : > { %v3292_v56 = vpop.f32.mrb[16].mxu0 }
 0x3e2   : > { %v3356_v14 = vadd.f32 %v5338_v55, %v3292_v56  ;;  %v2124_v12 = vpop.f32.mrb[17].mxu0 }
 0x3e3   : > { %v3359_v43 = vadd.f32 %v5333_v24, %v2124_v12  ;;  %v3293_v39 = vpop.f32.mrb[18].mxu0 }
 0x3e4   : > { %v2212_v13 = vadd.f32 %v3356_v14, %v5375_v9  ;;  %v3362_v41 = vadd.f32 %v5341_v19, %v3293_v39  ;;  %v2127_v17 = vpop.f32.mrb[19].mxu0 }
 0x3e5   : > { %v2210_v44 = vadd.f32 %v3359_v43, %v5375_v9  ;;  %v3365_v45 = vadd.f32 %v5335_v53, %v2127_v17 }
 0x3e6   : > { %v2213_v63 = vadd.f32 %v3362_v41, %v5375_v9  ;;  %v2228_v37 = vmax.f32 %v2212_v13, 0.0 }
 0x3e7   : > { %v2211_v62 = vadd.f32 %v3365_v45, %v5375_v9  ;;  %v2226_v55 = vmax.f32 %v2210_v44, 0.0 }
 0x3e8   : > { %v2229_v0 = vmax.f32 %v2213_v63, 0.0 }
 0x3e9   : > { %v2227_v36 = vmax.f32 %v2211_v62, 0.0  ;;  %v3296_v35 = vpop.f32.mrb[20].mxu0 }
 0x3ea   : > { %v2243_v24 = vpack.c.bf16 %v2229_v0, %v2228_v37  ;;  %v3368_v21 = vadd.f32 %v5350_v10, %v3296_v35  ;;  %v2140_v38 = vpop.f32.mrb[21].mxu0 }
 0x3eb   : > { %v3371_v19 = vadd.f32 %v5344_v50, %v2140_v38  ;;  %v3297_v33 = vpop.f32.mrb[22].mxu0  ;;  %v2242_v40 = vpack.c.bf16 %v2227_v36, %v2226_v55  ;;  %v3725_v55 = vld [vmem:[%s4727_s30 + $0x10] sm:$0xff] }
 0x3ec   : > { %v2216_v47 = vadd.f32 %v3368_v21, %v5375_v9  ;;  %v3374_v53 = vadd.f32 %v5353_v11, %v3297_v33  ;;  %v2143_v28 = vpop.f32.mrb[23].mxu0  ;;  %v3726_v21 = vld [vmem:[%s4727_s30] sm:$0xff] }
 0x3ed   : > { %v2214_v29 = vadd.f32 %v3371_v19, %v5375_v9  ;;  %v3377_v18 = vadd.f32 %v5347_v3, %v2143_v28  ;;  %3322 = vmatprep.mubr.bf16.mxu1 %v2242_v40  ;;  %v3727_v40 = vld [vmem:[%s4727_s30 + $0x18] sm:$0xff]  ;;  %v3728_v28 = vld [vmem:[%s4727_s30 + $0x8] sm:$0xff] }
 0x3ee   : > { %v2217_v61 = vadd.f32 %v3374_v53, %v5375_v9  ;;  %3323 = vmatmul.mubr.bf16.vlgmr.msra.gmra.mrb[68].mxu1 %v2243_v24  ;;  %v2232_v31 = vmax.f32 %v2216_v47, 0.0 }
 0x3ef   : > { %v2215_v10 = vadd.f32 %v3377_v18, %v5375_v9  ;;  %v2230_v50 = vmax.f32 %v2214_v29, 0.0 }
 0x3f0   : > { %v2233_v57 = vmax.f32 %v2217_v61, 0.0 }
 0x3f1   : > { %v2231_v4 = vmax.f32 %v2215_v10, 0.0  ;;  %v3300_v48 = vpop.f32.mrb[24].mxu0 }
 0x3f2   : > { %v3380_v54 = vadd.f32 %v5362_v6, %v3300_v48  ;;  %v2156_v60 = vpop.f32.mrb[25].mxu0  ;;  %v2245_v11 = vpack.c.bf16 %v2233_v57, %v2232_v31  ;;  %v3729_v48 = vld [vmem:[%s4727_s30 + $0x30] sm:$0xff] }
 0x3f3   : > { %v3383_v42 = vadd.f32 %v5356_v32, %v2156_v60  ;;  %v3301_v49 = vpop.f32.mrb[26].mxu0  ;;  %v2244_v8 = vpack.c.bf16 %v2231_v4, %v2230_v50 }
 0x3f4   : > { %v2220_v3 = vadd.f32 %v3380_v54, %v5375_v9  ;;  %v3386_v34 = vadd.f32 %v5365_v58, %v3301_v49  ;;  %v2159_v16 = vpop.f32.mrb[27].mxu0 }
 0x3f5   : > { %v2218_v20 = vadd.f32 %v3383_v42, %v5375_v9  ;;  %v3389_v51 = vadd.f32 %v5359_v27, %v2159_v16  ;;  %3326 = vmatprep.mubr.bf16.mxu1 %v2244_v8  ;;  %v3730_v42 = vld [vmem:[%s4727_s30 + $0x20] sm:$0xff] }
 0x3f6   : > { %v2221_v15 = vadd.f32 %v3386_v34, %v5375_v9  ;;  %3327 = vmatmul.mubr.bf16.gmra.mrb[72].mxu1 %v2245_v11  ;;  %v2236_v23 = vmax.f32 %v2220_v3, 0.0  ;;  %v3731_v34 = vld [vmem:[%s4727_s30 + $0x38] sm:$0xff] }
 0x3f7   : > { %v2219_v6 = vadd.f32 %v3389_v51, %v5375_v9  ;;  %v2234_v32 = vmax.f32 %v2218_v20, 0.0  ;;  %v3732_v51 = vld [vmem:[%s4727_s30 + $0x28] sm:$0xff] }
 0x3f8   : > { %v2237_v7 = vmax.f32 %v2221_v15, 0.0 }
 0x3f9   : > { %v2235_v46 = vmax.f32 %v2219_v6, 0.0  ;;  %v3304_v2 = vpop.f32.mrb[28].mxu0 }
 0x3fa   : > { %v3392_v30 = vadd.f32 %v3391_v25, %v3304_v2  ;;  %v2172_v5 = vpop.f32.mrb[29].mxu0  ;;  %v2247_v59 = vpack.c.bf16 %v2237_v7, %v2236_v23 }
 0x3fb   : > { %v3395_v58 = vadd.f32 %v5368_v1, %v2172_v5  ;;  %v3305_v52 = vpop.f32.mrb[30].mxu0  ;;  %v2246_v56 = vpack.c.bf16 %v2235_v46, %v2234_v32  ;;  %v3733_v5 = vld [vmem:[%s4727_s30 + $0x50] sm:$0xff] }
 0x3fc   : > { %v2224_v27 = vadd.f32 %v3392_v30, %v5375_v9  ;;  %v3398_v14 = vadd.f32 %v5373_v26, %v3305_v52  ;;  %v2175_v12 = vpop.f32.mrb[31].mxu0  ;;  %v5408_v26 = vld [vmem:[#allocation16] ss:$0 sm:$0xff] }
 0x3fd   : > { %v2222_v43 = vadd.f32 %v3395_v58, %v5375_v9  ;;  %v3401_v39 = vadd.f32 %v5371_v22, %v2175_v12  ;;  %3330 = vmatprep.mubr.bf16.mxu1 %v2246_v56  ;;  %v3734_v56 = vld [vmem:[%s4727_s30 + $0x40] sm:$0xff] }
 0x3fe   : > { %v2225_v13 = vadd.f32 %v3398_v14, %v5375_v9  ;;  %3331 = vmatmul.mubr.bf16.gmra.mrb[76].mxu1 %v2247_v59  ;;  %v2240_v41 = vmax.f32 %v2224_v27, 0.0 }
 0x3ff   : > { %v2223_v25 = vadd.f32 %v3401_v39, %v5375_v9  ;;  %v2238_v17 = vmax.f32 %v2222_v43, 0.0  ;;  %v3735_v43 = vld [vmem:[%s4727_s30 + $0x58] sm:$0xff] }
 0x400   : > { %v2241_v1 = vmax.f32 %v2225_v13, 0.0 }
 0x401   : > { %v2239_v44 = vmax.f32 %v2223_v25, 0.0  ;;  %v3736_v25 = vld [vmem:[%s4727_s30 + $0x48] sm:$0xff] }
 0x402   : > { %v2249_v45 = vpack.c.bf16 %v2241_v1, %v2240_v41 }
 0x403   : > { %v2248_v63 = vpack.c.bf16 %v2239_v44, %v2238_v17 }
 0x405   : > { %3334 = vmatprep.mubr.bf16.mxu1 %v2248_v63 }
 0x406   : > { %3335 = vmatmul.mubr.bf16.gmra.mrb[80].mxu1 %v2249_v45 }
 0x4c1   : > { %v3324_v22 = vpop.f32.mrb[68].mxu1 }
 0x4c2   : > { %v2364_v62 = vadd.f32 %v3324_v22, %v5408_v26  ;;  %v2355_v37 = vpop.f32.mrb[69].mxu1 }
 0x4c3   : > { %v2356_v9 = vadd.f32 %v5408_v26, %v2355_v37  ;;  %v3325_v0 = vpop.f32.mrb[70].mxu1  ;;  %v3737_v37 = vld [vmem:[%s4727_s30 + $0x70] sm:$0xff] }
 0x4c4   : > { %v2420_v36 = vadd.f32 %v3725_v55, %v2364_v62  ;;  %v2367_v35 = vadd.f32 %v3325_v0, %v5408_v26  ;;  %v2358_v24 = vpop.f32.mrb[71].mxu1 }
 0x4c5   : > { %v2418_v38 = vadd.f32 %v3726_v21, %v2356_v9  ;;  %v2359_v19 = vadd.f32 %v5408_v26, %v2358_v24 }
 0x4c6   : > { %v2436_v33 = vmax.f32 %v2420_v36, 0.0  ;;  %v2421_v47 = vadd.f32 %v3727_v40, %v2367_v35  ;;  %v3738_v36 = vld [vmem:[%s4727_s30 + $0x60] sm:$0xff]  ;;  %v3740_v40 = vld [vmem:[%s4727_s30 + $0x68] sm:$0xff] }
 0x4c7   : > { %v2434_v53 = vmax.f32 %v2418_v38, 0.0  ;;  %v2419_v29 = vadd.f32 %v3728_v28, %v2359_v19  ;;  %v3739_v38 = vld [vmem:[%s4727_s30 + $0x78] sm:$0xff]  ;;  %s4180_s30 = smov [#allocation17]  }
 0x4c8   : > { %2452 = vst [vmem:[%s5420_s15 + $0x10] sm:$0xff] %v2436_v33  ;;  %v2437_v18 = vmax.f32 %v2421_v47, 0.0  ;;  %s4003_s18 = sshll.u32 %s4180_s30, 4  ;;  %s4004_s18 = int_to_ptr.vmem [resolvable:$false] %s4003_s18 }
 0x4c9   : > { %2450 = vst [vmem:[%s5420_s15] sm:$0xff] %v2434_v53  ;;  %v2435_v61 = vmax.f32 %v2419_v29, 0.0  ;;  %v3328_v10 = vpop.f32.mrb[72].mxu1  ;;  %s4005_s10 = scalar_lea.vmem %s4004_s18, 4096  ;;  %p4006_p5 = scmp.lt.s32.totalorder %s5462_s16, %s4004_s18 }
 0x4ca   : > { %2453 = vst [vmem:[%s5420_s15 + $0x18] sm:$0xff] %v2437_v18  ;;  %v2380_v31 = vadd.f32 %v3328_v10, %v5408_v26  ;;  %v2371_v57 = vpop.f32.mrb[73].mxu1  ;;  %p4007_p10 = scmp.lt.s32.totalorder %s4005_s10, %s3999_s13 }
 0x4cb   : > { %2451 = vst [vmem:[%s5420_s15 + $0x8] sm:$0xff] %v2435_v61  ;;  %v2372_v50 = vadd.f32 %v5408_v26, %v2371_v57  ;;  %v3329_v4 = vpop.f32.mrb[74].mxu1 }
 0x4cc   : > { %v2424_v54 = vadd.f32 %v3729_v48, %v2380_v31  ;;  %v2383_v60 = vadd.f32 %v3329_v4, %v5408_v26  ;;  %v2374_v11 = vpop.f32.mrb[75].mxu1  ;;  %p4008_p0 = por %p4007_p10, %p4006_p5 }
 0x4cd   : > { %v2422_v49 = vadd.f32 %v3730_v42, %v2372_v50  ;;  %v2375_v8 = vadd.f32 %v5408_v26, %v2374_v11 }
 0x4ce   : > { %v2440_v3 = vmax.f32 %v2424_v54, 0.0  ;;  %v2425_v16 = vadd.f32 %v3731_v34, %v2383_v60  ;;  %p4009_p2 = pnand %p4008_p0, %p4002_p1 }
 0x4cf   : > { %v2438_v20 = vmax.f32 %v2422_v49, 0.0  ;;  %v2423_v15 = vadd.f32 %v3732_v51, %v2375_v8 }
 0x4d0   : > { %2456 = vst [vmem:[%s5420_s15 + $0x30] sm:$0xff] %v2440_v3  ;;  %v2441_v6 = vmax.f32 %v2425_v16, 0.0 }
 0x4d1   : > { %2454 = vst [vmem:[%s5420_s15 + $0x20] sm:$0xff] %v2438_v20  ;;  %v2439_v23 = vmax.f32 %v2423_v15, 0.0  ;;  %v3332_v7 = vpop.f32.mrb[76].mxu1 }
 0x4d2   : > { %2457 = vst [vmem:[%s5420_s15 + $0x38] sm:$0xff] %v2441_v6  ;;  %v2396_v32 = vadd.f32 %v3332_v7, %v5408_v26  ;;  %v2387_v46 = vpop.f32.mrb[77].mxu1 }
 0x4d3   : > { %2455 = vst [vmem:[%s5420_s15 + $0x28] sm:$0xff] %v2439_v23  ;;  %v2388_v2 = vadd.f32 %v5408_v26, %v2387_v46  ;;  %v3333_v30 = vpop.f32.mrb[78].mxu1 }
 0x4d4   : > { %v2428_v59 = vadd.f32 %v3733_v5, %v2396_v32  ;;  %v2399_v58 = vadd.f32 %v3333_v30, %v5408_v26  ;;  %v2390_v52 = vpop.f32.mrb[79].mxu1 }
 0x4d5   : > { %v2426_v27 = vadd.f32 %v3734_v56, %v2388_v2  ;;  %v2391_v14 = vadd.f32 %v5408_v26, %v2390_v52 }
 0x4d6   : > { %v2444_v12 = vmax.f32 %v2428_v59, 0.0  ;;  %v2429_v39 = vadd.f32 %v3735_v43, %v2399_v58 }
 0x4d7   : > { %v2442_v13 = vmax.f32 %v2426_v27, 0.0  ;;  %v2427_v41 = vadd.f32 %v3736_v25, %v2391_v14 }
 0x4d8   : > { %2460 = vst [vmem:[%s5420_s15 + $0x50] sm:$0xff] %v2444_v12  ;;  %v2445_v1 = vmax.f32 %v2429_v39, 0.0 }
 0x4d9   : > { %2458 = vst [vmem:[%s5420_s15 + $0x40] sm:$0xff] %v2442_v13  ;;  %v2443_v17 = vmax.f32 %v2427_v41, 0.0  ;;  %v3336_v44 = vpop.f32.mrb[80].mxu1 }
 0x4da   : > { %2461 = vst [vmem:[%s5420_s15 + $0x58] sm:$0xff] %v2445_v1  ;;  %v2412_v45 = vadd.f32 %v3336_v44, %v5408_v26  ;;  %v2403_v63 = vpop.f32.mrb[81].mxu1 }
 0x4db   : > { %2459 = vst [vmem:[%s5420_s15 + $0x48] sm:$0xff] %v2443_v17  ;;  %v2404_v22 = vadd.f32 %v5408_v26, %v2403_v63  ;;  %v3337_v62 = vpop.f32.mrb[82].mxu1 }
 0x4dc   : > { %v2432_v9 = vadd.f32 %v3737_v37, %v2412_v45  ;;  %v2415_v0 = vadd.f32 %v3337_v62, %v5408_v26  ;;  %v2406_v55 = vpop.f32.mrb[83].mxu1 }
 0x4dd   : > { %v2430_v35 = vadd.f32 %v3738_v36, %v2404_v22  ;;  %v2407_v24 = vadd.f32 %v5408_v26, %v2406_v55 }
 0x4de   : > { %v2448_v21 = vmax.f32 %v2432_v9, 0.0  ;;  %v2433_v19 = vadd.f32 %v3739_v38, %v2415_v0 }
 0x4df   : > { %v2446_v33 = vmax.f32 %v2430_v35, 0.0  ;;  %v2431_v47 = vadd.f32 %v3740_v40, %v2407_v24 }
 0x4e0   : > { %2464 = vst [vmem:[%s5420_s15 + $0x70] sm:$0xff] %v2448_v21  ;;  %v2449_v53 = vmax.f32 %v2433_v19, 0.0 }
 0x4e1   : > { %2462 = vst [vmem:[%s5420_s15 + $0x60] sm:$0xff] %v2446_v33  ;;  %v2447_v26 = vmax.f32 %v2431_v47, 0.0 }
 0x4e2   : > { %2465 = vst [vmem:[%s5420_s15 + $0x78] sm:$0xff] %v2449_v53 }
 0x4e3   : > { %2463 = vst [vmem:[%s5420_s15 + $0x68] sm:$0xff] %v2447_v26 }
 0x4e4   : > { %4012 = shalt.err (!%p4009_p2)
}
 0x4e5   : > { %s4013_s23 = scalar_lea.hbm %s5468_s2, 2048  ;;  %s4017_s15 = scalar_lea.hbm %s5708_s4, 8192 }
 0x4e6   : > { %p4014_p6 = scmp.ne.s32.totalorder %s5468_s2, %s4013_s23  ;;  %p4018_p3 = scmp.lt.u32.totalorder %s5468_s2, %s5708_s4 }
 0x4e7   : > { %p4019_p9 = scmp.lt.u32.totalorder %s4017_s15, %s4013_s23  ;;  %p4021_p7 = scmp.lt.u32.totalorder %s4013_s23, %s5468_s2 }
 0x4e8   : > { %p4015_p8 = pnand %p4014_p6, %p5709_p12 }
 0x4e9   : > { %p4020_p11 = por %p4019_p9, %p4018_p3 }
 0x4ea   : > { %p4016_p4 = pneg %p4015_p8 }
 0x4eb   : > { %p4022_p13 = por %p4021_p7, %p4020_p11 }
 0x4ed   : > { %p4023_p1 = pnand %p4022_p13, %p4016_p4 }
 0x4ef   : > { %4026 = shalt.err (!%p4023_p1)
}
 0x4f0   : > { %s4181_s27 = smov 128   ;;  %s4182_s8 = smov 8  }
 0x4f1   : > { %3464 = dma.vmem_to_hbm [thread:$0]  (%p5709_p12), %s5462_s16, 2048, %s5468_s2, %s2467_s3, %s4181_s27, %s4181_s27, %s4182_s8  }
 0x4f2 PF: > { %s5710_s24 = sld [smem:[#allocation29_spill]]  ;;  %p3512_p5 = scmp.ge.s32.totalorder %s4165_s22, 2 }
 0x4f3   : > { %p5711_p10 = scmp.ne.s32.totalorder %s5636_s11, 0 }
 0x4f5   : > { %p3496_p0 = pnand %p3512_p5, %p5711_p10 }
 0x4f8   : > { %s2498_s1 = sand.u32 1, %s5710_s24  }
 0x4f9   : > { %s2499_s7 = scalar_lea.sflag [#allocation4], %s2498_s1 }
 0x4fa   : > { %4108 = dma.done.wait (!%p3496_p0), %s2499_s7, 2048  }
 0x4fb   : > { %4110 = vsyncadd (!%p3496_p0), %s2499_s7, 4294965248  ;;  %s31_s22 = sadd.s32 1, %s4165_s22   ;;  %s5713_s30 = sld [smem:[#allocation26_spill]] }
 0x4fc   : > { %p5501_p2 = scmp.ge.s32.totalorder %s31_s22, 6   ;;  %s5714_s10 = sld [smem:[#allocation27_spill]] }
 0x4fd   : > { %s5715_s12 = sld [smem:[#allocation28_spill]]  ;;  %s5716_s15 = sld [smem:[#allocation30_spill]] }
 0x4fe   : > { %s5717_s29 = sld [smem:[#allocation34_spill]]  ;;  %s5718_s2 = sld [smem:[#allocation35_spill]] }
 0x4ff   : > { %s5720_s11 = smov %s5744_s25  ;;  %s5721_s13 = smov %s4133_s14 }
 0x500   : > { %s5722_s14 = smov %s4449_s5  ;;  %s5723_s16 = smov %s4145_s17 }
 0x501   : > { %s5724_s17 = smov %s4569_s19  ;;  %s5725_s18 = smov %s4157_s20 }
 0x502   : > { %s5726_s19 = smov %s4161_s21  ;;  %30 = sbr.rel (!%p5501_p2) target bundleno = 26 (0x1a), region = 151 }
 0x504   : > { %s5727_s20 = smov %s5717_s29  ;;  %s5728_s21 = smov %s5718_s2 }
 0x509   :  { %2504 = vsyncpa [#allocation3], 1 }
 0x50a   :  { %2506 = vsyncpa [#allocation3 + $0x1], 1 }
 0x50b   :  { %2507 = vsyncpa [#allocation6], 1 }
 0x50c   :  { %2509 = vsyncpa [#allocation6 + $0x1], 1 }
 0x50d   :  { %2510 = vsyncpa [#allocation9], 1 }
 0x50e   :  { %2511 = vsyncpa [#allocation12], 1 }
 0x50f   :  { %2512 = vsyncpa [#allocation15], 1 }
 0x510   :  { %2513 = vsyncpa [#allocation4], 1 }
 0x511   :  { %2515 = vsyncpa [#allocation4 + $0x1], 1 }

// kernel: tpu_custom_call.1
= control target key start
LH: loop header
LB: loop body
LE: loop exit
PB: predicated region body
PF: predicated region fallthrough
CT: control target
= control target key end

     0   :  { %s5548_s0 = inlined_call_operand.hbm [shape: f32[2,16,16,128], index: 0, kind: input, shape index: {}]   ;;  %s5549_s1 = inlined_call_operand.hbm [shape: f32[2,16,16,128], index: 1, kind: input, shape index: {}]   ;;  %s5550_s2 = inlined_call_operand.hbm [shape: f32[2,16,16,128], index: 2, kind: input, shape index: {}]   ;;  %s5551_s3 = inlined_call_operand.hbm [shape: bf16[128,128], index: 3, kind: input, shape index: {}]   ;;  %s5552_s4 = inlined_call_operand.hbm [shape: bf16[3,384,128], index: 4, kind: input, shape index: {}]   ;;  %s5553_s5 = inlined_call_operand.hbm [shape: bf16[128,128], index: 5, kind: input, shape index: {}]   ;;  %s5554_s6 = inlined_call_operand.hbm [shape: f32[1,128], index: 6, kind: input, shape index: {}]   ;;  %s5555_s7 = inlined_call_operand.hbm [shape: f32[1,128], index: 7, kind: input, shape index: {}]   ;;  %s5556_s8 = inlined_call_operand.hbm [shape: f32[1,128], index: 8, kind: input, shape index: {}]   ;;  %s5557_s9 = inlined_call_operand.hbm [shape: f32[2,16,16,128], index: 9, kind: output, shape index: {}]  }
   0x1   :  { %5588 = sst [smem:[#allocation38_spill]] %s5548_s0 }
   0x2   :  { %5589 = sst [smem:[#allocation39_spill]] %s5549_s1 }
   0x3   :  { %5590 = sst [smem:[#allocation40_spill]] %s5550_s2 }
   0x4   :  { %5591 = sst [smem:[#allocation41_spill]] %s5551_s3 }
   0x5   :  { %5592 = sst [smem:[#allocation42_spill]] %s5552_s4 }
   0x6   :  { %5593 = sst [smem:[#allocation43_spill]] %s5553_s5 }
   0x7   :  { %5594 = sst [smem:[#allocation44_spill]] %s5554_s6 }
   0x8   :  { %5595 = sst [smem:[#allocation45_spill]] %s5555_s7 }
   0x9   :  { %5596 = sst [smem:[#allocation46_spill]] %s5556_s8 }
   0xa   :  { %5597 = sst [smem:[#allocation47_spill]] %s5557_s9 }
   0xb   :  { %14 = vsyncpa [#allocation3], 0 }
   0xc   :  { %16 = vsyncpa [#allocation3 + $0x1], 0 }
   0xd   :  { %17 = vsyncpa [#allocation6], 0 }
   0xe   :  { %19 = vsyncpa [#allocation6 + $0x1], 0 }
   0xf   :  { %20 = vsyncpa [#allocation9], 0 }
  0x10   :  { %21 = vsyncpa [#allocation12], 0 }
  0x11   :  { %22 = vsyncpa [#allocation15], 0 }
  0x12   :  { %23 = vsyncpa [#allocation4], 0 }
  0x13   :  { %25 = vsyncpa [#allocation4 + $0x1], 0  ;;  %s4233_s30 = smov 0   ;;  %s4235_s10 = smov 0  }
  0x14   :  { %s4237_s11 = smov 0   ;;  %s4239_s12 = smov 0  }
  0x15   :  { %s4241_s13 = smov 0   ;;  %s4243_s14 = smov 0  }
  0x16   :  { %s4245_s15 = smov 0   ;;  %s4247_s16 = smov 0  }
  0x17   :  { %s4249_s17 = smov 0   ;;  %s4251_s18 = smov 0  }
  0x18   :  { %s4253_s19 = smov 0   ;;  %s4255_s20 = smov 0  }
  0x19   :  { %s4257_s21 = smov 0   ;;  %s4259_s22 = smov 0  }
  0x1a LB: > { %5598 = sst [smem:[#allocation25_spill]] %s4113_s30  ;;  %s4304_s23 = sadd.s32 4294967295, %s4165_s22   ;;  %s4165_s22 = sphi %s4259_s22, %s31_s22   ;;  %s4161_s21 = sphi %s4257_s21, %s5728_s21   ;;  %s4157_s20 = sphi %s4255_s20, %s5727_s20   ;;  %s4153_s19 = sphi %s4253_s19, %s5726_s19   ;;  %s4149_s18 = sphi %s4251_s18, %s5725_s18   ;;  %s4145_s17 = sphi %s4249_s17, %s5724_s17   ;;  %s4141_s16 = sphi %s4247_s16, %s5723_s16   ;;  %s4137_s15 = sphi %s4245_s15, %s5716_s15   ;;  %s4133_s14 = sphi %s4243_s14, %s5722_s14   ;;  %s4129_s13 = sphi %s4241_s13, %s5721_s13   ;;  %s4125_s12 = sphi %s4239_s12, %s5715_s12   ;;  %s4121_s11 = sphi %s4237_s11, %s5720_s11   ;;  %s4117_s10 = sphi %s4235_s10, %s5714_s10   ;;  %s4113_s30 = sphi %s4233_s30, %s5713_s30  }
  0x1b   : > { %5599 = sst [smem:[#allocation26_spill]] %s4117_s10  ;;  %p2687_p0 = scmp.ge.s32.totalorder %s4165_s22, 1 }
  0x1c   : > { %5600 = sst [smem:[#allocation27_spill]] %s4121_s11  ;;  %p5566_p1 = scmp.eq.s32.totalorder %s4304_s23, 0 }
  0x1d   : > { %5601 = sst [smem:[#allocation28_spill]] %s4129_s13  ;;  %p302_p2 = scmp.lt.s32.totalorder %s4165_s22, 5 }
  0x1e   : > { %5602 = sst [smem:[#allocation29_spill]] %s4137_s15  ;;  %s4167_s25 = smov [#allocation8]  }
  0x1f   : > { %5603 = sst [smem:[#allocation30_spill]] %s4141_s16  ;;  %p4309_p3 = pnand %p2687_p0, %p302_p2 }
  0x20   : > { %5604 = sst [smem:[#allocation31_spill]] %s4149_s18  ;;  %s314_s26 = sshll.u32 %s4167_s25, 4  ;;  %s4313_s26 = int_to_ptr.vmem [resolvable:$true] %s314_s26 }
  0x21   : > { %5605 = sst [smem:[#allocation32_spill]] %s4153_s19  ;;  %p3466_p4 = pneg %p4309_p3 }
  0x22   : > { %s5606_s24 = scalar_select %p4309_p3, 1, 0 }
  0x23   : > { %p4319_p5 = pnand %p3466_p4, %p5566_p1  ;;  %s4168_s28 = smov [#allocation11]  }
  0x24   : > { %5607 = sst [smem:[#allocation33_spill]] %s5606_s24  ;;  %s340_s29 = sshll.u32 %s4168_s28, 4  ;;  %s4323_s29 = int_to_ptr.vmem [resolvable:$true] %s340_s29 }
  0x25   : > { %s5608_s27 = scalar_select %p4319_p5, 1, 0 }
  0x26   : > { %s4169_s9 = smov [#allocation14]   ;;  %s5609_s3 = sld [smem:[#allocation41_spill]] }
  0x27   : > { %s4325_s19 = sshll.u32 %s4169_s9, 4  ;;  %p4335_p7 = pneg %p4319_p5  ;;  %s366_s19 = int_to_ptr.vmem [resolvable:$true] %s4325_s19 }
  0x2c   : > { %s3741_s25 = scalar_lea.hbm %s5609_s3, 1024 }
  0x2d   : > { %p3742_p6 = scmp.ne.s32.totalorder %s5609_s3, %s3741_s25  ;;  %p3748_p10 = scmp.lt.u32.totalorder %s3741_s25, %s5609_s3 }
  0x2f   : > { %p3744_p8 = pnand %p4335_p7, %p3742_p6 }
  0x31   : > { %p3745_p9 = pneg %p3744_p8 }
  0x33   : > { %p3750_p11 = pnand %p3748_p10, %p3745_p9 }
  0x35   : > { %3753 = shalt.err (!%p3750_p11)
}
  0x36   : > { %s3754_s2 = scalar_lea.vmem %s4313_s26, 1024  ;;  %p3762_p2 = scmp.lt.s32.totalorder %s4313_s26, %s4313_s26 }
  0x37   : > { %p3755_p12 = scmp.ne.s32.totalorder %s4313_s26, %s3754_s2  ;;  %p3763_p4 = scmp.lt.s32.totalorder %s3754_s2, %s3754_s2 }
  0x39   : > { %p3757_p13 = pnand %p3755_p12, %p4335_p7  ;;  %p3764_p6 = por %p3763_p4, %p3762_p2 }
  0x3b   : > { %p3758_p0 = pneg %p3757_p13 }
  0x3d   : > { %p3765_p8 = pnand %p3764_p6, %p3758_p0 }
  0x3f   : > { %3768 = shalt.err (!%p3765_p8)
}
  0x40   : > { %s5568_s30 = smov 64   ;;  %s5569_s18 = smov 4  }
  0x41   : > { %3469 = dma.hbm_to_vmem [thread:$0]  (!%p4319_p5), %s5609_s3, 1024, %s4313_s26, [#allocation9], %s5568_s30, %s5568_s30, %s5569_s18  }
  0x42   : > { %s5611_s5 = sld [smem:[#allocation43_spill]] }
  0x48   : > { %s3769_s2 = scalar_lea.hbm %s5611_s5, 1024 }
  0x49   : > { %p3770_p9 = scmp.ne.s32.totalorder %s5611_s5, %s3769_s2  ;;  %p3776_p12 = scmp.lt.u32.totalorder %s3769_s2, %s5611_s5 }
  0x4b   : > { %p3772_p10 = pnand %p3770_p9, %p4335_p7 }
  0x4d   : > { %p3773_p11 = pneg %p3772_p10 }
  0x4f   : > { %p3778_p13 = pnand %p3776_p12, %p3773_p11 }
  0x51   : > { %3781 = shalt.err (!%p3778_p13)
}
  0x52   : > { %s3782_s26 = scalar_lea.vmem %s4323_s29, 1024  ;;  %p3790_p6 = scmp.lt.s32.totalorder %s4323_s29, %s4323_s29 }
  0x53   : > { %p3783_p0 = scmp.ne.s32.totalorder %s4323_s29, %s3782_s26  ;;  %p3791_p8 = scmp.lt.s32.totalorder %s3782_s26, %s3782_s26 }
  0x55   : > { %p3785_p2 = pnand %p3783_p0, %p4335_p7  ;;  %p3792_p9 = por %p3791_p8, %p3790_p6 }
  0x57   : > { %p3786_p4 = pneg %p3785_p2 }
  0x59   : > { %p3793_p10 = pnand %p3792_p9, %p3786_p4 }
  0x5b   : > { %3796 = shalt.err (!%p3793_p10)
}
  0x5c   : > { %3475 = dma.hbm_to_vmem [thread:$0]  (!%p4319_p5), %s5611_s5, 1024, %s4323_s29, [#allocation12], %s5568_s30, %s5568_s30, %s5569_s18  }
  0x5d   : > { %s5612_s7 = sld [smem:[#allocation45_spill]] }
  0x63   : > { %s3797_s24 = scalar_lea.hbm %s5612_s7, 16 }
  0x64   : > { %p3798_p11 = scmp.ne.s32.totalorder %s5612_s7, %s3797_s24  ;;  %p3804_p0 = scmp.lt.u32.totalorder %s3797_s24, %s5612_s7 }
  0x66   : > { %p3800_p12 = pnand %p3798_p11, %p4335_p7 }
  0x68   : > { %p3801_p13 = pneg %p3800_p12 }
  0x6a   : > { %p3806_p2 = pnand %p3804_p0, %p3801_p13 }
  0x6c   : > { %3809 = shalt.err (!%p3806_p2)
}
  0x6d   : > { %s3810_s26 = scalar_lea.vmem %s366_s19, 16  ;;  %s3817_s29 = scalar_lea.vmem %s366_s19, 32 }
  0x6e   : > { %p3811_p4 = scmp.ne.s32.totalorder %s366_s19, %s3810_s26  ;;  %p3818_p9 = scmp.lt.s32.totalorder %s366_s19, %s366_s19 }
  0x6f   : > { %p3819_p10 = scmp.lt.s32.totalorder %s3817_s29, %s3810_s26 }
  0x70   : > { %p3813_p6 = pnand %p3811_p4, %p4335_p7 }
  0x71   : > { %p3820_p1 = por %p3819_p10, %p3818_p9 }
  0x72   : > { %p3814_p8 = pneg %p3813_p6 }
  0x74   : > { %p3821_p3 = pnand %p3820_p1, %p3814_p8 }
  0x76   : > { %3824 = shalt.err (!%p3821_p3)
}
  0x77   : > { %3481 = dma.hbm_to_vmem [thread:$0]  (!%p4319_p5), %s5612_s7, 16, %s366_s19, [#allocation15]  }
  0x78   : > { %s40_s15 = sadd.s32 1, %s4157_s20  ;;  %s43_s16 = sadd.s32 1, %s4161_s21 }
  0x79   : > { %p41_p11 = scmp.ge.s32.totalorder %s40_s15, 2  ;;  %p5577_p12 = scmp.eq.s32.totalorder %s4165_s22, 0 }
  0x7a   : > { %s2681_s24 = sshll.u32 %s4157_s20, 3  ;;  %s88_s9 = sadd.s32 1, %s4133_s14 }
  0x7b   : > { %s5730_s15 = smov (%p41_p11, %s40_s15), 0  ;;  %s5732_s16 = smov (!%p41_p11, %s43_s16), %s4161_s21 }
  0x7c   : > { %5613 = sst [smem:[#allocation34_spill]] %s5730_s15  ;;  %s48_s25 = ssub.s32 %s4157_s20, %s5730_s15 }
  0x7d   : > { %s2682_s28 = sadd.s32 4294967295, %s2681_s24  ;;  %p45_p1 = scmp.ge.s32.totalorder %s5732_s16, 2 }
  0x7e   : > { %p77_p3 = scmp.gt.s32.totalorder %s2682_s28, 0  ;;  %s2683_s19 = sshll.u32 %s5730_s15, 3 }
  0x7f   : > { %s5734_s16 = smov (%p45_p1, %s5732_s16), 0  ;;  %s2684_s26 = sadd.s32 4294967295, %s2683_s19 }
  0x80   : > { %5614 = sst [smem:[#allocation35_spill]] %s5734_s16  ;;  %s5736_s28 = smov (!%p77_p3, %s2682_s28), 0 }
  0x81   : > { %s4419_s2 = ssub.s32 %s4161_s21, %s5734_s16  ;;  %p81_p13 = scmp.gt.s32.totalorder %s2684_s26, 0 }
  0x82   : > { %5615 = sst [smem:[#allocation36_spill]] %s4419_s2  ;;  %s4422_s29 = sor.u32 %s48_s25, %s4419_s2 }
  0x83   : > { %p95_p2 = scmp.ne.s32.totalorder %s4133_s14, %s4129_s13  ;;  %s5738_s26 = smov (!%p81_p13, %s2684_s26), 0 }
  0x84   : > { %p101_p6 = scmp.ne.s32.totalorder %s4129_s13, %s4125_s12  ;;  %s84_s11 = ssub.s32 %s5736_s28, %s5738_s26 }
  0x85   : > { %p4429_p4 = por %p95_p2, %p5577_p12  ;;  %s4435_s30 = sadd.s32 8, %s2681_s24 }
  0x86   : > { %s85_s25 = sor.u32 %s84_s11, %s4419_s2  ;;  %p5617_p8 = scmp.eq.s32.totalorder %s4304_s23, 0 }
  0x87   : > { %p86_p10 = scmp.eq.s32.totalorder %s85_s25, 0  ;;  %s4445_s3 = sadd.s32 8, %s2683_s19 }
  0x88   : > { %p4440_p9 = por %p101_p6, %p5617_p8  ;;  %p5576_p1 = scmp.lt.s32.totalorder %s4165_s22, 4 }
  0x89   : > { %s4449_s5 = scalar_select %p86_p10, %s4133_s14, %s88_s9  }
  0x8a   : > { %s5618_s18 = scalar_select %p4440_p9, 1, 0 }
  0x8b   : > { %s4453_s12 = sshll.u32 %s4161_s21, 5  ;;  %s411_s24 = sand.u32 1, %s4165_s22  }
  0x8c   : > { %5619 = sst [smem:[#allocation37_spill]] %s5618_s18  ;;  %s413_s26 = sand.u32 1, %s4133_s14  }
  0x8d   : > { %s2700_s11 = sshll.u32 %s413_s26, 4  ;;  %s2703_s7 = sshll.u32 %s5736_s28, 1 }
  0x8e   : > { %s425_s16 = sadd.s32 %s2703_s7, %s4453_s12  ;;  %s415_s15 = scalar_lea.vmem [#allocation5], %s2700_s11 }
  0x8f   : > { %s428_s25 = sshll.u32 %s415_s15, 4  ;;  %s2705_s18 = sshll.u32 %s425_s16, 7  ;;  %s4458_s25 = int_to_ptr.vmem [resolvable:$true] %s428_s25 }
  0x90   : > { %s5620_s1 = sld [smem:[#allocation39_spill]]  ;;  %p4469_p13 = pnand %p5576_p1, %p4429_p4 }
  0x91   : > { %s4172_s7 = smov [#allocation10]   ;;  %s4475_s16 = scalar_lea.sflag [#allocation6], %s411_s24 }
  0x92   : > { %s4473_s15 = sshll.u32 %s4172_s7, 4  ;;  %p3827_p6 = pneg %p4469_p13  ;;  %s328_s15 = int_to_ptr.vmem [resolvable:$true] %s4473_s15 }
  0x96   : > { %s4463_s2 = scalar_lea.hbm %s5620_s1, %s2705_s18  ;;  %s3830_s0 = scalar_lea.hbm %s5620_s1, 8192 }
  0x97   : > { %s3825_s13 = scalar_lea.hbm %s4463_s2, 256  ;;  %p3831_p4 = scmp.lt.u32.totalorder %s4463_s2, %s5620_s1 }
  0x98   : > { %p3826_p2 = scmp.ne.s32.totalorder %s4463_s2, %s3825_s13  ;;  %p3832_p3 = scmp.lt.u32.totalorder %s3830_s0, %s3825_s13 }
  0x99   : > { %p3834_p1 = scmp.lt.u32.totalorder %s3825_s13, %s4463_s2 }
  0x9a   : > { %p3828_p8 = pnand %p3827_p6, %p3826_p2  ;;  %p3833_p11 = por %p3832_p3, %p3831_p4 }
  0x9c   : > { %p3829_p10 = pneg %p3828_p8  ;;  %p3835_p12 = por %p3834_p1, %p3833_p11 }
  0x9e   : > { %p3836_p0 = pnand %p3835_p12, %p3829_p10 }
  0xa0   : > { %3839 = shalt.err (!%p3836_p0)
}
  0xa1   : > { %s3840_s24 = scalar_lea.vmem %s4458_s25, 256  ;;  %s4173_s19 = smov [#allocation5]  }
  0xa2   : > { %p3841_p2 = scmp.ne.s32.totalorder %s4458_s25, %s3840_s24  ;;  %s3845_s7 = sshll.u32 %s4173_s19, 4  ;;  %s3846_s7 = int_to_ptr.vmem [resolvable:$false] %s3845_s7 }
  0xa3   : > { %s3847_s18 = scalar_lea.vmem %s3846_s7, 512  ;;  %p3848_p5 = scmp.lt.s32.totalorder %s4458_s25, %s3846_s7 }
  0xa4   : > { %p3843_p8 = pnand %p3841_p2, %p3827_p6  ;;  %p3849_p3 = scmp.lt.s32.totalorder %s3847_s18, %s3840_s24 }
  0xa6   : > { %p3844_p9 = pneg %p3843_p8  ;;  %p3850_p4 = por %p3849_p3, %p3848_p5 }
  0xa8   : > { %p3851_p11 = pnand %p3850_p4, %p3844_p9 }
  0xaa   : > { %3854 = shalt.err (!%p3851_p11)
}
  0xab   : > { %s5581_s13 = smov 128   ;;  %s5583_s28 = smov 8  }
  0xac   : > { %3491 = dma.hbm_to_vmem [thread:$0]  (!%p4469_p13), %s4463_s2, 256, %s4458_s25, %s4475_s16, %s5581_s13, %s5581_s13, %s5583_s28  }
  0xad   : > { %s4176_s0 = smov [#allocation13]   ;;  %s5622_s4 = sld [smem:[#allocation42_spill]] }
  0xae   : > { %s354_s26 = sshll.u32 %s4176_s0, 4  ;;  %s355_s26 = int_to_ptr.vmem [resolvable:$true] %s354_s26 }
  0xb3   : > { %s3855_s19 = scalar_lea.hbm %s5622_s4, 9216 }
  0xb4   : > { %p3856_p5 = scmp.ne.s32.totalorder %s5622_s4, %s3855_s19  ;;  %p3862_p9 = scmp.lt.u32.totalorder %s3855_s19, %s5622_s4 }
  0xb6   : > { %p3858_p12 = pnand %p3856_p5, %p4335_p7 }
  0xb8   : > { %p3859_p0 = pneg %p3858_p12 }
  0xba   : > { %p3864_p1 = pnand %p3862_p9, %p3859_p0 }
  0xbc   : > { %3867 = shalt.err (!%p3864_p1)
}
  0xbd   : > { %s3868_s2 = scalar_lea.vmem %s328_s15, 9216  ;;  %p3876_p2 = scmp.lt.s32.totalorder %s328_s15, %s328_s15 }
  0xbe   : > { %p3869_p13 = scmp.ne.s32.totalorder %s328_s15, %s3868_s2  ;;  %p3877_p8 = scmp.lt.s32.totalorder %s3868_s2, %s3868_s2 }
  0xc0   : > { %p3871_p6 = pnand %p3869_p13, %p4335_p7  ;;  %p3878_p3 = por %p3877_p8, %p3876_p2 }
  0xc2   : > { %p3872_p10 = pneg %p3871_p6 }
  0xc4   : > { %p3879_p4 = pnand %p3878_p3, %p3872_p10 }
  0xc6   : > { %3882 = shalt.err (!%p3879_p4)
}
  0xc7   : > { %p5623_p11 = scmp.ne.s32.totalorder %s5608_s27, 0  ;;  %s5624_s25 = smov 4  }
  0xc8   : > { %s5625_s0 = smov 64   ;;  %s5626_s6 = sld [smem:[#allocation44_spill]] }
  0xc9   : > { %3472 = dma.hbm_to_vmem [thread:$0]  (!%p5623_p11), %s5622_s4, 9216, %s328_s15, [#allocation9], %s5625_s0, %s5625_s0, %s5624_s25  }
  0xce   : > { %s3883_s7 = scalar_lea.hbm %s5626_s6, 16 }
  0xcf   : > { %p3884_p5 = scmp.ne.s32.totalorder %s5626_s6, %s3883_s7  ;;  %p3890_p9 = scmp.lt.u32.totalorder %s3883_s7, %s5626_s6 }
  0xd1   : > { %p3886_p12 = pnand %p3884_p5, %p4335_p7 }
  0xd3   : > { %p3887_p0 = pneg %p3886_p12 }
  0xd5   : > { %p3892_p1 = pnand %p3890_p9, %p3887_p0 }
  0xd7   : > { %3895 = shalt.err (!%p3892_p1)
}
  0xd8   : > { %s3896_s1 = scalar_lea.vmem %s355_s26, 16  ;;  %s3903_s15 = scalar_lea.vmem %s355_s26, 32 }
  0xd9   : > { %p3897_p13 = scmp.ne.s32.totalorder %s355_s26, %s3896_s1  ;;  %p3904_p2 = scmp.lt.s32.totalorder %s355_s26, %s355_s26 }
  0xda   : > { %p3905_p8 = scmp.lt.s32.totalorder %s3903_s15, %s3896_s1 }
  0xdb   : > { %p3899_p6 = pnand %p3897_p13, %p4335_p7 }
  0xdc   : > { %p3906_p3 = por %p3905_p8, %p3904_p2 }
  0xdd   : > { %p3900_p10 = pneg %p3899_p6 }
  0xdf   : > { %p3907_p4 = pnand %p3906_p3, %p3900_p10 }
  0xe1   : > { %3910 = shalt.err (!%p3907_p4)
}
  0xe2   : > { %3478 = dma.hbm_to_vmem [thread:$0]  (!%p5623_p11), %s5626_s6, 16, %s355_s26, [#allocation12]  }
  0xe3   : > { %s4177_s13 = smov [#allocation16]   ;;  %s5627_s8 = sld [smem:[#allocation46_spill]] }
  0xe4   : > { %s376_s11 = sshll.u32 %s4177_s13, 4  ;;  %s377_s11 = int_to_ptr.vmem [resolvable:$true] %s376_s11 }
  0xe9   : > { %s3911_s7 = scalar_lea.hbm %s5627_s8, 16 }
  0xea   : > { %p3912_p5 = scmp.ne.s32.totalorder %s5627_s8, %s3911_s7  ;;  %p3918_p9 = scmp.lt.u32.totalorder %s3911_s7, %s5627_s8 }
  0xec   : > { %p3914_p12 = pnand %p3912_p5, %p4335_p7 }
  0xee   : > { %p3915_p0 = pneg %p3914_p12 }
  0xf0   : > { %p3920_p1 = pnand %p3918_p9, %p3915_p0 }
  0xf2   : > { %3923 = shalt.err (!%p3920_p1)
}
  0xf3   : > { %s3924_s26 = scalar_lea.vmem %s377_s11, 16  ;;  %s3931_s15 = scalar_lea.vmem %s377_s11, 32 }
  0xf4   : > { %p3925_p13 = scmp.ne.s32.totalorder %s377_s11, %s3924_s26  ;;  %p3932_p2 = scmp.lt.s32.totalorder %s377_s11, %s377_s11 }
  0xf5   : > { %p3933_p8 = scmp.lt.s32.totalorder %s3931_s15, %s3924_s26 }
  0xf6   : > { %p3927_p6 = pnand %p3925_p13, %p4335_p7 }
  0xf7   : > { %p3934_p3 = por %p3933_p8, %p3932_p2 }
  0xf8   : > { %p3928_p10 = pneg %p3927_p6 }
  0xfa   : > { %p3935_p4 = pnand %p3934_p3, %p3928_p10 }
  0xfc   : > { %3938 = shalt.err (!%p3935_p4)
}
  0xfd   : > { %s5628_s13 = sld [smem:[#allocation30_spill]]  ;;  %s5629_s10 = sld [smem:[#allocation29_spill]] }
  0xfe   : > { %3484 = dma.hbm_to_vmem [thread:$0]  (!%p5623_p11), %s5627_s8, 16, %s377_s11, [#allocation15]  }
  0xff   : > { %s2680_s24 = sadd.s32 4294967294, %s4165_s22   ;;  %s52_s27 = sadd.s32 1, %s4145_s17 }
 0x100   : > { %p5630_p7 = scmp.eq.s32.totalorder %s4422_s29, 0  ;;  %p289_p0 = scmp.eq.s32.totalorder %s4304_s23, 3 }
 0x101   : > { %p295_p9 = scmp.eq.s32.totalorder %s2680_s24, 3  ;;  %p5631_p1 = scmp.eq.s32.totalorder %s4165_s22, 0 }
 0x102   : > { %s4569_s19 = scalar_select %p5630_p7, %s4145_s17, %s52_s27  }
 0x103   : > { %p59_p5 = scmp.ne.s32.totalorder %s4145_s17, %s5628_s13  ;;  %p65_p12 = scmp.ne.s32.totalorder %s5628_s13, %s5629_s10 }
 0x104   : > { %p5633_p6 = scmp.eq.s32.totalorder %s4304_s23, 0  ;;  %s387_s9 = sand.u32 1, %s4145_s17  }
 0x105   : > { %p4578_p13 = por %p5631_p1, %p59_p5  ;;  %p4588_p11 = por %p289_p0, %p59_p5 }
 0x106   : > { %p4584_p10 = por %p5633_p6, %p65_p12  ;;  %p4592_p2 = por %p295_p9, %p65_p12 }
 0x107   : > { %s5635_s29 = scalar_select %p4588_p11, 1, 0 }
 0x108   : > { %s5636_s11 = scalar_select %p4592_p2, 1, 0 }
 0x109   : > { %s2896_s2 = sshll.u32 %s4157_s20, 4  ;;  %s2695_s1 = sshll.u32 %s387_s9, 7 }
 0x10a   : > { %s398_s26 = sadd.s32 %s2896_s2, %s4453_s12  ;;  %s391_s25 = scalar_lea.vmem [#allocation2], %s2695_s1 }
 0x10b   : > { %s2699_s15 = sshll.u32 %s398_s26, 7  ;;  %s401_s0 = sshll.u32 %s391_s25, 4  ;;  %s4604_s0 = int_to_ptr.vmem [resolvable:$true] %s401_s0 }
 0x10c   : > { %s5637_s24 = sld [smem:[#allocation38_spill]]  ;;  %p5638_p8 = scmp.lt.s32.totalorder %s4165_s22, 4 }
 0x10d   : > { %s4614_s2 = scalar_lea.sflag [#allocation3], %s387_s9 }
 0x10e   : > { %p4610_p3 = pnand %p5638_p8, %p4578_p13 }
 0x110   : > { %p3941_p7 = pneg %p4610_p3 }
 0x112   : > { %s4602_s27 = scalar_lea.hbm %s5637_s24, %s2699_s15  ;;  %s3944_s7 = scalar_lea.hbm %s5637_s24, 8192 }
 0x113   : > { %s3939_s1 = scalar_lea.hbm %s4602_s27, 2048  ;;  %p3945_p0 = scmp.lt.u32.totalorder %s4602_s27, %s5637_s24 }
 0x114   : > { %p3940_p4 = scmp.ne.s32.totalorder %s4602_s27, %s3939_s1  ;;  %p3946_p9 = scmp.lt.u32.totalorder %s3944_s7, %s3939_s1 }
 0x115   : > { %p3948_p13 = scmp.lt.u32.totalorder %s3939_s1, %s4602_s27 }
 0x116   : > { %p3942_p5 = pnand %p3941_p7, %p3940_p4  ;;  %p3947_p1 = por %p3946_p9, %p3945_p0 }
 0x118   : > { %p3943_p12 = pneg %p3942_p5  ;;  %p3949_p6 = por %p3948_p13, %p3947_p1 }
 0x11a   : > { %p3950_p8 = pnand %p3949_p6, %p3943_p12 }
 0x11c   : > { %3953 = shalt.err (!%p3950_p8)
}
 0x11d   : > { %s3954_s9 = scalar_lea.vmem %s4604_s0, 2048  ;;  %s4178_s10 = smov [#allocation2]  }
 0x11e   : > { %p3955_p4 = scmp.ne.s32.totalorder %s4604_s0, %s3954_s9  ;;  %s3959_s26 = sshll.u32 %s4178_s10, 4  ;;  %s3960_s26 = int_to_ptr.vmem [resolvable:$false] %s3959_s26 }
 0x11f   : > { %s3961_s15 = scalar_lea.vmem %s3960_s26, 4096  ;;  %p3962_p11 = scmp.lt.s32.totalorder %s4604_s0, %s3960_s26 }
 0x120   : > { %p3957_p5 = pnand %p3955_p4, %p3941_p7  ;;  %p3963_p0 = scmp.lt.s32.totalorder %s3961_s15, %s3954_s9 }
 0x122   : > { %p3958_p2 = pneg %p3957_p5  ;;  %p3964_p9 = por %p3963_p0, %p3962_p11 }
 0x124   : > { %p3965_p1 = pnand %p3964_p9, %p3958_p2 }
 0x126   : > { %3968 = shalt.err (!%p3965_p1)
}
 0x127   : > { %s5640_s1 = smov 8   ;;  %s5641_s7 = smov 128  }
 0x128   : > { %s5642_s25 = sld [smem:[#allocation27_spill]]  ;;  %s5643_s13 = sld [smem:[#allocation26_spill]] }
 0x129   : > { %s5644_s10 = sld [smem:[#allocation25_spill]]  ;;  %s5645_s9 = sld [smem:[#allocation36_spill]] }
 0x12a   : > { %3488 = dma.hbm_to_vmem [thread:$0]  (!%p4610_p3), %s4602_s27, 2048, %s4604_s0, %s4614_s2, %s5641_s7, %s5641_s7, %s5640_s1  }
 0x12b   : > { %p5646_p11 = scmp.lt.s32.totalorder %s4435_s30, 15  ;;  %p5647_p2 = scmp.lt.s32.totalorder %s4445_s3, 15 }
 0x12c   : > { %p5648_p13 = scmp.eq.s32.totalorder %s4165_s22, 0  ;;  %p5650_p4 = scmp.eq.s32.totalorder %s4304_s23, 0 }
 0x12d   : > { %s5740_s30 = smov (!%p5646_p11, %s4435_s30), 15  ;;  %s5742_s3 = smov (!%p5647_p2, %s4445_s3), 15 }
 0x12e   : > { %s124_s28 = sadd.s32 1, %s5642_s25  ;;  %p131_p7 = scmp.ne.s32.totalorder %s5642_s25, %s5643_s13 }
 0x12f   : > { %s120_s26 = ssub.s32 %s5740_s30, %s5742_s3  ;;  %p137_p12 = scmp.ne.s32.totalorder %s5643_s13, %s5644_s10 }
 0x130   : > { %s121_s15 = sor.u32 %s120_s26, %s5645_s9  ;;  %p4659_p6 = por %p131_p7, %p5648_p13 }
 0x131   : > { %p122_p8 = scmp.eq.s32.totalorder %s121_s15, 0  ;;  %p4665_p5 = por %p137_p12, %p5650_p4 }
 0x132   : > { %s440_s27 = sand.u32 1, %s5642_s25   ;;  %s2708_s2 = sshll.u32 %s5740_s30, 1 }
 0x133   : > { %s5651_s0 = scalar_select %p4665_p5, 1, 0 }
 0x134   : > { %s5744_s25 = smov (!%p122_p8, %s5642_s25), %s124_s28  ;;  %s2706_s3 = sshll.u32 %s440_s27, 4 }
 0x135   : > { %s452_s6 = sadd.s32 %s2708_s2, %s4453_s12  ;;  %s5652_s26 = sld [smem:[#allocation40_spill]] }
 0x136   : > { %s2710_s13 = sshll.u32 %s452_s6, 7  ;;  %s442_s15 = scalar_lea.vmem [#allocation7], %s2706_s3 }
 0x137   : > { %s455_s24 = sshll.u32 %s442_s15, 4  ;;  %p5653_p3 = scmp.lt.s32.totalorder %s4165_s22, 4  ;;  %s4679_s24 = int_to_ptr.vmem [resolvable:$true] %s455_s24 }
 0x139   : > { %p4685_p0 = pnand %p5653_p3, %p4659_p6 }
 0x13b   : > { %s4677_s8 = scalar_lea.hbm %s5652_s26, %s2710_s13  ;;  %p3971_p1 = pneg %p4685_p0 }
 0x13c   : > { %s3969_s6 = scalar_lea.hbm %s4677_s8, 256  ;;  %s3974_s27 = scalar_lea.hbm %s5652_s26, 8192 }
 0x13d   : > { %p3970_p9 = scmp.ne.s32.totalorder %s4677_s8, %s3969_s6  ;;  %p3975_p7 = scmp.lt.u32.totalorder %s4677_s8, %s5652_s26 }
 0x13e   : > { %p3976_p12 = scmp.lt.u32.totalorder %s3974_s27, %s3969_s6  ;;  %p3978_p6 = scmp.lt.u32.totalorder %s3969_s6, %s4677_s8 }
 0x13f   : > { %p3972_p11 = pnand %p3971_p1, %p3970_p9 }
 0x140   : > { %p3977_p13 = por %p3976_p12, %p3975_p7 }
 0x141   : > { %p3973_p2 = pneg %p3972_p11 }
 0x142   : > { %p3979_p8 = por %p3978_p6, %p3977_p13 }
 0x144   : > { %p3980_p4 = pnand %p3979_p8, %p3973_p2 }
 0x146   : > { %3983 = shalt.err (!%p3980_p4)
}
 0x147   : > { %s3984_s3 = scalar_lea.vmem %s4679_s24, 256  ;;  %s4179_s13 = smov [#allocation7]  }
 0x148   : > { %p3985_p3 = scmp.ne.s32.totalorder %s4679_s24, %s3984_s3  ;;  %s3989_s10 = sshll.u32 %s4179_s13, 4  ;;  %s3990_s10 = int_to_ptr.vmem [resolvable:$false] %s3989_s10 }
 0x149   : > { %s3991_s9 = scalar_lea.vmem %s3990_s10, 512  ;;  %p3992_p5 = scmp.lt.s32.totalorder %s4679_s24, %s3990_s10 }
 0x14a   : > { %p3987_p9 = pnand %p3985_p3, %p3971_p1  ;;  %p3993_p7 = scmp.lt.s32.totalorder %s3991_s9, %s3984_s3 }
 0x14c   : > { %p3988_p11 = pneg %p3987_p9  ;;  %p3994_p12 = por %p3993_p7, %p3992_p5 }
 0x14e   : > { %p3995_p13 = pnand %p3994_p12, %p3988_p11 }
 0x150   : > { %3998 = shalt.err (!%p3995_p13)
}
 0x151   : > { %3494 = dma.hbm_to_vmem [thread:$0]  (!%p4685_p0), %s4677_s8, 256, %s4679_s24, %s4475_s16, %s5641_s7, %s5641_s7, %s5640_s1  }
 0x152   : > { %s5655_s15 = sld [smem:[#allocation33_spill]] }
 0x158   : > { %p5656_p1 = scmp.ne.s32.totalorder %s5655_s15, 0 }
 0x159   : > { %s5657_s6 = sld [smem:[#allocation30_spill]] (!%p5656_p1) }
 0x15a   : > { %467 = sbr.rel (%p5656_p1) target bundleno = 1266 (0x4f2), region = 56 }
 0x15f   : > { %s4721_s12 = sand.u32 (!%p5656_p1), 1, %s5657_s6  }
 0x160   : > { %s2712_s28 = sshll.u32 (!%p5656_p1), %s4721_s12, 7  ;;  %s470_s27 = scalar_lea.sflag (!%p5656_p1), [#allocation3], %s4721_s12 }
 0x161   : > { %s4727_s30 = scalar_lea.vmem [#allocation2], %s2712_s28 }
 0x162   : > { %4084 = dma.done.wait (%p4584_p10), %s470_s27, 2048  }
 0x163   : > { %4086 = vsyncadd (%p4584_p10), %s470_s27, 4294965248  ;;  %s5658_s8 = sld [smem:[#allocation28_spill]]  ;;  %s5659_s16 = sld [smem:[#allocation37_spill]] }
 0x164   : > { %s478_s24 = sand.u32 1, %s4304_s23  }
 0x165   : > { %s479_s4 = scalar_lea.sflag [#allocation6], %s478_s24 }
 0x169   : > { %s480_s1 = sand.u32 1, %s5658_s8   ;;  %p5660_p5 = scmp.ne.s32.totalorder %s5659_s16, 0 }
 0x16a   : > { %s4735_s7 = sshll.u32 %s480_s1, 4 }
 0x16b   : > { %s482_s2 = scalar_lea.vmem [#allocation5], %s4735_s7 }
 0x16c   : > { %4088 = dma.done.wait (%p5660_p5), %s479_s4, 256  }
 0x16d   : > { %4090 = vsyncadd (%p5660_p5), %s479_s4, 4294967040  ;;  %s5661_s3 = sld [smem:[#allocation26_spill]]  ;;  %p5662_p10 = scmp.ne.s32.totalorder %s5651_s0, 0 }
 0x173   : > { %s489_s13 = sand.u32 1, %s5661_s3  }
 0x174   : > { %s4743_s18 = sshll.u32 %s489_s13, 4 }
 0x175   : > { %s491_s10 = scalar_lea.vmem [#allocation7], %s4743_s18 }
 0x176   : > { %4092 = dma.done.wait (%p5662_p10), %s479_s4, 256  }
 0x177   : > { %4094 = vsyncadd (%p5662_p10), %s479_s4, 4294967040  ;;  %p5663_p0 = scmp.eq.s32.totalorder %s4304_s23, 0 }
 0x179   : > { %4096 = dma.done.wait (%p5663_p0), [#allocation9], 10240   ;;  %p5664_p2 = pmov %p5663_p0 }
 0x17a   : > { %p5665_p6 = pmov %p5663_p0 }
 0x17b   : > { %4098 = vsyncadd (%p5664_p2), [#allocation9], 4294957056 }
 0x17c   : > { %4100 = dma.done.wait (%p5665_p6), [#allocation12], 1040   ;;  %p5666_p8 = pmov %p5663_p0 }
 0x17d   : > { %p5667_p4 = pmov %p5663_p0 }
 0x17e   : > { %4102 = vsyncadd (%p5666_p8), [#allocation12], 4294966256 }
 0x17f   : > { %4104 = dma.done.wait (%p5667_p4), [#allocation15], 32   ;;  %p5668_p3 = pmov %p5663_p0 }
 0x180   : > { %v3637_v0 = vld [vmem:[#allocation8] sm:$0xff]   ;;  %v3638_v1 = vld [vmem:[#allocation8 + $0x8] sm:$0xff]   ;;  %v3639_v2 = vld [vmem:[#allocation8 + $0x10] sm:$0xff]   ;;  %s5669_s23 = sld [smem:[#allocation31_spill]]  ;;  %vm971_vm14 = vcmask 1040384   ;;  %s5420_s15 = scalar_lea.vmem [#allocation17], %s2712_s28 }
 0x181   : > { %4106 = vsyncadd (%p5668_p3), [#allocation15], 4294967264  ;;  %3174 = vmatprep.subr.bf16.mxu0 %v3637_v0  ;;  %3338 = vmatprep.subr.bf16.mxu1 %v3637_v0  ;;  %v3640_v3 = vld [vmem:[#allocation8 + $0x18] sm:$0xff]   ;;  %v571_v4 = vld [vmem:[%s482_s2] sm:$0xff]  ;;  %s5707_s6 = sld [smem:[#allocation32_spill]]  ;;  %s2483_s16 = sshll.u32 %s5420_s15, 4  ;;  %s5462_s16 = int_to_ptr.vmem [resolvable:$true] %s2483_s16 }
 0x182   : > { %3175 = vmatpush3.bf16.msra.mxu0 %v3637_v0  ;;  %3346 = vmatpush3.bf16.msra.mxu1 %v3637_v0  ;;  %v572_v5 = vld [vmem:[%s482_s2 + $0x8] sm:$0xff]  ;;  %v3641_v7 = vld [vmem:[#allocation8 + $0x20] sm:$0xff]   ;;  %v588_v8 = vld [vmem:[%s4727_s30 + $0x70] sm:$0xff]  ;;  %s5708_s4 = sld [smem:[#allocation47_spill]]  ;;  %s2467_s3 = scalar_lea.sflag [#allocation4], %s4721_s12 }
 0x183   : > { %3176 = vmatprep.subr.bf16.mxu0 %v3638_v1  ;;  %3339 = vmatprep.subr.bf16.mxu1 %v3638_v1  ;;  %v573_v6 = vpack.c.bf16 %v572_v5, %v571_v4  ;;  %v589_v9 = vld [vmem:[%s4727_s30 + $0x78] sm:$0xff]  ;;  %v3642_v11 = vld [vmem:[#allocation8 + $0x28] sm:$0xff]   ;;  %v3643_v12 = vld [vmem:[#allocation8 + $0x30] sm:$0xff]   ;;  %s3999_s13 = scalar_lea.vmem %s5462_s16, 2048  ;;  %p5709_p12 = scmp.ne.s32.totalorder %s5635_s29, 0 }
 0x184   : > { %v597_v10 = vpack.c.bf16 %v589_v9, %v588_v8  ;;  %v3644_v13 = vld [vmem:[#allocation8 + $0x38] sm:$0xff]   ;;  %v574_v14 = vld [vmem:[%s4727_s30] sm:$0xff]  ;;  %v575_v15 = vld [vmem:[%s4727_s30 + $0x8] sm:$0xff]  ;;  %p4000_p7 = scmp.ne.s32.totalorder %s5462_s16, %s3999_s13 }
 0x185   : > { %3190 = vmatprep.mubr.bf16.mxu0 %v573_v6  ;;  %v576_v16 = vld [vmem:[%s4727_s30 + $0x10] sm:$0xff]  ;;  %v577_v17 = vld [vmem:[%s4727_s30 + $0x18] sm:$0xff]  ;;  %v3650_v20 = vld [vmem:[#allocation10 + $0x140] sm:$0xff]   ;;  %v590_v22 = vpack.c.bf16 %v575_v15, %v574_v14 }
 0x186   : > { %3177 = vmatpush3.bf16.msra.mxu0 %v3638_v1  ;;  %3347 = vmatpush3.bf16.msra.mxu1 %v3638_v1  ;;  %v598_v18 = vld [vmem:[%s491_s10] sm:$0xff]  ;;  %v599_v19 = vld [vmem:[%s491_s10 + $0x8] sm:$0xff]  ;;  %v591_v24 = vpack.c.bf16 %v577_v17, %v576_v16  ;;  %p805_p9 = scmp.le.s32.totalorder %s5669_s23, 0  ;;  %p807_p11 = scmp.lt.s32.totalorder %s5669_s23, 1 }
 0x187   : > { %3178 = vmatprep.subr.bf16.mxu0 %v3639_v2  ;;  %3340 = vmatprep.subr.bf16.mxu1 %v3639_v2  ;;  %v3645_v21 = vld [vmem:[#allocation10 + $0x100] sm:$0xff]   ;;  %v600_v25 = vpack.c.bf16 %v599_v19, %v598_v18  ;;  %v3647_v26 = vld [vmem:[#allocation10 + $0x108] sm:$0xff]   ;;  %v580_v30 = vld [vmem:[%s4727_s30 + $0x30] sm:$0xff]  ;;  %s2899_s28 = sshll.u32 %s5669_s23, 4  ;;  %s2888_s27 = sshll.u32 %s5707_s6, 5 }
 0x188   : > { %3206 = vmatprep.mubr.bf16.mxu1 %v597_v10  ;;  %v3646_v23 = vld [vmem:[#allocation10 + $0xc0] sm:$0xff]   ;;  %v3653_v27 = vld [vmem:[#allocation10 + $0x148] sm:$0xff]   ;;  %v581_v31 = vld [vmem:[%s4727_s30 + $0x38] sm:$0xff]  ;;  %s806_s0 = scalar_select %p805_p9, 1, 0 }
 0x189   : > { %v578_v28 = vld [vmem:[%s4727_s30 + $0x20] sm:$0xff]  ;;  %v579_v29 = vld [vmem:[%s4727_s30 + $0x28] sm:$0xff]  ;;  %v3649_v33 = vld [vmem:[#allocation10 + $0x110] sm:$0xff]   ;;  %v593_v36 = vpack.c.bf16 %v581_v31, %v580_v30  ;;  %s808_s9 = scalar_select %p807_p11, 10, 9 }
 0x18a   : > { %3179 = vmatpush3.bf16.msra.mxu0 %v3639_v2  ;;  %3348 = vmatpush3.bf16.msra.mxu1 %v3639_v2  ;;  %v3648_v32 = vld [vmem:[#allocation10 + $0xc8] sm:$0xff]   ;;  %v592_v34 = vpack.c.bf16 %v579_v29, %v578_v28  ;;  %v3651_v35 = vld [vmem:[#allocation10 + $0xd0] sm:$0xff]   ;;  %v3652_v37 = vld [vmem:[#allocation10 + $0x118] sm:$0xff]   ;;  %v4787_v63 = vstv %s806_s0  ;;  %s2480_s8 = sadd.s32 %s2899_s28, %s2888_s27  ;;  %p4001_p13 = pnand %p4000_p7, %p5709_p12 }
 0x18b   : > { %3180 = vmatprep.subr.bf16.mxu0 %v3640_v3  ;;  %3341 = vmatprep.subr.bf16.mxu1 %v3640_v3  ;;  %v582_v38 = vld [vmem:[%s4727_s30 + $0x40] sm:$0xff]  ;;  %v583_v39 = vld [vmem:[%s4727_s30 + $0x48] sm:$0xff]  ;;  %v584_v40 = vld [vmem:[%s4727_s30 + $0x50] sm:$0xff]  ;;  %v4789_v0 = vstv %s808_s9  ;;  %vm819_vm0 = vcmp.le.s32.totalorder %v4787_v63, 9  ;;  %vm811_vm3 = vcmp.le.s32.totalorder %v4787_v63, 1  ;;  %vm810_vm5 = vcmp.le.s32.totalorder %v4787_v63, 0 }
 0x18c   : > { %v585_v41 = vld [vmem:[%s4727_s30 + $0x58] sm:$0xff]  ;;  %v594_v43 = vpack.c.bf16 %v583_v39, %v582_v38  ;;  %v586_v45 = vld [vmem:[%s4727_s30 + $0x60] sm:$0xff]  ;;  %v587_v46 = vld [vmem:[%s4727_s30 + $0x68] sm:$0xff]  ;;  %vm830_vm1 = vcmp.gt.s32.totalorder %v4789_v0, 9  ;;  %vm822_vm4 = vcmp.gt.s32.totalorder %v4789_v0, 1  ;;  %vm821_vm6 = vcmp.gt.s32.totalorder %v4789_v0, 0  ;;  %p4002_p1 = pneg %p4001_p13 }
 0x18d   : > { %v3654_v42 = vld [vmem:[#allocation10 + $0xd8] sm:$0xff]   ;;  %v595_v44 = vpack.c.bf16 %v585_v41, %v584_v40  ;;  %v596_v47 = vpack.c.bf16 %v587_v46, %v586_v45  ;;  %v3655_v48 = vld [vmem:[#allocation10 + $0x120] sm:$0xff]   ;;  %v3656_v49 = vld [vmem:[#allocation10 + $0x150] sm:$0xff]   ;;  %vm813_vm7 = vcmp.le.s32.totalorder %v4787_v63, 3  ;;  %vm824_vm8 = vcmp.gt.s32.totalorder %v4789_v0, 3  ;;  %s2889_s24 = sshll.u32 %s2480_s8, 7 }
 0x18e   : > { %3181 = vmatpush3.bf16.msra.mxu0 %v3640_v3  ;;  %3349 = vmatpush3.bf16.msra.mxu1 %v3640_v3  ;;  %v3657_v50 = vld [vmem:[#allocation10 + $0xe0] sm:$0xff]   ;;  %v3658_v51 = vld [vmem:[#allocation10 + $0x128] sm:$0xff]   ;;  %v3659_v52 = vld [vmem:[#allocation10 + $0x158] sm:$0xff]   ;;  %vm812_vm9 = vcmp.le.s32.totalorder %v4787_v63, 2  ;;  %vm818_vm10 = vcmp.le.s32.totalorder %v4787_v63, 8  ;;  %vm829_vm11 = vcmp.gt.s32.totalorder %v4789_v0, 8  ;;  %s5468_s2 = scalar_lea.hbm %s5708_s4, %s2889_s24 }
 0x18f   : > { %3182 = vmatprep.subr.bf16.mxu0 %v3641_v7  ;;  %3342 = vmatprep.subr.bf16.mxu1 %v3641_v7  ;;  %v3660_v53 = vld [vmem:[#allocation10 + $0xe8] sm:$0xff]   ;;  %v3661_v54 = vld [vmem:[#allocation10 + $0x130] sm:$0xff]   ;;  %v3662_v55 = vld [vmem:[#allocation10 + $0x160] sm:$0xff]   ;;  %vm823_vm13 = vcmp.gt.s32.totalorder %v4789_v0, 2 }
 0x190   : > { %v3663_v56 = vld [vmem:[#allocation10 + $0xf0] sm:$0xff]   ;;  %v3664_v57 = vld [vmem:[#allocation10 + $0x138] sm:$0xff]   ;;  %v3665_v58 = vld [vmem:[#allocation10 + $0x168] sm:$0xff]  }
 0x191   : > { %v3666_v59 = vld [vmem:[#allocation10 + $0xf8] sm:$0xff]   ;;  %v3667_v60 = vld [vmem:[#allocation10 + $0x170] sm:$0xff]   ;;  %v4784_v62 = vld [vmem:[#allocation10 + $0x80] sm:$0xff]  }
 0x192   : > { %3183 = vmatpush3.bf16.msra.mxu0 %v3641_v7  ;;  %3350 = vmatpush3.bf16.msra.mxu1 %v3641_v7  ;;  %v3668_v61 = vld [vmem:[#allocation10 + $0x178] sm:$0xff]   ;;  %vm4793_vm2 = vmand %vm819_vm0, %vm830_vm1  ;;  %v3676_v2 = vld [vmem:[#allocation10 + $0x40] sm:$0xff]   ;;  %vm972_vm0 = vsmask.f32 256 }
 0x193   : > { %3184 = vmatprep.subr.bf16.mxu0 %v3642_v11  ;;  %3343 = vmatprep.subr.bf16.mxu1 %v3642_v11  ;;  %v4797_v3 = vld [vmem:[#allocation13] ss:$0 sm:$0xff]  ;;  %vm4809_vm12 = vmand %vm811_vm3, %vm822_vm4  ;;  %v3706_v14 = vld [vmem:[#allocation10 + $0x1b0] sm:$0xff]  }
 0x194   : > { %vm4820_vm15 = vmand %vm810_vm5, %vm821_vm6  ;;  %vm1014_vm5 = vcmask 1047552   ;;  %vm1015_vm6 = vsmask.f32 7424  ;;  %v3711_v8 = vld [vmem:[#allocation10 + $0x210] sm:$0xff]   ;;  %v3717_v1 = vld [vmem:[#allocation11] sm:$0xff]  }
 0x195   : > { %vm4831_vm1 = vmand %vm818_vm10, %vm829_vm11 }
 0x196   : > { %3185 = vmatpush3.bf16.msra.mxu0 %v3642_v11  ;;  %3351 = vmatpush3.bf16.msra.mxu1 %v3642_v11  ;;  %vm2755_vm3 = vmpackc.low %vm4809_vm12, %vm4809_vm12 }
 0x197   : > { %3186 = vmatprep.subr.bf16.mxu0 %v3643_v12  ;;  %3344 = vmatprep.subr.bf16.mxu1 %v3643_v12  ;;  %vm4878_vm4 = vmand %vm813_vm7, %vm824_vm8  ;;  %vm815_vm7 = vcmp.le.s32.totalorder %v4787_v63, 5 }
 0x198   : > { %vm4887_vm10 = vmand %vm812_vm9, %vm823_vm13  ;;  %vm826_vm9 = vcmp.gt.s32.totalorder %v4789_v0, 5 }
 0x199   : > { %vm4895_vm8 = vmand %vm971_vm14, %vm972_vm0  ;;  %vm814_vm14 = vcmp.le.s32.totalorder %v4787_v63, 4  ;;  %vm825_vm0 = vcmp.gt.s32.totalorder %v4789_v0, 4 }
 0x19a   : > { %3187 = vmatpush3.bf16.msra.mxu0 %v3643_v12  ;;  %3352 = vmatpush3.bf16.msra.mxu1 %v3643_v12  ;;  %vm4906_vm11 = vmand %vm1014_vm5, %vm1015_vm6  ;;  %vm817_vm6 = vcmp.le.s32.totalorder %v4787_v63, 7 }
 0x19b   : > { %3188 = vmatprep.subr.bf16.mxu0 %v3644_v13  ;;  %3345 = vmatprep.subr.bf16.mxu1 %v3644_v13  ;;  %vm4921_vm13 = vmpackc.low %vm4887_vm10, %vm4887_vm10 }
 0x19c   : > { %vm4954_vm5 = vmand %vm815_vm7, %vm826_vm9  ;;  %vm828_vm7 = vcmp.gt.s32.totalorder %v4789_v0, 7 }
 0x19d   : > { %vm4989_vm9 = vmpackc.low %vm4878_vm4, %vm4878_vm4 }
 0x19e   : > { %3189 = vmatpush3.bf16.msra.mxu0 %v3644_v13  ;;  %3353 = vmatpush3.bf16.msra.mxu1 %v3644_v13 }
 0x19f   : > { %3210 = vmatprep.subr.bf16.mxu0 %v3650_v20  ;;  %2918 = vmatprep.subr.bf16.mxu1 %v3645_v21 }
 0x1a1   : > { %3191 = vmatmul.mubr.bf16.vlgmr.msra.gmra.mrb[0].mxu0 %v590_v22  ;;  %3207 = vmatmul.mubr.bf16.vlgmr.msra.gmra.mrb[0].mxu1 %v600_v25  ;;  %v3718_v22 = vld [vmem:[#allocation11 + $0x8] sm:$0xff]  }
 0x1a2   : > { %3194 = vmatprep.mubr.bf16.mxu0 %v591_v24  ;;  %2919 = vmatpush3.bf16.msra.mxu1 %v3646_v23 }
 0x1a3   : > { %3211 = vmatpush3.bf16.msra.mxu0 %v3650_v20  ;;  %2920 = vmatprep.subr.bf16.mxu1 %v3647_v26 }
 0x1a4   : > { %3212 = vmatprep.subr.bf16.mxu0 %v3653_v27 }
 0x1a6   : > { %2921 = vmatpush3.bf16.msra.mxu1 %v3648_v32 }
 0x1a7   : > { %3213 = vmatpush3.bf16.msra.mxu0 %v3653_v27  ;;  %2922 = vmatprep.subr.bf16.mxu1 %v3649_v33 }
 0x1a8   : > { %3214 = vmatprep.subr.bf16.mxu0 %v3656_v49 }
 0x1a9   : > { %3195 = vmatmul.mubr.bf16.gmra.mrb[4].mxu0 %v592_v34 }
 0x1aa   : > { %3198 = vmatprep.mubr.bf16.mxu0 %v593_v36  ;;  %2923 = vmatpush3.bf16.msra.mxu1 %v3651_v35 }
 0x1ab   : > { %2924 = vmatprep.subr.bf16.mxu1 %v3652_v37  ;;  %3215 = vmatpush3.bf16.msra.mxu0 %v3656_v49 }
 0x1ac   : > { %3216 = vmatprep.subr.bf16.mxu0 %v3659_v52 }
 0x1ae   : > { %2925 = vmatpush3.bf16.msra.mxu1 %v3654_v42 }
 0x1af   : > { %2926 = vmatprep.subr.bf16.mxu1 %v3655_v48  ;;  %3217 = vmatpush3.bf16.msra.mxu0 %v3659_v52 }
 0x1b0   : > { %3218 = vmatprep.subr.bf16.mxu0 %v3662_v55 }
 0x1b1   : > { %3199 = vmatmul.mubr.bf16.gmra.mrb[8].mxu0 %v594_v43 }
 0x1b2   : > { %3202 = vmatprep.mubr.bf16.mxu0 %v595_v44  ;;  %2927 = vmatpush3.bf16.msra.mxu1 %v3657_v50 }
 0x1b3   : > { %2928 = vmatprep.subr.bf16.mxu1 %v3658_v51  ;;  %3219 = vmatpush3.bf16.msra.mxu0 %v3662_v55 }
 0x1b4   : > { %3220 = vmatprep.subr.bf16.mxu0 %v3665_v58 }
 0x1b6   : > { %2929 = vmatpush3.bf16.msra.mxu1 %v3660_v53  ;;  %v3684_v53 = vld [vmem:[#allocation10 + $0x10] sm:$0xff]  }
 0x1b7   : > { %2930 = vmatprep.subr.bf16.mxu1 %v3661_v54  ;;  %3221 = vmatpush3.bf16.msra.mxu0 %v3665_v58 }
 0x1b8   : > { %3222 = vmatprep.subr.bf16.mxu0 %v3667_v60 }
 0x1b9   : > { %3203 = vmatmul.mubr.bf16.gmra.mrb[12].mxu0 %v596_v47 }
 0x1ba   : > { %2931 = vmatpush3.bf16.msra.mxu1 %v3663_v56 }
 0x1bb   : > { %2932 = vmatprep.subr.bf16.mxu1 %v3664_v57  ;;  %3223 = vmatpush3.bf16.msra.mxu0 %v3667_v60 }
 0x1bc   : > { %3224 = vmatprep.subr.bf16.mxu0 %v3668_v61 }
 0x1be   : > { %2933 = vmatpush3.bf16.msra.mxu1 %v3666_v59 }
 0x1bf   : > { %3225 = vmatpush3.bf16.msra.mxu0 %v3668_v61  ;;  %2998 = vmatprep.subr.bf16.mxu1 %v3676_v2  ;;  %v3720_v2 = vld [vmem:[#allocation11 + $0x18] sm:$0xff]  }
 0x1c0   : > { %3242 = vmatprep.subr.bf16.mxu0 %v4784_v62 }
 0x274   : > { %v3192_v4 = vpop.f32.mrb[0].mxu0  ;;  %v3208_v7 = vpop.f32.mrb[0].mxu1 }
 0x275   : > { %v715_v5 = vadd.f32 %v3192_v4, %v4797_v3  ;;  %v706_v6 = vpop.f32.mrb[1].mxu0  ;;  %v779_v11 = vadd.f32 %v3208_v7, %v4797_v3  ;;  %v770_v12 = vpop.f32.mrb[1].mxu1 }
 0x276   : > { %v707_v9 = vadd.f32 %v4797_v3, %v706_v6  ;;  %v3193_v10 = vpop.f32.mrb[2].mxu0  ;;  %v771_v17 = vadd.f32 %v4797_v3, %v770_v12  ;;  %v3209_v18 = vpop.f32.mrb[2].mxu1 }
 0x277   : > { %v787_v13 = vmax.f32 %v715_v5, 0.0  ;;  %v718_v15 = vadd.f32 %v3193_v10, %v4797_v3  ;;  %v709_v16 = vpop.f32.mrb[3].mxu0  ;;  %v803_v21 = vmax.f32 %v779_v11, 0.0  ;;  %v782_v23 = vadd.f32 %v3209_v18, %v4797_v3  ;;  %v773_v24 = vpop.f32.mrb[3].mxu1 }
 0x278   : > { %v785_v19 = vmax.f32 %v707_v9, 0.0  ;;  %v710_v20 = vadd.f32 %v4797_v3, %v709_v16  ;;  %v801_v27 = vmax.f32 %v771_v17, 0.0  ;;  %v774_v28 = vadd.f32 %v4797_v3, %v773_v24  ;;  %v3677_v17 = vld [vmem:[#allocation10] sm:$0xff]   ;;  %v3679_v24 = vld [vmem:[#allocation10 + $0x48] sm:$0xff]  }
 0x279   : > { %v863_v25 = vsel %vm4809_vm12, %v787_v13, 0.0  ;;  %v788_v26 = vmax.f32 %v718_v15, 0.0  ;;  %v879_v31 = vsel %vm4793_vm2, %v803_v21, 0.0  ;;  %v804_v32 = vmax.f32 %v782_v23, 0.0  ;;  %v3713_v16 = vld [vmem:[#allocation10 + $0x220] sm:$0xff]  }
 0x27a   : > { %v861_v29 = vsel %vm4820_vm15, %v785_v19, 0.0  ;;  %v786_v30 = vmax.f32 %v710_v20, 0.0  ;;  %v877_v35 = vsel %vm4831_vm1, %v801_v27, 0.0  ;;  %v802_v36 = vmax.f32 %v774_v28, 0.0 }
 0x27b   : > { %v864_v33 = vsel %vm4809_vm12, %v788_v26, 0.0  ;;  %v4848_v34 = vpack.c.bf16 %v788_v26, %v787_v13  ;;  %v880_v41 = vsel %vm4793_vm2, %v804_v32, 0.0  ;;  %v4869_v46 = vpack.c.bf16 %v804_v32, %v803_v21  ;;  %vm2872_vm12 = vmpackc.low %vm4793_vm2, %vm4793_vm2 }
 0x27c   : > { %v882_v37 = vpack.c.bf16 %v864_v33, %v863_v25  ;;  %v862_v38 = vsel %vm4820_vm15, %v786_v30, 0.0  ;;  %v4854_v39 = vpack.c.bf16 %v786_v30, %v785_v19  ;;  %v3196_v40 = vpop.f32.mrb[4].mxu0  ;;  %v4867_v45 = vpack.c.bf16 %v880_v41, %v879_v31  ;;  %v3680_v41 = vld [vmem:[#allocation10 + $0x8] sm:$0xff]  }
 0x27d   : > { %v4858_v42 = vpack.c.bf16 %v862_v38, %v861_v29  ;;  %v731_v43 = vadd.f32 %v3196_v40, %v4797_v3  ;;  %v722_v44 = vpop.f32.mrb[5].mxu0  ;;  %2757 = vmatprep.mubr.msk.bf16.mxu1 %vm2755_vm3, %v4848_v34  ;;  %v878_v51 = vsel %vm4831_vm1, %v802_v36, 0.0  ;;  %v4901_v5 = vpack.c.bf16 %v802_v36, %v801_v27 }
 0x27e   : > { %v899_v47 = vshrl.u32 %v882_v37, 16  ;;  %v902_v48 = vshll.u32 %v882_v37, 16  ;;  %v723_v49 = vadd.f32 %v4797_v3, %v722_v44  ;;  %v3197_v50 = vpop.f32.mrb[6].mxu0  ;;  %v4899_v4 = vpack.c.bf16 %v878_v51, %v877_v35 }
 0x27f   : > { %v791_v52 = vmax.f32 %v731_v43, 0.0  ;;  %v734_v54 = vadd.f32 %v3197_v50, %v4797_v3  ;;  %v725_v55 = vpop.f32.mrb[7].mxu0 }
 0x280   : > { %v789_v56 = vmax.f32 %v723_v49, 0.0  ;;  %v726_v58 = vadd.f32 %v4797_v3, %v725_v55  ;;  %v901_v59 = vrot.slane %v899_v47, 7  ;;  %v986_v60 = vrot.slane %v902_v48, 1 }
 0x281   : > { %v792_v61 = vmax.f32 %v734_v54, 0.0  ;;  %v867_v11 = vsel %vm4878_vm4, %v791_v52, 0.0  ;;  %v895_v49 = vshll.u32 %v4858_v42, 16 }
 0x282   : > { %v790_v6 = vmax.f32 %v726_v58, 0.0  ;;  %v904_v7 = vor.u32 %v902_v48, %v901_v59  ;;  %v987_v9 = vor.u32 %v986_v60, %v899_v47  ;;  %v865_v12 = vsel %vm4887_vm10, %v789_v56, 0.0  ;;  %v3682_v48 = vld [vmem:[#allocation10 + $0x50] sm:$0xff]  }
 0x283   : > { %v868_v13 = vsel %vm4878_vm4, %v792_v61, 0.0  ;;  %v4916_v15 = vpack.c.bf16 %v792_v61, %v791_v52  ;;  %vm816_vm4 = vcmp.le.s32.totalorder %v4787_v63, 6 }
 0x284   : > { %v4925_v18 = vpack.c.bf16 %v868_v13, %v867_v11  ;;  %v866_v19 = vsel %vm4887_vm10, %v790_v6, 0.0  ;;  %v4929_v20 = vpack.c.bf16 %v790_v6, %v789_v56  ;;  %v3200_v21 = vpop.f32.mrb[8].mxu0  ;;  %v4933_v23 = vsel %vm4895_vm8, 0, %v904_v7  ;;  %vm4967_vm10 = vmand %vm814_vm14, %vm825_vm0 }
 0x285   : > { %v883_v25 = vpack.c.bf16 %v866_v19, %v865_v12  ;;  %v747_v26 = vadd.f32 %v3200_v21, %v4797_v3  ;;  %v738_v27 = vpop.f32.mrb[9].mxu0  ;;  %1301 = vmatmul.mubr.bf16.vlgmr.msra.gmra.mrb[4].mxu1 %v4933_v23  ;;  %v4940_v28 = vsel %vm4906_vm11, %v987_v9, 0  ;;  %vm827_vm14 = vcmp.gt.s32.totalorder %v4789_v0, 6  ;;  %vm5015_vm0 = vmand %vm817_vm6, %vm828_vm7 }
 0x286   : > { %v916_v29 = vshll.u32 %v4925_v18, 16  ;;  %v739_v30 = vadd.f32 %v4797_v3, %v738_v27  ;;  %3226 = vmatprep.mubr.bf16.mxu0 %v4940_v28  ;;  %v3201_v31 = vpop.f32.mrb[10].mxu0  ;;  %2760 = vmatprep.mubr.msk.bf16.mxu1 %vm4921_vm13, %v4929_v20  ;;  %v913_v32 = vshrl.u32 %v4925_v18, 16  ;;  %vm5038_vm6 = vmand %vm816_vm4, %vm827_vm14  ;;  %v3688_v18 = vld [vmem:[#allocation10 + $0x18] sm:$0xff]   ;;  %v892_v0 = vshrl.u32 %v4858_v42, 16 }
 0x287   : > { %v906_v33 = vshrl.u32 %v883_v25, 16  ;;  %v795_v35 = vmax.f32 %v747_v26, 0.0  ;;  %v750_v37 = vadd.f32 %v3201_v31, %v4797_v3  ;;  %v741_v38 = vpop.f32.mrb[11].mxu0  ;;  %v909_v40 = vshll.u32 %v883_v25, 16  ;;  %2999 = vmatpush3.bf16.msra.mxu1 %v3677_v17  ;;  %v3670_v17 = vld [vmem:[#allocation10 + $0x88] sm:$0xff]   ;;  %vm5062_vm7 = vmpackc.low %vm4967_vm10, %vm4967_vm10  ;;  %v3702_v42 = vld [vmem:[#allocation10 + $0x78] sm:$0xff]  }
 0x288   : > { %v793_v43 = vmax.f32 %v739_v30, 0.0  ;;  %v742_v44 = vadd.f32 %v4797_v3, %v741_v38  ;;  %v990_v47 = vrot.slane %v916_v29, 1  ;;  %3000 = vmatprep.subr.bf16.mxu1 %v3679_v24  ;;  %v915_v57 = vrot.slane %v913_v32, 7  ;;  %vm5176_vm4 = vmpackc.low %vm5015_vm0, %vm5015_vm0 }
 0x289   : > { %v796_v50 = vmax.f32 %v750_v37, 0.0  ;;  %v908_v51 = vrot.slane %v906_v33, 7  ;;  %v988_v52 = vrot.slane %v909_v40, 1  ;;  %v871_v54 = vsel %vm4954_vm5, %v795_v35, 0.0  ;;  %v3687_v37 = vld [vmem:[#allocation10 + $0x188] sm:$0xff]   ;;  %vm2776_vm14 = vmpackc.low %vm4831_vm1, %vm4831_vm1 }
 0x28a   : > { %v794_v55 = vmax.f32 %v742_v44, 0.0  ;;  %v991_v56 = vor.u32 %v990_v47, %v913_v32  ;;  %v869_v6 = vsel %vm4967_vm10, %v793_v43, 0.0  ;;  %v3686_v32 = vld [vmem:[#allocation10 + $0x58] sm:$0xff]   ;;  %v3671_v47 = vld [vmem:[#allocation10 + $0x90] sm:$0xff]  }
 0x28b   : > { %v872_v58 = vsel %vm4954_vm5, %v796_v50, 0.0  ;;  %v4976_v59 = vpack.c.bf16 %v796_v50, %v795_v35  ;;  %v911_v60 = vor.u32 %v909_v40, %v908_v51  ;;  %v989_v61 = vor.u32 %v988_v52, %v906_v33  ;;  %3001 = vmatpush3.bf16.msra.mxu1 %v3680_v41  ;;  %v3704_v50 = vld [vmem:[#allocation10 + $0x38] sm:$0xff]  }
 0x28c   : > { %v4980_v7 = vpack.c.bf16 %v872_v58, %v871_v54  ;;  %v870_v9 = vsel %vm4967_vm10, %v794_v55, 0.0  ;;  %v4984_v11 = vpack.c.bf16 %v794_v55, %v793_v43  ;;  %v3204_v12 = vpop.f32.mrb[12].mxu0  ;;  %3002 = vmatprep.subr.bf16.mxu1 %v3682_v48  ;;  %v5026_v41 = vsel %vm4906_vm11, %v991_v56, 0  ;;  %vm5109_vm10 = vmpackc.low %vm4954_vm5, %vm4954_vm5 }
 0x28d   : > { %v4993_v19 = vpack.c.bf16 %v870_v9, %v869_v6  ;;  %v763_v21 = vadd.f32 %v3204_v12, %v4797_v3  ;;  %v754_v24 = vpop.f32.mrb[13].mxu0  ;;  %v4998_v25 = vsel %vm4895_vm8, 0, %v911_v60  ;;  %v5002_v26 = vsel %vm4906_vm11, %v989_v61, 0  ;;  %vm5152_vm5 = vmpackc.low %vm5038_vm6, %vm5038_vm6 }
 0x28e   : > { %v930_v27 = vshll.u32 %v4980_v7, 16  ;;  %v755_v30 = vadd.f32 %v4797_v3, %v754_v24  ;;  %v3205_v31 = vpop.f32.mrb[14].mxu0  ;;  %1309 = vmatmul.mubr.bf16.gmra.mrb[8].mxu1 %v4998_v25  ;;  %3227 = vmatmul.mubr.bf16.vlgmr.msra.gmra.mrb[16].mxu0 %v5002_v26  ;;  %v918_v48 = vor.u32 %v916_v29, %v915_v57  ;;  %v927_v54 = vshrl.u32 %v4980_v7, 16  ;;  %v3678_v7 = vld [vmem:[#allocation10 + $0xb8] sm:$0xff]  }
 0x28f   : > { %v923_v33 = vshll.u32 %v4993_v19, 16  ;;  %v799_v35 = vmax.f32 %v763_v21, 0.0  ;;  %v766_v38 = vadd.f32 %v3205_v31, %v4797_v3  ;;  %3243 = vmatpush3.bf16.msra.mxu0 %v4784_v62  ;;  %v757_v40 = vpop.f32.mrb[15].mxu0  ;;  %2763 = vmatprep.mubr.msk.bf16.mxu1 %vm4989_vm9, %v4916_v15 }
 0x290   : > { %v797_v43 = vmax.f32 %v755_v30, 0.0  ;;  %v758_v44 = vadd.f32 %v4797_v3, %v757_v40  ;;  %3230 = vmatprep.mubr.bf16.mxu0 %v5026_v41  ;;  %3244 = vmatprep.subr.bf16.mxu0 %v3670_v17  ;;  %v994_v62 = vrot.slane %v930_v27, 1  ;;  %v920_v3 = vshrl.u32 %v4993_v19, 16  ;;  %v3690_v30 = vld [vmem:[#allocation10 + $0x60] sm:$0xff]  }
 0x291   : > { %v800_v51 = vmax.f32 %v766_v38, 0.0  ;;  %v992_v52 = vrot.slane %v923_v33, 1  ;;  %3003 = vmatpush3.bf16.msra.mxu1 %v3684_v53  ;;  %v875_v29 = vsel %vm5015_vm0, %v799_v35, 0.0  ;;  %v5070_v21 = vsel %vm4895_vm8, 0, %v918_v48  ;;  %v3692_v38 = vld [vmem:[#allocation10 + $0x20] sm:$0xff]  }
 0x292   : > { %v798_v55 = vmax.f32 %v758_v44, 0.0  ;;  %3004 = vmatprep.subr.bf16.mxu1 %v3686_v32  ;;  %v995_v58 = vor.u32 %v994_v62, %v927_v54  ;;  %v873_v60 = vsel %vm5038_vm6, %v797_v43, 0.0  ;;  %v922_v53 = vrot.slane %v920_v3, 7  ;;  %v3694_v44 = vld [vmem:[#allocation10 + $0x68] sm:$0xff]   ;;  %v3673_v62 = vld [vmem:[#allocation10 + $0xa0] sm:$0xff]  }
 0x293   : > { %v876_v63 = vsel %vm5015_vm0, %v800_v51, 0.0  ;;  %v5049_v56 = vpack.c.bf16 %v800_v51, %v799_v35  ;;  %3245 = vmatpush3.bf16.msra.mxu0 %v3670_v17  ;;  %v993_v57 = vor.u32 %v992_v52, %v920_v3  ;;  %v3672_v17 = vld [vmem:[#allocation10 + $0x98] sm:$0xff]   ;;  %v955_v32 = vshrl.u32 %v4867_v45, 16  ;;  %vm2803_vm0 = vmpackc.low %vm4820_vm15, %vm4820_vm15 }
 0x294   : > { %v5053_v61 = vpack.c.bf16 %v876_v63, %v875_v29  ;;  %v874_v6 = vsel %vm5038_vm6, %v798_v55, 0.0  ;;  %v5057_v9 = vpack.c.bf16 %v798_v55, %v797_v43  ;;  %3246 = vmatprep.subr.bf16.mxu0 %v3671_v47  ;;  %v894_v35 = vrot.slane %v892_v0, 7 }
 0x295   : > { %v5066_v19 = vpack.c.bf16 %v874_v6, %v873_v60  ;;  %v5074_v24 = vsel %vm4906_vm11, %v993_v57, 0  ;;  %3005 = vmatpush3.bf16.msra.mxu1 %v3688_v18  ;;  %v5089_v43 = vsel %vm4906_vm11, %v995_v58, 0  ;;  %v951_v48 = vshll.u32 %v4899_v4, 16  ;;  %v3674_v60 = vld [vmem:[#allocation10 + $0xa8] sm:$0xff]  }
 0x296   : > { %v944_v31 = vshll.u32 %v5053_v61, 16  ;;  %1317 = vmatmul.mubr.bf16.gmra.mrb[12].mxu1 %v5070_v21  ;;  %3231 = vmatmul.mubr.bf16.gmra.mrb[20].mxu0 %v5074_v24  ;;  %v5095_v3 = vor.u32 %v895_v49, %v894_v35  ;;  %v941_v29 = vshrl.u32 %v5053_v61, 16  ;;  %v957_v63 = vrot.slane %v955_v32, 7  ;;  %v3696_v35 = vld [vmem:[#allocation10 + $0x28] sm:$0xff]   ;;  %v3695_v61 = vld [vmem:[#allocation10 + $0x198] sm:$0xff]  }
 0x297   : > { %v937_v40 = vshll.u32 %v5066_v19, 16  ;;  %3247 = vmatpush3.bf16.msra.mxu0 %v3671_v47  ;;  %2766 = vmatprep.mubr.msk.bf16.mxu1 %vm5062_vm7, %v4984_v11  ;;  %v925_v47 = vor.u32 %v923_v33, %v922_v53  ;;  %v934_v52 = vshrl.u32 %v5066_v19, 16  ;;  %v958_v6 = vshll.u32 %v4867_v45, 16 }
 0x298   : > { %3234 = vmatprep.mubr.bf16.mxu0 %v5089_v43  ;;  %3248 = vmatprep.subr.bf16.mxu0 %v3672_v17  ;;  %v998_v51 = vrot.slane %v944_v31, 1  ;;  %v1000_v36 = vrot.slane %v951_v48, 1  ;;  %v943_v19 = vrot.slane %v941_v29, 7 }
 0x299   : > { %v996_v18 = vrot.slane %v937_v40, 1  ;;  %3006 = vmatprep.subr.bf16.mxu1 %v3690_v30  ;;  %v5116_v53 = vsel %vm4895_vm8, 0, %v925_v47  ;;  %v929_v30 = vrot.slane %v927_v54, 7  ;;  %v1002_v45 = vrot.slane %v958_v6, 1 }
 0x29a   : > { %3007 = vmatpush3.bf16.msra.mxu1 %v3692_v38  ;;  %v999_v58 = vor.u32 %v998_v51, %v941_v29  ;;  %v3698_v38 = vld [vmem:[#allocation10 + $0x70] sm:$0xff]   ;;  %v948_v51 = vshrl.u32 %v4899_v4, 16  ;;  %v984_v47 = vrot.slane %v895_v49, 1  ;;  %v3703_v4 = vld [vmem:[#allocation10 + $0x1a8] sm:$0xff]  }
 0x29b   : > { %3249 = vmatpush3.bf16.msra.mxu0 %v3672_v17  ;;  %v997_v57 = vor.u32 %v996_v18, %v934_v52  ;;  %3008 = vmatprep.subr.bf16.mxu1 %v3694_v44  ;;  %v5126_v44 = vor.u32 %v958_v6, %v957_v63  ;;  %v3675_v18 = vld [vmem:[#allocation10 + $0xb0] sm:$0xff]  }
 0x29c   : > { %3250 = vmatprep.subr.bf16.mxu0 %v3673_v62  ;;  %v5133_v54 = vsel %vm4906_vm11, %v999_v58, 0  ;;  %v1001_v6 = vor.u32 %v1000_v36, %v948_v51  ;;  %v3700_v58 = vld [vmem:[#allocation10 + $0x30] sm:$0xff]   ;;  %v985_v55 = vor.u32 %v984_v47, %v892_v0  ;;  %v3681_v36 = vld [vmem:[#allocation10 + $0x1c0] sm:$0xff]   ;;  %v946_v47 = vor.u32 %v944_v31, %v943_v19 }
 0x29d   : > { %v5120_v17 = vsel %vm4906_vm11, %v997_v57, 0  ;;  %v983_v63 = vsel %vm4895_vm8, 0, %v5126_v44  ;;  %v932_v57 = vor.u32 %v930_v27, %v929_v30  ;;  %v3697_v31 = vld [vmem:[#allocation10 + $0x1e0] sm:$0xff]   ;;  %v3724_v44 = vld [vmem:[#allocation11 + $0x38] sm:$0xff]  }
 0x29e   : > { %1325 = vmatmul.mubr.bf16.gmra.mrb[16].mxu1 %v5116_v53  ;;  %3235 = vmatmul.mubr.bf16.gmra.mrb[24].mxu0 %v5120_v17  ;;  %v5162_v30 = vsel %vm4906_vm11, %v1001_v6, 0  ;;  %v1017_v0 = vsel %vm4906_vm11, %v985_v55, 0  ;;  %v5199_v29 = vsel %vm4895_vm8, 0, %v946_v47  ;;  %v3699_v6 = vld [vmem:[#allocation10 + $0x1a0] sm:$0xff]  }
 0x29f   : > { %3251 = vmatpush3.bf16.msra.mxu0 %v3673_v62  ;;  %2769 = vmatprep.mubr.msk.bf16.mxu1 %vm5109_vm10, %v4976_v59  ;;  %v5140_v62 = vor.u32 %v1002_v45, %v955_v32  ;;  %v5158_v27 = vsel %vm4895_vm8, 0, %v932_v57  ;;  %v3685_v45 = vld [vmem:[#allocation10 + $0x1c8] sm:$0xff]   ;;  %v950_v57 = vrot.slane %v948_v51, 7 }
 0x2a0   : > { %3238 = vmatprep.mubr.bf16.mxu0 %v5133_v54  ;;  %3252 = vmatprep.subr.bf16.mxu0 %v3674_v60 }
 0x2a1   : > { %3009 = vmatpush3.bf16.msra.mxu1 %v3696_v35  ;;  %v1026_v49 = vsel %vm4906_vm11, %v5140_v62, 0  ;;  %v3683_v35 = vld [vmem:[#allocation10 + $0x180] sm:$0xff]   ;;  %v953_v51 = vor.u32 %v951_v48, %v950_v57  ;;  %v3705_v48 = vld [vmem:[#allocation10 + $0x1f0] sm:$0xff]  }
 0x2a2   : > { %3010 = vmatprep.subr.bf16.mxu1 %v3698_v38 }
 0x2a3   : > { %3253 = vmatpush3.bf16.msra.mxu0 %v3674_v60  ;;  %v936_v60 = vrot.slane %v934_v52, 7 }
 0x2a4   : > { %3254 = vmatprep.subr.bf16.mxu0 %v3675_v18 }
 0x2a5   : > { %3011 = vmatpush3.bf16.msra.mxu1 %v3700_v58  ;;  %v939_v52 = vor.u32 %v937_v40, %v936_v60  ;;  %v3689_v40 = vld [vmem:[#allocation10 + $0x1d0] sm:$0xff]   ;;  %v3701_v58 = vld [vmem:[#allocation10 + $0x1e8] sm:$0xff]   ;;  %v3707_v60 = vld [vmem:[#allocation10 + $0x1f8] sm:$0xff]  }
 0x2a6   : > { %1333 = vmatmul.mubr.bf16.gmra.mrb[20].mxu1 %v5158_v27  ;;  %3239 = vmatmul.mubr.bf16.gmra.mrb[28].mxu0 %v5162_v30 }
 0x2a7   : > { %3255 = vmatpush3.bf16.msra.mxu0 %v3675_v18  ;;  %2772 = vmatprep.mubr.msk.bf16.mxu1 %vm5152_vm5, %v5057_v9  ;;  %v5182_v55 = vsel %vm4895_vm8, 0, %v939_v52  ;;  %v3691_v18 = vld [vmem:[#allocation10 + $0x190] sm:$0xff]  }
 0x2a8   : > { %3258 = vmatprep.mubr.bf16.mxu0 %v1017_v0  ;;  %3256 = vmatprep.subr.bf16.mxu0 %v3678_v7 }
 0x2a9   : > { %3012 = vmatprep.subr.bf16.mxu1 %v3702_v42  ;;  %v5706_v42 = vsel %vm4895_vm8, 0, %v5095_v3  ;;  %v3710_v3 = vld [vmem:[#allocation10 + $0x208] sm:$0xff]  }
 0x2aa   : > { %3013 = vmatpush3.bf16.msra.mxu1 %v3704_v50  ;;  %v3709_v50 = vld [vmem:[#allocation10 + $0x200] sm:$0xff]  }
 0x2ab   : > { %3257 = vmatpush3.bf16.msra.mxu0 %v3678_v7  ;;  %v5217_v7 = vsel %vm4895_vm8, 0, %v953_v51  ;;  %3306 = vmatprep.subr.bf16.mxu1 %v3717_v1 }
 0x2ac   : > { %3078 = vmatprep.subr.bf16.mxu0 %v3681_v36 }
 0x2ae   : > { %1341 = vmatmul.mubr.bf16.gmra.mrb[24].mxu1 %v5182_v55  ;;  %3259 = vmatmul.mubr.bf16.vlgmr.msra.gmra.mrb[16].mxu0 %v4940_v28  ;;  %v3693_v28 = vld [vmem:[#allocation10 + $0x1d8] sm:$0xff]  }
 0x2af   : > { %3079 = vmatpush3.bf16.msra.mxu0 %v3683_v35  ;;  %2775 = vmatprep.mubr.msk.bf16.mxu1 %vm5176_vm4, %v5049_v56 }
 0x2b0   : > { %3262 = vmatprep.mubr.bf16.mxu0 %v5002_v26  ;;  %3080 = vmatprep.subr.bf16.mxu0 %v3685_v45 }
 0x2b3   : > { %3081 = vmatpush3.bf16.msra.mxu0 %v3687_v37 }
 0x2b4   : > { %3082 = vmatprep.subr.bf16.mxu0 %v3689_v40 }
 0x2b6   : > { %1349 = vmatmul.mubr.bf16.gmra.mrb[28].mxu1 %v5199_v29  ;;  %3263 = vmatmul.mubr.bf16.gmra.mrb[20].mxu0 %v5026_v41 }
 0x2b7   : > { %3083 = vmatpush3.bf16.msra.mxu0 %v3691_v18  ;;  %2778 = vmatprep.mubr.msk.bf16.mxu1 %vm2776_vm14, %v4901_v5 }
 0x2b8   : > { %3266 = vmatprep.mubr.bf16.mxu0 %v5074_v24  ;;  %3084 = vmatprep.subr.bf16.mxu0 %v3693_v28 }
 0x2bb   : > { %3085 = vmatpush3.bf16.msra.mxu0 %v3695_v61 }
 0x2bc   : > { %3086 = vmatprep.subr.bf16.mxu0 %v3697_v31 }
 0x2be   : > { %1357 = vmatmul.mubr.bf16.gmra.mrb[32].mxu1 %v5217_v7  ;;  %3267 = vmatmul.mubr.bf16.gmra.mrb[24].mxu0 %v5089_v43 }
 0x2bf   : > { %3087 = vmatpush3.bf16.msra.mxu0 %v3699_v6  ;;  %2805 = vmatprep.mubr.msk.bf16.mxu1 %vm2803_vm0, %v4854_v39  ;;  %v3708_v39 = vld [vmem:[#allocation10 + $0x1b8] sm:$0xff]  }
 0x2c0   : > { %3270 = vmatprep.mubr.bf16.mxu0 %v5120_v17  ;;  %3088 = vmatprep.subr.bf16.mxu0 %v3701_v58 }
 0x2c3   : > { %3089 = vmatpush3.bf16.msra.mxu0 %v3703_v4 }
 0x2c4   : > { %3090 = vmatprep.subr.bf16.mxu0 %v3705_v48 }
 0x2c6   : > { %1639 = vmatmul.mubr.bf16.vlgmr.msra.gmra.mrb[36].mxu1 %v5706_v42  ;;  %3271 = vmatmul.mubr.bf16.gmra.mrb[28].mxu0 %v5133_v54 }
 0x2c7   : > { %3091 = vmatpush3.bf16.msra.mxu0 %v3706_v14  ;;  %2808 = vmatprep.mubr.msk.bf16.mxu1 %vm2755_vm3, %v4848_v34  ;;  %v3712_v34 = vld [vmem:[#allocation10 + $0x218] sm:$0xff]  }
 0x2c8   : > { %2853 = vmatprep.mubr.msk.bf16.mxu0 %vm4921_vm13, %v4929_v20  ;;  %3092 = vmatprep.subr.bf16.mxu0 %v3707_v60 }
 0x2c9   : > { %3307 = vmatpush3.bf16.msra.mxu1 %v3717_v1 }
 0x2ca   : > { %3308 = vmatprep.subr.bf16.mxu1 %v3718_v22 }
 0x2cb   : > { %3093 = vmatpush3.bf16.msra.mxu0 %v3708_v39 }
 0x2cc   : > { %3274 = vmatprep.subr.bf16.mxu0 %v3709_v50 }
 0x2cd   : > { %3309 = vmatpush3.bf16.msra.mxu1 %v3718_v22 }
 0x2ce   : > { %1647 = vmatmul.mubr.bf16.gmra.mrb[40].mxu1 %v4933_v23  ;;  %2026 = vmatmul.mubr.bf16.vlgmr.msra.gmra.mrb[32].mxu0 %v4998_v25  ;;  %v3716_v23 = vld [vmem:[#allocation10 + $0x238] sm:$0xff]  }
 0x2cf   : > { %3275 = vmatpush3.bf16.msra.mxu0 %v3709_v50  ;;  %2811 = vmatprep.mubr.msk.bf16.mxu1 %vm4921_vm13, %v4929_v20  ;;  %v3714_v20 = vld [vmem:[#allocation10 + $0x228] sm:$0xff]  }
 0x2d0   : > { %2856 = vmatprep.mubr.msk.bf16.mxu0 %vm4989_vm9, %v4916_v15  ;;  %3276 = vmatprep.subr.bf16.mxu0 %v3710_v3 }
 0x2d3   : > { %3277 = vmatpush3.bf16.msra.mxu0 %v3710_v3 }
 0x2d4   : > { %3278 = vmatprep.subr.bf16.mxu0 %v3711_v8 }
 0x2d6   : > { %1655 = vmatmul.mubr.bf16.gmra.mrb[44].mxu1 %v4998_v25  ;;  %2034 = vmatmul.mubr.bf16.gmra.mrb[36].mxu0 %v5070_v21 }
 0x2d7   : > { %2814 = vmatprep.mubr.msk.bf16.mxu1 %vm4989_vm9, %v4916_v15  ;;  %2859 = vmatprep.mubr.msk.bf16.mxu0 %vm5062_vm7, %v4984_v11  ;;  %v3715_v15 = vld [vmem:[#allocation10 + $0x230] sm:$0xff]  }
 0x2d8   : > { %3279 = vmatpush3.bf16.msra.mxu0 %v3711_v8 }
 0x2d9   : > { %3280 = vmatprep.subr.bf16.mxu0 %v3712_v34 }
 0x2dc   : > { %3281 = vmatpush3.bf16.msra.mxu0 %v3712_v34 }
 0x2dd   : > { %3282 = vmatprep.subr.bf16.mxu0 %v3713_v16 }
 0x2de   : > { %1663 = vmatmul.mubr.bf16.gmra.mrb[48].mxu1 %v5070_v21  ;;  %2042 = vmatmul.mubr.bf16.gmra.mrb[40].mxu0 %v5116_v53 }
 0x2df   : > { %2817 = vmatprep.mubr.msk.bf16.mxu1 %vm5062_vm7, %v4984_v11  ;;  %2862 = vmatprep.mubr.msk.bf16.mxu0 %vm5109_vm10, %v4976_v59 }
 0x2e0   : > { %3283 = vmatpush3.bf16.msra.mxu0 %v3713_v16 }
 0x2e1   : > { %3284 = vmatprep.subr.bf16.mxu0 %v3714_v20 }
 0x2e4   : > { %3285 = vmatpush3.bf16.msra.mxu0 %v3714_v20 }
 0x2e5   : > { %3286 = vmatprep.subr.bf16.mxu0 %v3715_v15 }
 0x2e6   : > { %1671 = vmatmul.mubr.bf16.gmra.mrb[52].mxu1 %v5116_v53  ;;  %2050 = vmatmul.mubr.bf16.gmra.mrb[44].mxu0 %v5158_v27 }
 0x2e7   : > { %2820 = vmatprep.mubr.msk.bf16.mxu1 %vm5109_vm10, %v4976_v59  ;;  %2865 = vmatprep.mubr.msk.bf16.mxu0 %vm5152_vm5, %v5057_v9  ;;  %v3722_v59 = vld [vmem:[#allocation11 + $0x28] sm:$0xff]  }
 0x2e8   : > { %3287 = vmatpush3.bf16.msra.mxu0 %v3715_v15 }
 0x2e9   : > { %3288 = vmatprep.subr.bf16.mxu0 %v3716_v23 }
 0x2ec   : > { %3289 = vmatpush3.bf16.msra.mxu0 %v3716_v23 }
 0x2ee   : > { %1679 = vmatmul.mubr.bf16.gmra.mrb[56].mxu1 %v5158_v27  ;;  %2058 = vmatmul.mubr.bf16.gmra.mrb[48].mxu0 %v5182_v55 }
 0x2ef   : > { %2823 = vmatprep.mubr.msk.bf16.mxu1 %vm5152_vm5, %v5057_v9  ;;  %2868 = vmatprep.mubr.msk.bf16.mxu0 %vm5176_vm4, %v5049_v56 }
 0x2f6   : > { %1687 = vmatmul.mubr.bf16.gmra.mrb[60].mxu1 %v5182_v55  ;;  %2066 = vmatmul.mubr.bf16.gmra.mrb[52].mxu0 %v5199_v29 }
 0x2f7   : > { %2826 = vmatprep.mubr.msk.bf16.mxu1 %vm5176_vm4, %v5049_v56  ;;  %2871 = vmatprep.mubr.msk.bf16.mxu0 %vm2776_vm14, %v4901_v5  ;;  %v3721_v5 = vld [vmem:[#allocation11 + $0x20] sm:$0xff]   ;;  %v3723_v56 = vld [vmem:[#allocation11 + $0x30] sm:$0xff]  }
 0x2fe   : > { %1695 = vmatmul.mubr.bf16.gmra.mrb[64].mxu1 %v5199_v29  ;;  %2074 = vmatmul.mubr.bf16.gmra.mrb[56].mxu0 %v5217_v7 }
 0x2ff   : > { %2874 = vmatprep.mubr.msk.bf16.mxu0 %vm2872_vm12, %v4869_v46  ;;  %v3719_v46 = vld [vmem:[#allocation11 + $0x10] sm:$0xff]  }
 0x300   : > { %3310 = vmatprep.subr.bf16.mxu1 %v3719_v46 }
 0x301   : > { %3311 = vmatpush3.bf16.msra.mxu1 %v3719_v46 }
 0x302   : > { %3312 = vmatprep.subr.bf16.mxu1 %v3720_v2 }
 0x305   : > { %3313 = vmatpush3.bf16.msra.mxu1 %v3720_v2 }
 0x306   : > { %2082 = vmatmul.mubr.bf16.gmra.mrb[60].mxu0 %v983_v63  ;;  %3314 = vmatprep.subr.bf16.mxu1 %v3721_v5 }
 0x307   : > { %3290 = vmatprep.mubr.bf16.mxu0 %v5002_v26 }
 0x309   : > { %3315 = vmatpush3.bf16.msra.mxu1 %v3721_v5 }
 0x30a   : > { %3316 = vmatprep.subr.bf16.mxu1 %v3722_v59 }
 0x30d   : > { %3317 = vmatpush3.bf16.msra.mxu1 %v3722_v59 }
 0x30e   : > { %3291 = vmatmul.mubr.bf16.vlgmr.msra.gmra.mrb[16].mxu0 %v5026_v41  ;;  %3318 = vmatprep.subr.bf16.mxu1 %v3723_v56 }
 0x30f   : > { %3294 = vmatprep.mubr.bf16.mxu0 %v5074_v24 }
 0x311   : > { %3319 = vmatpush3.bf16.msra.mxu1 %v3723_v56 }
 0x312   : > { %3320 = vmatprep.subr.bf16.mxu1 %v3724_v44 }
 0x315   : > { %3321 = vmatpush3.bf16.msra.mxu1 %v3724_v44 }
 0x316   : > { %3295 = vmatmul.mubr.bf16.gmra.mrb[20].mxu0 %v5089_v43 }
 0x317   : > { %3298 = vmatprep.mubr.bf16.mxu0 %v5120_v17 }
 0x31e   : > { %3299 = vmatmul.mubr.bf16.gmra.mrb[24].mxu0 %v5133_v54 }
 0x31f   : > { %3302 = vmatprep.mubr.bf16.mxu0 %v5162_v30 }
 0x326   : > { %3303 = vmatmul.mubr.bf16.gmra.mrb[28].mxu0 %v1026_v49 }
 0x358   : > { %v2934_v10 = vpop.f32.mrb[4].mxu1 }
 0x359   : > { %v2935_v11 = vpop.f32.mrb[5].mxu1 }
 0x35a   : > { %v2936_v13 = vadd.f32 %v2935_v11, %v2934_v10  ;;  %v2937_v25 = vpop.f32.mrb[6].mxu1 }
 0x35b   : > { %v2938_v26 = vpop.f32.mrb[7].mxu1 }
 0x35c   : > { %v2939_v41 = vadd.f32 %v2938_v26, %v2937_v25 }
 0x361   : > { %v2940_v9 = vpop.f32.mrb[8].mxu1 }
 0x362   : > { %v2941_v12 = vpop.f32.mrb[9].mxu1 }
 0x363   : > { %v2942_v21 = vadd.f32 %v2941_v12, %v2940_v9  ;;  %v2943_v24 = vpop.f32.mrb[10].mxu1 }
 0x364   : > { %v2944_v43 = vpop.f32.mrb[11].mxu1 }
 0x365   : > { %v2945_v33 = vadd.f32 %v2944_v43, %v2943_v24 }
 0x369   : > { %v2946_v53 = vpop.f32.mrb[12].mxu1 }
 0x36a   : > { %v2947_v17 = vpop.f32.mrb[13].mxu1 }
 0x36b   : > { %v5309_v54 = vadd.f32 %v2947_v17, %v2946_v53  ;;  %v2949_v63 = vpop.f32.mrb[14].mxu1 }
 0x36c   : > { %v2950_v62 = vpop.f32.mrb[15].mxu1 }
 0x36d   : > { %v5311_v49 = vadd.f32 %v2950_v62, %v2949_v63 }
 0x371   : > { %v2952_v32 = vpop.f32.mrb[16].mxu1 }
 0x372   : > { %v2953_v27 = vpop.f32.mrb[17].mxu1 }
 0x373   : > { %v5313_v30 = vadd.f32 %v2953_v27, %v2952_v32  ;;  %v2955_v0 = vpop.f32.mrb[18].mxu1 }
 0x374   : > { %v2956_v36 = vpop.f32.mrb[19].mxu1 }
 0x375   : > { %v5315_v52 = vadd.f32 %v2956_v36, %v2955_v0 }
 0x379   : > { %v2958_v35 = vpop.f32.mrb[20].mxu1 }
 0x37a   : > { %v2959_v38 = vpop.f32.mrb[21].mxu1 }
 0x37b   : > { %v5317_v45 = vadd.f32 %v2959_v38, %v2958_v35  ;;  %v2961_v55 = vpop.f32.mrb[22].mxu1 }
 0x37c   : > { %v2962_v19 = vpop.f32.mrb[23].mxu1 }
 0x37d   : > { %v5319_v37 = vadd.f32 %v2962_v19, %v2961_v55 }
 0x381   : > { %v2964_v40 = vpop.f32.mrb[24].mxu1 }
 0x382   : > { %v2965_v47 = vpop.f32.mrb[25].mxu1 }
 0x383   : > { %v5321_v18 = vadd.f32 %v2965_v47, %v2964_v40  ;;  %v2967_v28 = vpop.f32.mrb[26].mxu1 }
 0x384   : > { %v2968_v29 = vpop.f32.mrb[27].mxu1 }
 0x385   : > { %v5323_v57 = vadd.f32 %v2968_v29, %v2967_v28 }
 0x389   : > { %v2970_v61 = vpop.f32.mrb[28].mxu1 }
 0x38a   : > { %v2971_v31 = vpop.f32.mrb[29].mxu1 }
 0x38b   : > { %v5325_v51 = vadd.f32 %v2971_v31, %v2970_v61  ;;  %v2973_v6 = vpop.f32.mrb[30].mxu1 }
 0x38c   : > { %v2974_v58 = vpop.f32.mrb[31].mxu1 }
 0x38d   : > { %v5327_v7 = vadd.f32 %v2974_v58, %v2973_v6 }
 0x391   : > { %v2976_v4 = vpop.f32.mrb[32].mxu1 }
 0x392   : > { %v2977_v48 = vpop.f32.mrb[33].mxu1 }
 0x393   : > { %v5329_v14 = vadd.f32 %v2977_v48, %v2976_v4  ;;  %v2979_v60 = vpop.f32.mrb[34].mxu1 }
 0x394   : > { %v2980_v42 = vpop.f32.mrb[35].mxu1 }
 0x395   : > { %v5331_v39 = vadd.f32 %v2980_v42, %v2979_v60 }
 0x399   : > { %v3014_v50 = vpop.f32.mrb[36].mxu1 }
 0x39a   : > { %v3015_v3 = vpop.f32.mrb[37].mxu1 }
 0x39b   : > { %v3016_v8 = vadd.f32 %v3015_v3, %v3014_v50  ;;  %v3017_v34 = vpop.f32.mrb[38].mxu1 }
 0x39c   : > { %v3018_v16 = vpop.f32.mrb[39].mxu1 }
 0x39d   : > { %v3357_v20 = vadd.f32 %v3016_v8, %v2936_v13  ;;  %v3019_v15 = vadd.f32 %v3018_v16, %v3017_v34 }
 0x39f   : > { %v3363_v23 = vadd.f32 %v3019_v15, %v2939_v41 }
 0x3a1   : > { %v3020_v1 = vpop.f32.mrb[40].mxu1  ;;  %v3094_v22 = vpop.f32.mrb[32].mxu0 }
 0x3a2   : > { %v3021_v46 = vpop.f32.mrb[41].mxu1  ;;  %v3095_v2 = vpop.f32.mrb[33].mxu0 }
 0x3a3   : > { %v3022_v5 = vadd.f32 %v3021_v46, %v3020_v1  ;;  %v3096_v59 = vadd.f32 %v3095_v2, %v3094_v22  ;;  %v3023_v10 = vpop.f32.mrb[42].mxu1  ;;  %v3097_v11 = vpop.f32.mrb[34].mxu0 }
 0x3a4   : > { %v3024_v25 = vpop.f32.mrb[43].mxu1  ;;  %v3098_v26 = vpop.f32.mrb[35].mxu0 }
 0x3a5   : > { %v3354_v56 = vadd.f32 %v3022_v5, %v2942_v21  ;;  %v3025_v9 = vadd.f32 %v3024_v25, %v3023_v10  ;;  %v3099_v12 = vadd.f32 %v3098_v26, %v3097_v11  ;;  %v5333_v24 = vadd.f32 %v3357_v20, %v3096_v59 }
 0x3a7   : > { %v3360_v43 = vadd.f32 %v3025_v9, %v2945_v33  ;;  %v5335_v53 = vadd.f32 %v3363_v23, %v3099_v12 }
 0x3a9   : > { %v3026_v13 = vpop.f32.mrb[44].mxu1  ;;  %v3100_v41 = vpop.f32.mrb[36].mxu0 }
 0x3aa   : > { %v3027_v17 = vpop.f32.mrb[45].mxu1  ;;  %v3101_v44 = vpop.f32.mrb[37].mxu0 }
 0x3ab   : > { %v3028_v63 = vadd.f32 %v3027_v17, %v3026_v13  ;;  %v3102_v62 = vadd.f32 %v3101_v44, %v3100_v41  ;;  %v3029_v32 = vpop.f32.mrb[46].mxu1  ;;  %v3103_v27 = vpop.f32.mrb[38].mxu0 }
 0x3ac   : > { %v3030_v0 = vpop.f32.mrb[47].mxu1  ;;  %v3104_v36 = vpop.f32.mrb[39].mxu0 }
 0x3ad   : > { %v3369_v35 = vadd.f32 %v3028_v63, %v5309_v54  ;;  %v3031_v21 = vadd.f32 %v3030_v0, %v3029_v32  ;;  %v3105_v38 = vadd.f32 %v3104_v36, %v3103_v27  ;;  %v5338_v55 = vadd.f32 %v3354_v56, %v3102_v62 }
 0x3af   : > { %v3375_v33 = vadd.f32 %v3031_v21, %v5311_v49  ;;  %v5341_v19 = vadd.f32 %v3360_v43, %v3105_v38 }
 0x3b1   : > { %v3032_v40 = vpop.f32.mrb[48].mxu1  ;;  %v3106_v47 = vpop.f32.mrb[40].mxu0 }
 0x3b2   : > { %v3033_v28 = vpop.f32.mrb[49].mxu1  ;;  %v3107_v29 = vpop.f32.mrb[41].mxu0 }
 0x3b3   : > { %v3034_v61 = vadd.f32 %v3033_v28, %v3032_v40  ;;  %v3108_v31 = vadd.f32 %v3107_v29, %v3106_v47  ;;  %v3035_v6 = vpop.f32.mrb[50].mxu1  ;;  %v3109_v58 = vpop.f32.mrb[42].mxu0 }
 0x3b4   : > { %v3036_v4 = vpop.f32.mrb[51].mxu1  ;;  %v3110_v48 = vpop.f32.mrb[43].mxu0 }
 0x3b5   : > { %v3366_v54 = vadd.f32 %v3034_v61, %v5313_v30  ;;  %v3037_v60 = vadd.f32 %v3036_v4, %v3035_v6  ;;  %v3111_v42 = vadd.f32 %v3110_v48, %v3109_v58  ;;  %v5344_v50 = vadd.f32 %v3369_v35, %v3108_v31 }
 0x3b7   : > { %v3372_v49 = vadd.f32 %v3037_v60, %v5315_v52  ;;  %v5347_v3 = vadd.f32 %v3375_v33, %v3111_v42 }
 0x3b9   : > { %v3038_v8 = vpop.f32.mrb[52].mxu1  ;;  %v3112_v34 = vpop.f32.mrb[44].mxu0 }
 0x3ba   : > { %v3039_v16 = vpop.f32.mrb[53].mxu1  ;;  %v3113_v20 = vpop.f32.mrb[45].mxu0 }
 0x3bb   : > { %v3040_v15 = vadd.f32 %v3039_v16, %v3038_v8  ;;  %v3114_v23 = vadd.f32 %v3113_v20, %v3112_v34  ;;  %v3041_v1 = vpop.f32.mrb[54].mxu1  ;;  %v3115_v22 = vpop.f32.mrb[46].mxu0 }
 0x3bc   : > { %v3042_v46 = vpop.f32.mrb[55].mxu1  ;;  %v3116_v2 = vpop.f32.mrb[47].mxu0 }
 0x3bd   : > { %v3381_v30 = vadd.f32 %v3040_v15, %v5317_v45  ;;  %v3043_v5 = vadd.f32 %v3042_v46, %v3041_v1  ;;  %v3117_v59 = vadd.f32 %v3116_v2, %v3115_v22  ;;  %v5350_v10 = vadd.f32 %v3366_v54, %v3114_v23 }
 0x3bf   : > { %v3387_v52 = vadd.f32 %v3043_v5, %v5319_v37  ;;  %v5353_v11 = vadd.f32 %v3372_v49, %v3117_v59 }
 0x3c1   : > { %v3044_v25 = vpop.f32.mrb[56].mxu1  ;;  %v3118_v26 = vpop.f32.mrb[48].mxu0 }
 0x3c2   : > { %v3045_v56 = vpop.f32.mrb[57].mxu1  ;;  %v3119_v9 = vpop.f32.mrb[49].mxu0 }
 0x3c3   : > { %v3046_v12 = vadd.f32 %v3045_v56, %v3044_v25  ;;  %v3120_v43 = vadd.f32 %v3119_v9, %v3118_v26  ;;  %v3047_v13 = vpop.f32.mrb[58].mxu1  ;;  %v3121_v41 = vpop.f32.mrb[50].mxu0  ;;  %v5375_v9 = vld [vmem:[#allocation14] ss:$0 sm:$0xff] }
 0x3c4   : > { %v3048_v17 = vpop.f32.mrb[59].mxu1  ;;  %v3122_v44 = vpop.f32.mrb[51].mxu0 }
 0x3c5   : > { %v3378_v45 = vadd.f32 %v3046_v12, %v5321_v18  ;;  %v3049_v63 = vadd.f32 %v3048_v17, %v3047_v13  ;;  %v3123_v62 = vadd.f32 %v3122_v44, %v3121_v41  ;;  %v5356_v32 = vadd.f32 %v3381_v30, %v3120_v43 }
 0x3c7   : > { %v3384_v37 = vadd.f32 %v3049_v63, %v5323_v57  ;;  %v5359_v27 = vadd.f32 %v3387_v52, %v3123_v62 }
 0x3c9   : > { %v3050_v0 = vpop.f32.mrb[60].mxu1  ;;  %v3124_v36 = vpop.f32.mrb[52].mxu0 }
 0x3ca   : > { %v3051_v35 = vpop.f32.mrb[61].mxu1  ;;  %v3125_v21 = vpop.f32.mrb[53].mxu0 }
 0x3cb   : > { %v3052_v38 = vadd.f32 %v3051_v35, %v3050_v0  ;;  %v3126_v33 = vadd.f32 %v3125_v21, %v3124_v36  ;;  %v3053_v40 = vpop.f32.mrb[62].mxu1  ;;  %v3127_v47 = vpop.f32.mrb[54].mxu0 }
 0x3cc   : > { %v3054_v28 = vpop.f32.mrb[63].mxu1  ;;  %v3128_v29 = vpop.f32.mrb[55].mxu0 }
 0x3cd   : > { %v3393_v18 = vadd.f32 %v3052_v38, %v5325_v51  ;;  %v3055_v61 = vadd.f32 %v3054_v28, %v3053_v40  ;;  %v3129_v31 = vadd.f32 %v3128_v29, %v3127_v47  ;;  %v5362_v6 = vadd.f32 %v3378_v45, %v3126_v33 }
 0x3cf   : > { %v3399_v57 = vadd.f32 %v3055_v61, %v5327_v7  ;;  %v5365_v58 = vadd.f32 %v3384_v37, %v3129_v31 }
 0x3d1   : > { %v3056_v4 = vpop.f32.mrb[64].mxu1  ;;  %v3130_v48 = vpop.f32.mrb[56].mxu0 }
 0x3d2   : > { %v3057_v54 = vpop.f32.mrb[65].mxu1  ;;  %v3131_v60 = vpop.f32.mrb[57].mxu0 }
 0x3d3   : > { %v3058_v42 = vadd.f32 %v3057_v54, %v3056_v4  ;;  %v3132_v49 = vadd.f32 %v3131_v60, %v3130_v48  ;;  %v3059_v8 = vpop.f32.mrb[66].mxu1  ;;  %v3133_v34 = vpop.f32.mrb[58].mxu0 }
 0x3d4   : > { %v3060_v16 = vpop.f32.mrb[67].mxu1  ;;  %v3134_v20 = vpop.f32.mrb[59].mxu0 }
 0x3d5   : > { %v3390_v51 = vadd.f32 %v3058_v42, %v5329_v14  ;;  %v3061_v15 = vadd.f32 %v3060_v16, %v3059_v8  ;;  %v3135_v23 = vadd.f32 %v3134_v20, %v3133_v34  ;;  %v5368_v1 = vadd.f32 %v3393_v18, %v3132_v49 }
 0x3d7   : > { %v3396_v7 = vadd.f32 %v3061_v15, %v5331_v39  ;;  %v5371_v22 = vadd.f32 %v3399_v57, %v3135_v23 }
 0x3d9   : > { %v3136_v46 = vpop.f32.mrb[60].mxu0 }
 0x3da   : > { %v3137_v2 = vpop.f32.mrb[61].mxu0 }
 0x3db   : > { %v3138_v30 = vadd.f32 %v3137_v2, %v3136_v46  ;;  %v3139_v5 = vpop.f32.mrb[62].mxu0 }
 0x3dc   : > { %v3140_v59 = vpop.f32.mrb[63].mxu0 }
 0x3dd   : > { %v3141_v52 = vadd.f32 %v3140_v59, %v3139_v5  ;;  %v3391_v25 = vadd.f32 %v3390_v51, %v3138_v30 }
 0x3df   : > { %v5373_v26 = vadd.f32 %v3396_v7, %v3141_v52 }
 0x3e1   : > { %v3292_v56 = vpop.f32.mrb[16].mxu0 }
 0x3e2   : > { %v3356_v14 = vadd.f32 %v5338_v55, %v3292_v56  ;;  %v2124_v12 = vpop.f32.mrb[17].mxu0 }
 0x3e3   : > { %v3359_v43 = vadd.f32 %v5333_v24, %v2124_v12  ;;  %v3293_v39 = vpop.f32.mrb[18].mxu0 }
 0x3e4   : > { %v2212_v13 = vadd.f32 %v3356_v14, %v5375_v9  ;;  %v3362_v41 = vadd.f32 %v5341_v19, %v3293_v39  ;;  %v2127_v17 = vpop.f32.mrb[19].mxu0 }
 0x3e5   : > { %v2210_v44 = vadd.f32 %v3359_v43, %v5375_v9  ;;  %v3365_v45 = vadd.f32 %v5335_v53, %v2127_v17 }
 0x3e6   : > { %v2213_v63 = vadd.f32 %v3362_v41, %v5375_v9  ;;  %v2228_v37 = vmax.f32 %v2212_v13, 0.0 }
 0x3e7   : > { %v2211_v62 = vadd.f32 %v3365_v45, %v5375_v9  ;;  %v2226_v55 = vmax.f32 %v2210_v44, 0.0 }
 0x3e8   : > { %v2229_v0 = vmax.f32 %v2213_v63, 0.0 }
 0x3e9   : > { %v2227_v36 = vmax.f32 %v2211_v62, 0.0  ;;  %v3296_v35 = vpop.f32.mrb[20].mxu0 }
 0x3ea   : > { %v2243_v24 = vpack.c.bf16 %v2229_v0, %v2228_v37  ;;  %v3368_v21 = vadd.f32 %v5350_v10, %v3296_v35  ;;  %v2140_v38 = vpop.f32.mrb[21].mxu0 }
 0x3eb   : > { %v3371_v19 = vadd.f32 %v5344_v50, %v2140_v38  ;;  %v3297_v33 = vpop.f32.mrb[22].mxu0  ;;  %v2242_v40 = vpack.c.bf16 %v2227_v36, %v2226_v55  ;;  %v3725_v55 = vld [vmem:[%s4727_s30 + $0x10] sm:$0xff] }
 0x3ec   : > { %v2216_v47 = vadd.f32 %v3368_v21, %v5375_v9  ;;  %v3374_v53 = vadd.f32 %v5353_v11, %v3297_v33  ;;  %v2143_v28 = vpop.f32.mrb[23].mxu0  ;;  %v3726_v21 = vld [vmem:[%s4727_s30] sm:$0xff] }
 0x3ed   : > { %v2214_v29 = vadd.f32 %v3371_v19, %v5375_v9  ;;  %v3377_v18 = vadd.f32 %v5347_v3, %v2143_v28  ;;  %3322 = vmatprep.mubr.bf16.mxu1 %v2242_v40  ;;  %v3727_v40 = vld [vmem:[%s4727_s30 + $0x18] sm:$0xff]  ;;  %v3728_v28 = vld [vmem:[%s4727_s30 + $0x8] sm:$0xff] }
 0x3ee   : > { %v2217_v61 = vadd.f32 %v3374_v53, %v5375_v9  ;;  %3323 = vmatmul.mubr.bf16.vlgmr.msra.gmra.mrb[68].mxu1 %v2243_v24  ;;  %v2232_v31 = vmax.f32 %v2216_v47, 0.0 }
 0x3ef   : > { %v2215_v10 = vadd.f32 %v3377_v18, %v5375_v9  ;;  %v2230_v50 = vmax.f32 %v2214_v29, 0.0 }
 0x3f0   : > { %v2233_v57 = vmax.f32 %v2217_v61, 0.0 }
 0x3f1   : > { %v2231_v4 = vmax.f32 %v2215_v10, 0.0  ;;  %v3300_v48 = vpop.f32.mrb[24].mxu0 }
 0x3f2   : > { %v3380_v54 = vadd.f32 %v5362_v6, %v3300_v48  ;;  %v2156_v60 = vpop.f32.mrb[25].mxu0  ;;  %v2245_v11 = vpack.c.bf16 %v2233_v57, %v2232_v31  ;;  %v3729_v48 = vld [vmem:[%s4727_s30 + $0x30] sm:$0xff] }
 0x3f3   : > { %v3383_v42 = vadd.f32 %v5356_v32, %v2156_v60  ;;  %v3301_v49 = vpop.f32.mrb[26].mxu0  ;;  %v2244_v8 = vpack.c.bf16 %v2231_v4, %v2230_v50 }
 0x3f4   : > { %v2220_v3 = vadd.f32 %v3380_v54, %v5375_v9  ;;  %v3386_v34 = vadd.f32 %v5365_v58, %v3301_v49  ;;  %v2159_v16 = vpop.f32.mrb[27].mxu0 }
 0x3f5   : > { %v2218_v20 = vadd.f32 %v3383_v42, %v5375_v9  ;;  %v3389_v51 = vadd.f32 %v5359_v27, %v2159_v16  ;;  %3326 = vmatprep.mubr.bf16.mxu1 %v2244_v8  ;;  %v3730_v42 = vld [vmem:[%s4727_s30 + $0x20] sm:$0xff] }
 0x3f6   : > { %v2221_v15 = vadd.f32 %v3386_v34, %v5375_v9  ;;  %3327 = vmatmul.mubr.bf16.gmra.mrb[72].mxu1 %v2245_v11  ;;  %v2236_v23 = vmax.f32 %v2220_v3, 0.0  ;;  %v3731_v34 = vld [vmem:[%s4727_s30 + $0x38] sm:$0xff] }
 0x3f7   : > { %v2219_v6 = vadd.f32 %v3389_v51, %v5375_v9  ;;  %v2234_v32 = vmax.f32 %v2218_v20, 0.0  ;;  %v3732_v51 = vld [vmem:[%s4727_s30 + $0x28] sm:$0xff] }
 0x3f8   : > { %v2237_v7 = vmax.f32 %v2221_v15, 0.0 }
 0x3f9   : > { %v2235_v46 = vmax.f32 %v2219_v6, 0.0  ;;  %v3304_v2 = vpop.f32.mrb[28].mxu0 }
 0x3fa   : > { %v3392_v30 = vadd.f32 %v3391_v25, %v3304_v2  ;;  %v2172_v5 = vpop.f32.mrb[29].mxu0  ;;  %v2247_v59 = vpack.c.bf16 %v2237_v7, %v2236_v23 }
 0x3fb   : > { %v3395_v58 = vadd.f32 %v5368_v1, %v2172_v5  ;;  %v3305_v52 = vpop.f32.mrb[30].mxu0  ;;  %v2246_v56 = vpack.c.bf16 %v2235_v46, %v2234_v32  ;;  %v3733_v5 = vld [vmem:[%s4727_s30 + $0x50] sm:$0xff] }
 0x3fc   : > { %v2224_v27 = vadd.f32 %v3392_v30, %v5375_v9  ;;  %v3398_v14 = vadd.f32 %v5373_v26, %v3305_v52  ;;  %v2175_v12 = vpop.f32.mrb[31].mxu0  ;;  %v5408_v26 = vld [vmem:[#allocation16] ss:$0 sm:$0xff] }
 0x3fd   : > { %v2222_v43 = vadd.f32 %v3395_v58, %v5375_v9  ;;  %v3401_v39 = vadd.f32 %v5371_v22, %v2175_v12  ;;  %3330 = vmatprep.mubr.bf16.mxu1 %v2246_v56  ;;  %v3734_v56 = vld [vmem:[%s4727_s30 + $0x40] sm:$0xff] }
 0x3fe   : > { %v2225_v13 = vadd.f32 %v3398_v14, %v5375_v9  ;;  %3331 = vmatmul.mubr.bf16.gmra.mrb[76].mxu1 %v2247_v59  ;;  %v2240_v41 = vmax.f32 %v2224_v27, 0.0 }
 0x3ff   : > { %v2223_v25 = vadd.f32 %v3401_v39, %v5375_v9  ;;  %v2238_v17 = vmax.f32 %v2222_v43, 0.0  ;;  %v3735_v43 = vld [vmem:[%s4727_s30 + $0x58] sm:$0xff] }
 0x400   : > { %v2241_v1 = vmax.f32 %v2225_v13, 0.0 }
 0x401   : > { %v2239_v44 = vmax.f32 %v2223_v25, 0.0  ;;  %v3736_v25 = vld [vmem:[%s4727_s30 + $0x48] sm:$0xff] }
 0x402   : > { %v2249_v45 = vpack.c.bf16 %v2241_v1, %v2240_v41 }
 0x403   : > { %v2248_v63 = vpack.c.bf16 %v2239_v44, %v2238_v17 }
 0x405   : > { %3334 = vmatprep.mubr.bf16.mxu1 %v2248_v63 }
 0x406   : > { %3335 = vmatmul.mubr.bf16.gmra.mrb[80].mxu1 %v2249_v45 }
 0x4c1   : > { %v3324_v22 = vpop.f32.mrb[68].mxu1 }
 0x4c2   : > { %v2364_v62 = vadd.f32 %v3324_v22, %v5408_v26  ;;  %v2355_v37 = vpop.f32.mrb[69].mxu1 }
 0x4c3   : > { %v2356_v9 = vadd.f32 %v5408_v26, %v2355_v37  ;;  %v3325_v0 = vpop.f32.mrb[70].mxu1  ;;  %v3737_v37 = vld [vmem:[%s4727_s30 + $0x70] sm:$0xff] }
 0x4c4   : > { %v2420_v36 = vadd.f32 %v3725_v55, %v2364_v62  ;;  %v2367_v35 = vadd.f32 %v3325_v0, %v5408_v26  ;;  %v2358_v24 = vpop.f32.mrb[71].mxu1 }
 0x4c5   : > { %v2418_v38 = vadd.f32 %v3726_v21, %v2356_v9  ;;  %v2359_v19 = vadd.f32 %v5408_v26, %v2358_v24 }
 0x4c6   : > { %v2436_v33 = vmax.f32 %v2420_v36, 0.0  ;;  %v2421_v47 = vadd.f32 %v3727_v40, %v2367_v35  ;;  %v3738_v36 = vld [vmem:[%s4727_s30 + $0x60] sm:$0xff]  ;;  %v3740_v40 = vld [vmem:[%s4727_s30 + $0x68] sm:$0xff] }
 0x4c7   : > { %v2434_v53 = vmax.f32 %v2418_v38, 0.0  ;;  %v2419_v29 = vadd.f32 %v3728_v28, %v2359_v19  ;;  %v3739_v38 = vld [vmem:[%s4727_s30 + $0x78] sm:$0xff]  ;;  %s4180_s30 = smov [#allocation17]  }
 0x4c8   : > { %2452 = vst [vmem:[%s5420_s15 + $0x10] sm:$0xff] %v2436_v33  ;;  %v2437_v18 = vmax.f32 %v2421_v47, 0.0  ;;  %s4003_s18 = sshll.u32 %s4180_s30, 4  ;;  %s4004_s18 = int_to_ptr.vmem [resolvable:$false] %s4003_s18 }
 0x4c9   : > { %2450 = vst [vmem:[%s5420_s15] sm:$0xff] %v2434_v53  ;;  %v2435_v61 = vmax.f32 %v2419_v29, 0.0  ;;  %v3328_v10 = vpop.f32.mrb[72].mxu1  ;;  %s4005_s10 = scalar_lea.vmem %s4004_s18, 4096  ;;  %p4006_p5 = scmp.lt.s32.totalorder %s5462_s16, %s4004_s18 }
 0x4ca   : > { %2453 = vst [vmem:[%s5420_s15 + $0x18] sm:$0xff] %v2437_v18  ;;  %v2380_v31 = vadd.f32 %v3328_v10, %v5408_v26  ;;  %v2371_v57 = vpop.f32.mrb[73].mxu1  ;;  %p4007_p10 = scmp.lt.s32.totalorder %s4005_s10, %s3999_s13 }
 0x4cb   : > { %2451 = vst [vmem:[%s5420_s15 + $0x8] sm:$0xff] %v2435_v61  ;;  %v2372_v50 = vadd.f32 %v5408_v26, %v2371_v57  ;;  %v3329_v4 = vpop.f32.mrb[74].mxu1 }
 0x4cc   : > { %v2424_v54 = vadd.f32 %v3729_v48, %v2380_v31  ;;  %v2383_v60 = vadd.f32 %v3329_v4, %v5408_v26  ;;  %v2374_v11 = vpop.f32.mrb[75].mxu1  ;;  %p4008_p0 = por %p4007_p10, %p4006_p5 }
 0x4cd   : > { %v2422_v49 = vadd.f32 %v3730_v42, %v2372_v50  ;;  %v2375_v8 = vadd.f32 %v5408_v26, %v2374_v11 }
 0x4ce   : > { %v2440_v3 = vmax.f32 %v2424_v54, 0.0  ;;  %v2425_v16 = vadd.f32 %v3731_v34, %v2383_v60  ;;  %p4009_p2 = pnand %p4008_p0, %p4002_p1 }
 0x4cf   : > { %v2438_v20 = vmax.f32 %v2422_v49, 0.0  ;;  %v2423_v15 = vadd.f32 %v3732_v51, %v2375_v8 }
 0x4d0   : > { %2456 = vst [vmem:[%s5420_s15 + $0x30] sm:$0xff] %v2440_v3  ;;  %v2441_v6 = vmax.f32 %v2425_v16, 0.0 }
 0x4d1   : > { %2454 = vst [vmem:[%s5420_s15 + $0x20] sm:$0xff] %v2438_v20  ;;  %v2439_v23 = vmax.f32 %v2423_v15, 0.0  ;;  %v3332_v7 = vpop.f32.mrb[76].mxu1 }
 0x4d2   : > { %2457 = vst [vmem:[%s5420_s15 + $0x38] sm:$0xff] %v2441_v6  ;;  %v2396_v32 = vadd.f32 %v3332_v7, %v5408_v26  ;;  %v2387_v46 = vpop.f32.mrb[77].mxu1 }
 0x4d3   : > { %2455 = vst [vmem:[%s5420_s15 + $0x28] sm:$0xff] %v2439_v23  ;;  %v2388_v2 = vadd.f32 %v5408_v26, %v2387_v46  ;;  %v3333_v30 = vpop.f32.mrb[78].mxu1 }
 0x4d4   : > { %v2428_v59 = vadd.f32 %v3733_v5, %v2396_v32  ;;  %v2399_v58 = vadd.f32 %v3333_v30, %v5408_v26  ;;  %v2390_v52 = vpop.f32.mrb[79].mxu1 }
 0x4d5   : > { %v2426_v27 = vadd.f32 %v3734_v56, %v2388_v2  ;;  %v2391_v14 = vadd.f32 %v5408_v26, %v2390_v52 }
 0x4d6   : > { %v2444_v12 = vmax.f32 %v2428_v59, 0.0  ;;  %v2429_v39 = vadd.f32 %v3735_v43, %v2399_v58 }
 0x4d7   : > { %v2442_v13 = vmax.f32 %v2426_v27, 0.0  ;;  %v2427_v41 = vadd.f32 %v3736_v25, %v2391_v14 }
 0x4d8   : > { %2460 = vst [vmem:[%s5420_s15 + $0x50] sm:$0xff] %v2444_v12  ;;  %v2445_v1 = vmax.f32 %v2429_v39, 0.0 }
 0x4d9   : > { %2458 = vst [vmem:[%s5420_s15 + $0x40] sm:$0xff] %v2442_v13  ;;  %v2443_v17 = vmax.f32 %v2427_v41, 0.0  ;;  %v3336_v44 = vpop.f32.mrb[80].mxu1 }
 0x4da   : > { %2461 = vst [vmem:[%s5420_s15 + $0x58] sm:$0xff] %v2445_v1  ;;  %v2412_v45 = vadd.f32 %v3336_v44, %v5408_v26  ;;  %v2403_v63 = vpop.f32.mrb[81].mxu1 }
 0x4db   : > { %2459 = vst [vmem:[%s5420_s15 + $0x48] sm:$0xff] %v2443_v17  ;;  %v2404_v22 = vadd.f32 %v5408_v26, %v2403_v63  ;;  %v3337_v62 = vpop.f32.mrb[82].mxu1 }
 0x4dc   : > { %v2432_v9 = vadd.f32 %v3737_v37, %v2412_v45  ;;  %v2415_v0 = vadd.f32 %v3337_v62, %v5408_v26  ;;  %v2406_v55 = vpop.f32.mrb[83].mxu1 }
 0x4dd   : > { %v2430_v35 = vadd.f32 %v3738_v36, %v2404_v22  ;;  %v2407_v24 = vadd.f32 %v5408_v26, %v2406_v55 }
 0x4de   : > { %v2448_v21 = vmax.f32 %v2432_v9, 0.0  ;;  %v2433_v19 = vadd.f32 %v3739_v38, %v2415_v0 }
 0x4df   : > { %v2446_v33 = vmax.f32 %v2430_v35, 0.0  ;;  %v2431_v47 = vadd.f32 %v3740_v40, %v2407_v24 }
 0x4e0   : > { %2464 = vst [vmem:[%s5420_s15 + $0x70] sm:$0xff] %v2448_v21  ;;  %v2449_v53 = vmax.f32 %v2433_v19, 0.0 }
 0x4e1   : > { %2462 = vst [vmem:[%s5420_s15 + $0x60] sm:$0xff] %v2446_v33  ;;  %v2447_v26 = vmax.f32 %v2431_v47, 0.0 }
 0x4e2   : > { %2465 = vst [vmem:[%s5420_s15 + $0x78] sm:$0xff] %v2449_v53 }
 0x4e3   : > { %2463 = vst [vmem:[%s5420_s15 + $0x68] sm:$0xff] %v2447_v26 }
 0x4e4   : > { %4012 = shalt.err (!%p4009_p2)
}
 0x4e5   : > { %s4013_s23 = scalar_lea.hbm %s5468_s2, 2048  ;;  %s4017_s15 = scalar_lea.hbm %s5708_s4, 8192 }
 0x4e6   : > { %p4014_p6 = scmp.ne.s32.totalorder %s5468_s2, %s4013_s23  ;;  %p4018_p3 = scmp.lt.u32.totalorder %s5468_s2, %s5708_s4 }
 0x4e7   : > { %p4019_p9 = scmp.lt.u32.totalorder %s4017_s15, %s4013_s23  ;;  %p4021_p7 = scmp.lt.u32.totalorder %s4013_s23, %s5468_s2 }
 0x4e8   : > { %p4015_p8 = pnand %p4014_p6, %p5709_p12 }
 0x4e9   : > { %p4020_p11 = por %p4019_p9, %p4018_p3 }
 0x4ea   : > { %p4016_p4 = pneg %p4015_p8 }
 0x4eb   : > { %p4022_p13 = por %p4021_p7, %p4020_p11 }
 0x4ed   : > { %p4023_p1 = pnand %p4022_p13, %p4016_p4 }
 0x4ef   : > { %4026 = shalt.err (!%p4023_p1)
}
 0x4f0   : > { %s4181_s27 = smov 128   ;;  %s4182_s8 = smov 8  }
 0x4f1   : > { %3464 = dma.vmem_to_hbm [thread:$0]  (%p5709_p12), %s5462_s16, 2048, %s5468_s2, %s2467_s3, %s4181_s27, %s4181_s27, %s4182_s8  }
 0x4f2 PF: > { %s5710_s24 = sld [smem:[#allocation29_spill]]  ;;  %p3512_p5 = scmp.ge.s32.totalorder %s4165_s22, 2 }
 0x4f3   : > { %p5711_p10 = scmp.ne.s32.totalorder %s5636_s11, 0 }
 0x4f5   : > { %p3496_p0 = pnand %p3512_p5, %p5711_p10 }
 0x4f8   : > { %s2498_s1 = sand.u32 1, %s5710_s24  }
 0x4f9   : > { %s2499_s7 = scalar_lea.sflag [#allocation4], %s2498_s1 }
 0x4fa   : > { %4108 = dma.done.wait (!%p3496_p0), %s2499_s7, 2048  }
 0x4fb   : > { %4110 = vsyncadd (!%p3496_p0), %s2499_s7, 4294965248  ;;  %s31_s22 = sadd.s32 1, %s4165_s22   ;;  %s5713_s30 = sld [smem:[#allocation26_spill]] }
 0x4fc   : > { %p5501_p2 = scmp.ge.s32.totalorder %s31_s22, 6   ;;  %s5714_s10 = sld [smem:[#allocation27_spill]] }
 0x4fd   : > { %s5715_s12 = sld [smem:[#allocation28_spill]]  ;;  %s5716_s15 = sld [smem:[#allocation30_spill]] }
 0x4fe   : > { %s5717_s29 = sld [smem:[#allocation34_spill]]  ;;  %s5718_s2 = sld [smem:[#allocation35_spill]] }
 0x4ff   : > { %s5720_s11 = smov %s5744_s25  ;;  %s5721_s13 = smov %s4133_s14 }
 0x500   : > { %s5722_s14 = smov %s4449_s5  ;;  %s5723_s16 = smov %s4145_s17 }
 0x501   : > { %s5724_s17 = smov %s4569_s19  ;;  %s5725_s18 = smov %s4157_s20 }
 0x502   : > { %s5726_s19 = smov %s4161_s21  ;;  %30 = sbr.rel (!%p5501_p2) target bundleno = 26 (0x1a), region = 151 }
 0x504   : > { %s5727_s20 = smov %s5717_s29  ;;  %s5728_s21 = smov %s5718_s2 }
 0x509   :  { %2504 = vsyncpa [#allocation3], 1 }
 0x50a   :  { %2506 = vsyncpa [#allocation3 + $0x1], 1 }
 0x50b   :  { %2507 = vsyncpa [#allocation6], 1 }
 0x50c   :  { %2509 = vsyncpa [#allocation6 + $0x1], 1 }
 0x50d   :  { %2510 = vsyncpa [#allocation9], 1 }
 0x50e   :  { %2511 = vsyncpa [#allocation12], 1 }
 0x50f   :  { %2512 = vsyncpa [#allocation15], 1 }
 0x510   :  { %2513 = vsyncpa [#allocation4], 1 }
 0x511   :  { %2515 = vsyncpa [#allocation4 + $0x1], 1 }

</bundles_post_ra>
